<compile_context>
chip_gen: v7x
topology: tpu7x:2x2x1
jax: 0.10.0
libtpu: 0.0.40
codegen_flags: <defaults>
</compile_context>

<pallas_src>
import jax
import jax.numpy as jnp
from jax import lax
from jax.experimental import pallas as pl
from jax.experimental.pallas import tpu as pltpu

EPS = 1e-5


# ----------------------------------------------------------------------------
# Pallas kernel
# ----------------------------------------------------------------------------
def make_mstcn_kernel(NB, T, V, P, tin, shifts, max_specs, lin_specs):
    Te = T + 2 * P
    R = Te * V
    TV = T * V

    def kernel(x_ref, A_ref, vec_ref, Wsh_ref, Wtr_ref, bfin_ref, out_ref):
        A = A_ref[...]                      # (C_in, tin)  fused branch 1x1 convs
        vecs = vec_ref[...]                 # (3, tin)
        a_all = vecs[0:1, :]                # fused 1x1 biases (+BN folded)
        st_all = vecs[1:2, :]               # transform BN scale
        tt_all = vecs[2:3, :]               # transform BN bias (+ temporal-conv bias folded)
        Wsh = Wsh_ref[...]                  # (S, tin, tin) per-shift block weights
        Wtr = Wtr_ref[...]                  # (tin, Cp)    transform conv (+final BN folded)
        bfin = bfin_ref[...]                # (1, Cp)

        row = lax.broadcasted_iota(jnp.int32, (R, 1), 0)
        valid = (row >= P * V) & (row < (P + T) * V)          # real (non-pad) rows
        col = lax.broadcasted_iota(jnp.int32, (1, tin), 1)

        for i in range(NB):                 # NB samples per grid step
            x = x_ref[i]                    # (R, C_in)
            pre = jnp.dot(x, A, preferred_element_type=jnp.float32) + a_all
            y = jnp.maximum(pre, 0.0)       # shared post-BN ReLU for conv/max branches

            # --- grouped multi-dilation temporal conv (all conv branches at once) ---
            y0 = jnp.where(valid, y, 0.0)   # temporal conv pads with zeros
            z = jnp.zeros((TV, tin), jnp.float32)
            for si, s in enumerate(shifts):
                off = (P + s) * V           # static, multiple of V (V % 8 == 0)
                z = z + jnp.dot(y0[off:off + TV, :], Wsh[si],
                                preferred_element_type=jnp.float32)

            # --- max-pool branches (MaxPool pads with -inf) ---
            if max_specs:
                yn = jnp.where(valid, y, -jnp.inf)
                for (c0, bc, ks) in max_specs:
                    zm = yn[P * V:P * V + TV, :]
                    for o in range(-1, ks - 1):
                        if o == 0:
                            continue
                        zm = jnp.maximum(zm, yn[(P + o) * V:(P + o) * V + TV, :])
                    m = (col >= c0) & (col < c0 + bc)
                    z = z + jnp.where(m, zm, 0.0)

            # --- plain 1x1 branches (no BN / no ReLU) ---
            for (c0, bc) in lin_specs:
                m = (col >= c0) & (col < c0 + bc)
                z = z + jnp.where(m, pre[P * V:P * V + TV, :], 0.0)

            # transform BN + ReLU, then fused transform conv (+ final BN)
            f = jnp.maximum(st_all * z + tt_all, 0.0)
            out_ref[i] = jnp.dot(f, Wtr, preferred_element_type=jnp.float32) + bfin

    return kernel


# ----------------------------------------------------------------------------
# Parameter init (deterministic, synthetic)
# ----------------------------------------------------------------------------
def init_params(key, c_in, c_out, ms_cfg):
    nb = len(ms_cfg)
    mid = c_out // nb
    rem = c_out - mid * (nb - 1)
    bcs = [rem] + [mid] * (nb - 1)
    keys = jax.random.split(key, 64)
    ki = iter(range(64))

    def nrm(shape, scale=0.1):
        return (scale * jax.random.normal(keys[next(ki)], shape)).astype(jnp.float32)

    def uni(shape, lo=0.5, hi=1.5):
        return jax.random.uniform(keys[next(ki)], shape, jnp.float32, lo, hi)

    def bn_params(c):
        return dict(gamma=uni((c,)), beta=nrm((c,)), mean=nrm((c,)), var=uni((c,)))

    branches = []
    for cfg, bc in zip(ms_cfg, bcs):
        if cfg == '1x1':
            branches.append(dict(kind='1x1', W=nrm((bc, c_in)), b=nrm((bc,))))
        elif cfg[0] == 'max':
            branches.append(dict(kind='max', ks=cfg[1], W=nrm((bc, c_in)), b=nrm((bc,)),
                                 bn=bn_params(bc)))
        else:
            k, d = cfg
            branches.append(dict(kind='conv', dil=d,
                                 W=nrm((bc, c_in)), b=nrm((bc,)), bn=bn_params(bc),
                                 Wt=nrm((bc, bc, k)), bt=nrm((bc,))))
    tin = sum(bcs)
    return dict(branches=branches, bcs=bcs,
                t_bn=bn_params(tin), t_W=nrm((c_out, tin)), t_b=nrm((c_out,)),
                f_bn=bn_params(c_out))


# ----------------------------------------------------------------------------
# Folding / packing for the kernel
# ----------------------------------------------------------------------------
def fold_params(params, c_in, c_out_pad):
    bcs = params['bcs']
    tin = int(sum(bcs))
    c_out = params['t_W'].shape[0]

    s_t = params['t_bn']['gamma'] / jnp.sqrt(params['t_bn']['var'] + EPS)
    t_t = params['t_bn']['beta'] - s_t * params['t_bn']['mean']
    s_f = params['f_bn']['gamma'] / jnp.sqrt(params['f_bn']['var'] + EPS)
    t_f = params['f_bn']['beta'] - s_f * params['f_bn']['mean']
    Wtr = (s_f[:, None] * params['t_W']).T                    # (tin, c_out)
    b_fin = s_f * params['t_b'] + t_f                         # (c_out,)

    A_all = jnp.zeros((c_in, tin), jnp.float32)
    a_all = jnp.zeros((tin,), jnp.float32)
    bt_all = jnp.zeros((tin,), jnp.float32)

    conv_list, max_specs, lin_specs = [], [], []
    col = 0
    for bp, bc in zip(params['branches'], bcs):
        if bp['kind'] in ('conv', 'max'):
            s1 = bp['bn']['gamma'] / jnp.sqrt(bp['bn']['var'] + EPS)
            t1 = bp['bn']['beta'] - s1 * bp['bn']['mean']
            A = (s1[:, None] * bp['W']).T                     # (c_in, bc) BN folded
            a = s1 * bp['b'] + t1
        else:
            A = bp['W'].T
            a = bp['b']
        A_all = A_all.at[:, col:col + bc].set(A)
        a_all = a_all.at[col:col + bc].set(a)
        if bp['kind'] == 'conv':
            bt_all = bt_all.at[col:col + bc].set(bp['bt'])
            conv_list.append((col, bc, bp['Wt'], bp['dil']))
        elif bp['kind'] == 'max':
            max_specs.append((col, bc, bp['ks']))
        else:
            lin_specs.append((col, bc))
        col += bc

    # distinct temporal shifts over all conv branches -> block weights per shift
    shift_set = set()
    for (_, _, Wt, d) in conv_list:
        ks = Wt.shape[2]
        assert ks % 2 == 1  # TODO(synk): even temporal kernel sizes not supported
        for k in range(ks):
            shift_set.add((k - (ks - 1) // 2) * d)
    shifts = sorted(shift_set)
    S = max(len(shifts), 1)
    Wsh = jnp.zeros((S, tin, tin), jnp.float32)
    for (c0, bc, Wt, d) in conv_list:
        ks = Wt.shape[2]
        for k in range(ks):
            si = shifts.index((k - (ks - 1) // 2) * d)
            Wsh = Wsh.at[si, c0:c0 + bc, c0:c0 + bc].add(Wt[:, :, k].T)

    tt_eff = t_t + s_t * bt_all                               # fold temporal-conv bias
    vec3 = jnp.stack([a_all, s_t, tt_eff], axis=0)            # (3, tin)
    Wtr_pad = jnp.zeros((tin, c_out_pad), jnp.float32).at[:, :c_out].set(Wtr)
    bfin_pad = jnp.zeros((1, c_out_pad), jnp.float32).at[0, :c_out].set(b_fin)

    return (A_all, vec3, Wsh, Wtr_pad, bfin_pad), shifts, max_specs, lin_specs


# ----------------------------------------------------------------------------
# Wrapper around pallas_call
# ----------------------------------------------------------------------------
def mstcn_pallas(x_nctv, params):
    N, C, T, V = x_nctv.shape
    c_out = params['t_W'].shape[0]
    tin = int(sum(params['bcs']))
    c_out_pad = ((c_out + 127) // 128) * 128      # lane-dense output stores
    Vp = ((V + 7) // 8) * 8                       # sublane-aligned temporal shifts

    # temporal padding P = max reach over branches
    P = 1
    for bp in params['branches']:
        if bp['kind'] == 'conv':
            ks = bp['Wt'].shape[2]
            P = max(P, ((ks - 1) // 2) * bp['dil'])
        elif bp['kind'] == 'max':
            P = max(P, bp['ks'] - 2)
    Te = T + 2 * P

    flat, shifts, max_specs, lin_specs = fold_params(params, C, c_out_pad)
    A_all, vec3, Wsh, Wtr_pad, bfin_pad = flat

    # channels-last; zero-pad T by P and V to Vp
    x_t = jnp.transpose(x_nctv, (0, 2, 3, 1))                         # (N,T,V,C)
    x_p = jnp.pad(x_t, ((0, 0), (P, P), (0, Vp - V), (0, 0)))         # (N,Te,Vp,C)
    x_f = x_p.reshape(N, Te * Vp, C).astype(jnp.float32)

    # samples per grid step (amortize per-step overhead; cap VMEM footprint)
    NB = 1
    for nb in range(min(N, 8), 0, -1):
        if N % nb == 0:
            NB = nb
            break
    # TODO(synk): for very small / odd N on v7x, add a parallel T-tiling axis.

    kernel = make_mstcn_kernel(NB, T, Vp, P, tin, shifts, max_specs, lin_specs)

    const2 = lambda n: (0, 0)
    const3 = lambda n: (0, 0, 0)
    in_specs = [
        pl.BlockSpec((NB, Te * Vp, C), lambda n: (n, 0, 0)),
        pl.BlockSpec(A_all.shape, const2),
        pl.BlockSpec(vec3.shape, const2),
        pl.BlockSpec(Wsh.shape, const3),
        pl.BlockSpec(Wtr_pad.shape, const2),
        pl.BlockSpec(bfin_pad.shape, const2),
    ]
    out_spec = pl.BlockSpec((NB, T * Vp, c_out_pad), lambda n: (n, 0, 0))

    out = pl.pallas_call(
        kernel,
        out_shape=jax.ShapeDtypeStruct((N, T * Vp, c_out_pad), jnp.float32),
        grid_spec=pltpu.PrefetchScalarGridSpec(
            num_scalar_prefetch=0,
            grid=(N // NB,),
            in_specs=in_specs,
            out_specs=out_spec),
        compiler_params=pltpu.CompilerParams(dimension_semantics=("parallel",)),
    )(x_f, A_all, vec3, Wsh, Wtr_pad, bfin_pad)

    out = out.reshape(N, T, Vp, c_out_pad)[:, :, :V, :c_out]
    return out.transpose(0, 3, 1, 2)                                  # back to NCHW


# ----------------------------------------------------------------------------
# Pure-JAX reference (independent implementation, NCHW) for verification
# ----------------------------------------------------------------------------
def _bn_ref(x, p):
    s = p['gamma'] / jnp.sqrt(p['var'] + EPS)
    return (s[None, :, None, None] * (x - p['mean'][None, :, None, None])
            + p['beta'][None, :, None, None])


def _conv1x1_ref(x, W, b):
    return jnp.einsum('nctv,oc->notv', x, W) + b[None, :, None, None]


def ref_forward(x, params):
    outs = []
    for bp in params['branches']:
        if bp['kind'] == '1x1':
            outs.append(_conv1x1_ref(x, bp['W'], bp['b']))
        elif bp['kind'] == 'max':
            y = jax.nn.relu(_bn_ref(_conv1x1_ref(x, bp['W'], bp['b']), bp['bn']))
            z = lax.reduce_window(y, -jnp.inf, lax.max, (1, 1, bp['ks'], 1),
                                  (1, 1, 1, 1), ((0, 0), (0, 0), (1, 1), (0, 0)))
            outs.append(z)
        else:
            d = bp['dil']
            ks = bp['Wt'].shape[2]
            pad = ((ks - 1) // 2) * d
            y = jax.nn.relu(_bn_ref(_conv1x1_ref(x, bp['W'], bp['b']), bp['bn']))
            Wt = bp['Wt'][:, :, :, None]                          # (O,I,ks,1)
            z = lax.conv_general_dilated(
                y, Wt, window_strides=(1, 1), padding=((pad, pad), (0, 0)),
                rhs_dilation=(d, 1), dimension_numbers=('NCHW', 'OIHW', 'NCHW'))
            outs.append(z + bp['bt'][None, :, None, None])
    feat = jnp.concatenate(outs, axis=1)
    feat = jax.nn.relu(_bn_ref(feat, params['t_bn']))
    feat = _conv1x1_ref(feat, params['t_W'], params['t_b'])
    return _bn_ref(feat, params['f_bn'])


# ----------------------------------------------------------------------------
if __name__ == "__main__":
    key = jax.random.PRNGKey(0)
    N, C_in, T, V = 2, 4, 16, 16
    C_out = 48
    ms_cfg = [(3, 1), (3, 2), (3, 3), (3, 4), ('max', 3), '1x1']

    kx, kp = jax.random.split(key)
    x = jax.random.normal(kx, (N, C_in, T, V), jnp.float32)
    params = init_params(kp, C_in, C_out, ms_cfg)

    out = jax.block_until_ready(mstcn_pallas(x, params))
    ref = jax.block_until_ready(ref_forward(x, params))

    assert out.shape == (N, C_out, T, V), out.shape
    err = float(jnp.max(jnp.abs(out - ref)))
    assert err < 1e-3, f"max abs err {err}"
    print("KERNEL_OK")
</pallas_src>

<mosaic_0001>
module attributes {stable_mosaic.version = 11 : i64} {
  func.func @kernel(%arg0: i32, %arg1: memref<2x384x4xf32, #tpu.memory_space<vmem>>, %arg2: memref<4x48xf32, #tpu.memory_space<vmem>>, %arg3: memref<3x48xf32, #tpu.memory_space<vmem>>, %arg4: memref<9x48x48xf32, #tpu.memory_space<vmem>>, %arg5: memref<48x128xf32, #tpu.memory_space<vmem>>, %arg6: memref<1x128xf32, #tpu.memory_space<vmem>>, %arg7: memref<2x256x128xf32, #tpu.memory_space<vmem>>) attributes {dimension_semantics = [#tpu.dimension_semantics<parallel>], iteration_bounds = array<i64: 1>, scalar_prefetch = 0 : i64, scratch_operands = 0 : i64, tpu.core_type = #tpu.core_type<tc>, window_params = [{transform_indices = @transform_0, window_bounds = array<i64: 2, 384, 4>}, {pipeline_mode = #tpu.pipeline_mode<synchronous>, transform_indices = @transform_1, window_bounds = array<i64: 4, 48>}, {pipeline_mode = #tpu.pipeline_mode<synchronous>, transform_indices = @transform_2, window_bounds = array<i64: 3, 48>}, {pipeline_mode = #tpu.pipeline_mode<synchronous>, transform_indices = @transform_3, window_bounds = array<i64: 9, 48, 48>}, {pipeline_mode = #tpu.pipeline_mode<synchronous>, transform_indices = @transform_4, window_bounds = array<i64: 48, 128>}, {pipeline_mode = #tpu.pipeline_mode<synchronous>, transform_indices = @transform_5, window_bounds = array<i64: 1, 128>}, {transform_indices = @transform_6, window_bounds = array<i64: 2, 256, 128>}]} {
    %c0 = arith.constant 0 : index
    %c0_0 = arith.constant 0 : index
    %0 = vector.load %arg2[%c0, %c0_0] : memref<4x48xf32, #tpu.memory_space<vmem>>, vector<4x48xf32>
    %c0_1 = arith.constant 0 : index
    %c0_2 = arith.constant 0 : index
    %1 = vector.load %arg3[%c0_1, %c0_2] : memref<3x48xf32, #tpu.memory_space<vmem>>, vector<3x48xf32>
    %2 = vector.extract_strided_slice %1 {offsets = [0, 0], sizes = [1, 48], strides = [1, 1]} : vector<3x48xf32> to vector<1x48xf32>
    %3 = vector.extract_strided_slice %1 {offsets = [1, 0], sizes = [1, 48], strides = [1, 1]} : vector<3x48xf32> to vector<1x48xf32>
    %4 = vector.extract_strided_slice %1 {offsets = [2, 0], sizes = [1, 48], strides = [1, 1]} : vector<3x48xf32> to vector<1x48xf32>
    %c0_3 = arith.constant 0 : index
    %c0_4 = arith.constant 0 : index
    %c0_5 = arith.constant 0 : index
    %5 = vector.load %arg4[%c0_3, %c0_4, %c0_5] : memref<9x48x48xf32, #tpu.memory_space<vmem>>, vector<9x48x48xf32>
    %c0_6 = arith.constant 0 : index
    %c0_7 = arith.constant 0 : index
    %6 = vector.load %arg5[%c0_6, %c0_7] : memref<48x128xf32, #tpu.memory_space<vmem>>, vector<48x128xf32>
    %c0_8 = arith.constant 0 : index
    %c0_9 = arith.constant 0 : index
    %7 = vector.load %arg6[%c0_8, %c0_9] : memref<1x128xf32, #tpu.memory_space<vmem>>, vector<1x128xf32>
    %8 = tpu.iota {dimensions = array<i32: 0>} : vector<384x1xi32>
    %c64_i32 = arith.constant 64 : i32
    %9 = vector.broadcast %c64_i32 : i32 to vector<384x1xi32>
    %10 = arith.cmpi sge, %8, %9 : vector<384x1xi32>
    %c320_i32 = arith.constant 320 : i32
    %11 = vector.broadcast %c320_i32 : i32 to vector<384x1xi32>
    %12 = arith.cmpi slt, %8, %11 : vector<384x1xi32>
    %13 = arith.andi %10, %12 : vector<384x1xi1>
    %14 = tpu.iota {dimensions = array<i32: 1>} : vector<1x48xi32>
    %c0_10 = arith.constant 0 : index
    %c0_11 = arith.constant 0 : index
    %c0_12 = arith.constant 0 : index
    %15 = vector.load %arg1[%c0_10, %c0_11, %c0_12] : memref<2x384x4xf32, #tpu.memory_space<vmem>>, vector<1x384x4xf32>
    %16 = vector.shape_cast %15 : vector<1x384x4xf32> to vector<384x4xf32>
    %cst = arith.constant dense<0.000000e+00> : vector<384x48xf32>
    %17 = tpu.matmul %16, %0, %cst {dimension_numbers = #tpu.dot_dimension_numbers<[1], [0], [0], [1], [0, 0, 1, 1], [], []>} : vector<384x4xf32>, vector<4x48xf32>, vector<384x48xf32> -> vector<384x48xf32>
    %18 = vector.broadcast %2 : vector<1x48xf32> to vector<384x48xf32>
    %19 = arith.addf %17, %18 : vector<384x48xf32>
    %cst_13 = arith.constant 0.000000e+00 : f32
    %20 = vector.broadcast %cst_13 : f32 to vector<384x48xf32>
    %21 = arith.maximumf %19, %20 : vector<384x48xf32>
    %cst_14 = arith.constant 0.000000e+00 : f32
    %22 = vector.shape_cast %13 : vector<384x1xi1> to vector<384x1xi1>
    %23 = vector.broadcast %22 : vector<384x1xi1> to vector<384x48xi1>
    %24 = vector.broadcast %cst_14 : f32 to vector<384x48xf32>
    %25 = arith.select %23, %21, %24 : vector<384x48xi1>, vector<384x48xf32>
    %cst_15 = arith.constant 0.000000e+00 : f32
    %26 = vector.broadcast %cst_15 : f32 to vector<256x48xf32>
    %27 = vector.extract_strided_slice %25 {offsets = [0, 0], sizes = [256, 48], strides = [1, 1]} : vector<384x48xf32> to vector<256x48xf32>
    %28 = vector.extract_strided_slice %5 {offsets = [0, 0, 0], sizes = [1, 48, 48], strides = [1, 1, 1]} : vector<9x48x48xf32> to vector<1x48x48xf32>
    %29 = vector.shape_cast %28 : vector<1x48x48xf32> to vector<48x48xf32>
    %cst_16 = arith.constant dense<0.000000e+00> : vector<256x48xf32>
    %30 = tpu.matmul %27, %29, %cst_16 {dimension_numbers = #tpu.dot_dimension_numbers<[1], [0], [0], [1], [0, 0, 1, 1], [], []>} : vector<256x48xf32>, vector<48x48xf32>, vector<256x48xf32> -> vector<256x48xf32>
    %31 = arith.addf %26, %30 : vector<256x48xf32>
    %32 = vector.extract_strided_slice %25 {offsets = [16, 0], sizes = [256, 48], strides = [1, 1]} : vector<384x48xf32> to vector<256x48xf32>
    %33 = vector.extract_strided_slice %5 {offsets = [1, 0, 0], sizes = [1, 48, 48], strides = [1, 1, 1]} : vector<9x48x48xf32> to vector<1x48x48xf32>
    %34 = vector.shape_cast %33 : vector<1x48x48xf32> to vector<48x48xf32>
    %cst_17 = arith.constant dense<0.000000e+00> : vector<256x48xf32>
    %35 = tpu.matmul %32, %34, %cst_17 {dimension_numbers = #tpu.dot_dimension_numbers<[1], [0], [0], [1], [0, 0, 1, 1], [], []>} : vector<256x48xf32>, vector<48x48xf32>, vector<256x48xf32> -> vector<256x48xf32>
    %36 = arith.addf %31, %35 : vector<256x48xf32>
    %37 = vector.extract_strided_slice %25 {offsets = [32, 0], sizes = [256, 48], strides = [1, 1]} : vector<384x48xf32> to vector<256x48xf32>
    %38 = vector.extract_strided_slice %5 {offsets = [2, 0, 0], sizes = [1, 48, 48], strides = [1, 1, 1]} : vector<9x48x48xf32> to vector<1x48x48xf32>
    %39 = vector.shape_cast %38 : vector<1x48x48xf32> to vector<48x48xf32>
    %cst_18 = arith.constant dense<0.000000e+00> : vector<256x48xf32>
    %40 = tpu.matmul %37, %39, %cst_18 {dimension_numbers = #tpu.dot_dimension_numbers<[1], [0], [0], [1], [0, 0, 1, 1], [], []>} : vector<256x48xf32>, vector<48x48xf32>, vector<256x48xf32> -> vector<256x48xf32>
    %41 = arith.addf %36, %40 : vector<256x48xf32>
    %42 = vector.extract_strided_slice %25 {offsets = [48, 0], sizes = [256, 48], strides = [1, 1]} : vector<384x48xf32> to vector<256x48xf32>
    %43 = vector.extract_strided_slice %5 {offsets = [3, 0, 0], sizes = [1, 48, 48], strides = [1, 1, 1]} : vector<9x48x48xf32> to vector<1x48x48xf32>
    %44 = vector.shape_cast %43 : vector<1x48x48xf32> to vector<48x48xf32>
    %cst_19 = arith.constant dense<0.000000e+00> : vector<256x48xf32>
    %45 = tpu.matmul %42, %44, %cst_19 {dimension_numbers = #tpu.dot_dimension_numbers<[1], [0], [0], [1], [0, 0, 1, 1], [], []>} : vector<256x48xf32>, vector<48x48xf32>, vector<256x48xf32> -> vector<256x48xf32>
    %46 = arith.addf %41, %45 : vector<256x48xf32>
    %47 = vector.extract_strided_slice %25 {offsets = [64, 0], sizes = [256, 48], strides = [1, 1]} : vector<384x48xf32> to vector<256x48xf32>
    %48 = vector.extract_strided_slice %5 {offsets = [4, 0, 0], sizes = [1, 48, 48], strides = [1, 1, 1]} : vector<9x48x48xf32> to vector<1x48x48xf32>
    %49 = vector.shape_cast %48 : vector<1x48x48xf32> to vector<48x48xf32>
    %cst_20 = arith.constant dense<0.000000e+00> : vector<256x48xf32>
    %50 = tpu.matmul %47, %49, %cst_20 {dimension_numbers = #tpu.dot_dimension_numbers<[1], [0], [0], [1], [0, 0, 1, 1], [], []>} : vector<256x48xf32>, vector<48x48xf32>, vector<256x48xf32> -> vector<256x48xf32>
    %51 = arith.addf %46, %50 : vector<256x48xf32>
    %52 = vector.extract_strided_slice %25 {offsets = [80, 0], sizes = [256, 48], strides = [1, 1]} : vector<384x48xf32> to vector<256x48xf32>
    %53 = vector.extract_strided_slice %5 {offsets = [5, 0, 0], sizes = [1, 48, 48], strides = [1, 1, 1]} : vector<9x48x48xf32> to vector<1x48x48xf32>
    %54 = vector.shape_cast %53 : vector<1x48x48xf32> to vector<48x48xf32>
    %cst_21 = arith.constant dense<0.000000e+00> : vector<256x48xf32>
    %55 = tpu.matmul %52, %54, %cst_21 {dimension_numbers = #tpu.dot_dimension_numbers<[1], [0], [0], [1], [0, 0, 1, 1], [], []>} : vector<256x48xf32>, vector<48x48xf32>, vector<256x48xf32> -> vector<256x48xf32>
    %56 = arith.addf %51, %55 : vector<256x48xf32>
    %57 = vector.extract_strided_slice %25 {offsets = [96, 0], sizes = [256, 48], strides = [1, 1]} : vector<384x48xf32> to vector<256x48xf32>
    %58 = vector.extract_strided_slice %5 {offsets = [6, 0, 0], sizes = [1, 48, 48], strides = [1, 1, 1]} : vector<9x48x48xf32> to vector<1x48x48xf32>
    %59 = vector.shape_cast %58 : vector<1x48x48xf32> to vector<48x48xf32>
    %cst_22 = arith.constant dense<0.000000e+00> : vector<256x48xf32>
    %60 = tpu.matmul %57, %59, %cst_22 {dimension_numbers = #tpu.dot_dimension_numbers<[1], [0], [0], [1], [0, 0, 1, 1], [], []>} : vector<256x48xf32>, vector<48x48xf32>, vector<256x48xf32> -> vector<256x48xf32>
    %61 = arith.addf %56, %60 : vector<256x48xf32>
    %62 = vector.extract_strided_slice %25 {offsets = [112, 0], sizes = [256, 48], strides = [1, 1]} : vector<384x48xf32> to vector<256x48xf32>
    %63 = vector.extract_strided_slice %5 {offsets = [7, 0, 0], sizes = [1, 48, 48], strides = [1, 1, 1]} : vector<9x48x48xf32> to vector<1x48x48xf32>
    %64 = vector.shape_cast %63 : vector<1x48x48xf32> to vector<48x48xf32>
    %cst_23 = arith.constant dense<0.000000e+00> : vector<256x48xf32>
    %65 = tpu.matmul %62, %64, %cst_23 {dimension_numbers = #tpu.dot_dimension_numbers<[1], [0], [0], [1], [0, 0, 1, 1], [], []>} : vector<256x48xf32>, vector<48x48xf32>, vector<256x48xf32> -> vector<256x48xf32>
    %66 = arith.addf %61, %65 : vector<256x48xf32>
    %67 = vector.extract_strided_slice %25 {offsets = [128, 0], sizes = [256, 48], strides = [1, 1]} : vector<384x48xf32> to vector<256x48xf32>
    %68 = vector.extract_strided_slice %5 {offsets = [8, 0, 0], sizes = [1, 48, 48], strides = [1, 1, 1]} : vector<9x48x48xf32> to vector<1x48x48xf32>
    %69 = vector.shape_cast %68 : vector<1x48x48xf32> to vector<48x48xf32>
    %cst_24 = arith.constant dense<0.000000e+00> : vector<256x48xf32>
    %70 = tpu.matmul %67, %69, %cst_24 {dimension_numbers = #tpu.dot_dimension_numbers<[1], [0], [0], [1], [0, 0, 1, 1], [], []>} : vector<256x48xf32>, vector<48x48xf32>, vector<256x48xf32> -> vector<256x48xf32>
    %71 = arith.addf %66, %70 : vector<256x48xf32>
    %cst_25 = arith.constant 0xFF800000 : f32
    %72 = vector.shape_cast %13 : vector<384x1xi1> to vector<384x1xi1>
    %73 = vector.broadcast %72 : vector<384x1xi1> to vector<384x48xi1>
    %74 = vector.broadcast %cst_25 : f32 to vector<384x48xf32>
    %75 = arith.select %73, %21, %74 : vector<384x48xi1>, vector<384x48xf32>
    %76 = vector.extract_strided_slice %75 {offsets = [64, 0], sizes = [256, 48], strides = [1, 1]} : vector<384x48xf32> to vector<256x48xf32>
    %77 = vector.extract_strided_slice %75 {offsets = [48, 0], sizes = [256, 48], strides = [1, 1]} : vector<384x48xf32> to vector<256x48xf32>
    %78 = arith.maximumf %76, %77 : vector<256x48xf32>
    %79 = vector.extract_strided_slice %75 {offsets = [80, 0], sizes = [256, 48], strides = [1, 1]} : vector<384x48xf32> to vector<256x48xf32>
    %80 = arith.maximumf %78, %79 : vector<256x48xf32>
    %c32_i32 = arith.constant 32 : i32
    %81 = vector.broadcast %c32_i32 : i32 to vector<1x48xi32>
    %82 = arith.cmpi sge, %14, %81 : vector<1x48xi32>
    %c40_i32 = arith.constant 40 : i32
    %83 = vector.broadcast %c40_i32 : i32 to vector<1x48xi32>
    %84 = arith.cmpi slt, %14, %83 : vector<1x48xi32>
    %85 = arith.andi %82, %84 : vector<1x48xi1>
    %cst_26 = arith.constant 0.000000e+00 : f32
    %86 = vector.shape_cast %85 : vector<1x48xi1> to vector<1x48xi1>
    %87 = vector.broadcast %86 : vector<1x48xi1> to vector<256x48xi1>
    %88 = vector.broadcast %cst_26 : f32 to vector<256x48xf32>
    %89 = arith.select %87, %80, %88 : vector<256x48xi1>, vector<256x48xf32>
    %90 = arith.addf %71, %89 : vector<256x48xf32>
    %c40_i32_27 = arith.constant 40 : i32
    %91 = vector.broadcast %c40_i32_27 : i32 to vector<1x48xi32>
    %92 = arith.cmpi sge, %14, %91 : vector<1x48xi32>
    %c48_i32 = arith.constant 48 : i32
    %93 = vector.broadcast %c48_i32 : i32 to vector<1x48xi32>
    %94 = arith.cmpi slt, %14, %93 : vector<1x48xi32>
    %95 = arith.andi %92, %94 : vector<1x48xi1>
    %96 = vector.extract_strided_slice %19 {offsets = [64, 0], sizes = [256, 48], strides = [1, 1]} : vector<384x48xf32> to vector<256x48xf32>
    %cst_28 = arith.constant 0.000000e+00 : f32
    %97 = vector.shape_cast %95 : vector<1x48xi1> to vector<1x48xi1>
    %98 = vector.broadcast %97 : vector<1x48xi1> to vector<256x48xi1>
    %99 = vector.broadcast %cst_28 : f32 to vector<256x48xf32>
    %100 = arith.select %98, %96, %99 : vector<256x48xi1>, vector<256x48xf32>
    %101 = arith.addf %90, %100 : vector<256x48xf32>
    %102 = vector.broadcast %3 : vector<1x48xf32> to vector<256x48xf32>
    %103 = arith.mulf %102, %101 : vector<256x48xf32>
    %104 = vector.broadcast %4 : vector<1x48xf32> to vector<256x48xf32>
    %105 = arith.addf %103, %104 : vector<256x48xf32>
    %cst_29 = arith.constant 0.000000e+00 : f32
    %106 = vector.broadcast %cst_29 : f32 to vector<256x48xf32>
    %107 = arith.maximumf %105, %106 : vector<256x48xf32>
    %cst_30 = arith.constant dense<0.000000e+00> : vector<256x128xf32>
    %108 = tpu.matmul %107, %6, %cst_30 {dimension_numbers = #tpu.dot_dimension_numbers<[1], [0], [0], [1], [0, 0, 1, 1], [], []>} : vector<256x48xf32>, vector<48x128xf32>, vector<256x128xf32> -> vector<256x128xf32>
    %109 = vector.broadcast %7 : vector<1x128xf32> to vector<256x128xf32>
    %110 = arith.addf %108, %109 : vector<256x128xf32>
    %c0_31 = arith.constant 0 : index
    %c0_32 = arith.constant 0 : index
    %c0_33 = arith.constant 0 : index
    %111 = vector.load %arg7[%c0_31, %c0_32, %c0_33] : memref<2x256x128xf32, #tpu.memory_space<vmem>>, vector<1x256x128xf32>
    %112 = vector.shape_cast %111 : vector<1x256x128xf32> to vector<256x128xf32>
    %113 = vector.shape_cast %110 : vector<256x128xf32> to vector<1x256x128xf32>
    tpu.vector_store %arg7[%c0_31, %c0_32, %c0_33], %113 {strides = array<i32>} : memref<2x256x128xf32, #tpu.memory_space<vmem>>, vector<1x256x128xf32>,
    %c1 = arith.constant 1 : index
    %c0_34 = arith.constant 0 : index
    %c0_35 = arith.constant 0 : index
    %114 = vector.load %arg1[%c1, %c0_34, %c0_35] : memref<2x384x4xf32, #tpu.memory_space<vmem>>, vector<1x384x4xf32>
    %115 = vector.shape_cast %114 : vector<1x384x4xf32> to vector<384x4xf32>
    %cst_36 = arith.constant dense<0.000000e+00> : vector<384x48xf32>
    %116 = tpu.matmul %115, %0, %cst_36 {dimension_numbers = #tpu.dot_dimension_numbers<[1], [0], [0], [1], [0, 0, 1, 1], [], []>} : vector<384x4xf32>, vector<4x48xf32>, vector<384x48xf32> -> vector<384x48xf32>
    %117 = vector.broadcast %2 : vector<1x48xf32> to vector<384x48xf32>
    %118 = arith.addf %116, %117 : vector<384x48xf32>
    %cst_37 = arith.constant 0.000000e+00 : f32
    %119 = vector.broadcast %cst_37 : f32 to vector<384x48xf32>
    %120 = arith.maximumf %118, %119 : vector<384x48xf32>
    %cst_38 = arith.constant 0.000000e+00 : f32
    %121 = vector.shape_cast %13 : vector<384x1xi1> to vector<384x1xi1>
    %122 = vector.broadcast %121 : vector<384x1xi1> to vector<384x48xi1>
    %123 = vector.broadcast %cst_38 : f32 to vector<384x48xf32>
    %124 = arith.select %122, %120, %123 : vector<384x48xi1>, vector<384x48xf32>
    %cst_39 = arith.constant 0.000000e+00 : f32
    %125 = vector.broadcast %cst_39 : f32 to vector<256x48xf32>
    %126 = vector.extract_strided_slice %124 {offsets = [0, 0], sizes = [256, 48], strides = [1, 1]} : vector<384x48xf32> to vector<256x48xf32>
    %127 = vector.extract_strided_slice %5 {offsets = [0, 0, 0], sizes = [1, 48, 48], strides = [1, 1, 1]} : vector<9x48x48xf32> to vector<1x48x48xf32>
    %128 = vector.shape_cast %127 : vector<1x48x48xf32> to vector<48x48xf32>
    %cst_40 = arith.constant dense<0.000000e+00> : vector<256x48xf32>
    %129 = tpu.matmul %126, %128, %cst_40 {dimension_numbers = #tpu.dot_dimension_numbers<[1], [0], [0], [1], [0, 0, 1, 1], [], []>} : vector<256x48xf32>, vector<48x48xf32>, vector<256x48xf32> -> vector<256x48xf32>
    %130 = arith.addf %125, %129 : vector<256x48xf32>
    %131 = vector.extract_strided_slice %124 {offsets = [16, 0], sizes = [256, 48], strides = [1, 1]} : vector<384x48xf32> to vector<256x48xf32>
    %132 = vector.extract_strided_slice %5 {offsets = [1, 0, 0], sizes = [1, 48, 48], strides = [1, 1, 1]} : vector<9x48x48xf32> to vector<1x48x48xf32>
    %133 = vector.shape_cast %132 : vector<1x48x48xf32> to vector<48x48xf32>
    %cst_41 = arith.constant dense<0.000000e+00> : vector<256x48xf32>
    %134 = tpu.matmul %131, %133, %cst_41 {dimension_numbers = #tpu.dot_dimension_numbers<[1], [0], [0], [1], [0, 0, 1, 1], [], []>} : vector<256x48xf32>, vector<48x48xf32>, vector<256x48xf32> -> vector<256x48xf32>
    %135 = arith.addf %130, %134 : vector<256x48xf32>
    %136 = vector.extract_strided_slice %124 {offsets = [32, 0], sizes = [256, 48], strides = [1, 1]} : vector<384x48xf32> to vector<256x48xf32>
    %137 = vector.extract_strided_slice %5 {offsets = [2, 0, 0], sizes = [1, 48, 48], strides = [1, 1, 1]} : vector<9x48x48xf32> to vector<1x48x48xf32>
    %138 = vector.shape_cast %137 : vector<1x48x48xf32> to vector<48x48xf32>
    %cst_42 = arith.constant dense<0.000000e+00> : vector<256x48xf32>
    %139 = tpu.matmul %136, %138, %cst_42 {dimension_numbers = #tpu.dot_dimension_numbers<[1], [0], [0], [1], [0, 0, 1, 1], [], []>} : vector<256x48xf32>, vector<48x48xf32>, vector<256x48xf32> -> vector<256x48xf32>
    %140 = arith.addf %135, %139 : vector<256x48xf32>
    %141 = vector.extract_strided_slice %124 {offsets = [48, 0], sizes = [256, 48], strides = [1, 1]} : vector<384x48xf32> to vector<256x48xf32>
    %142 = vector.extract_strided_slice %5 {offsets = [3, 0, 0], sizes = [1, 48, 48], strides = [1, 1, 1]} : vector<9x48x48xf32> to vector<1x48x48xf32>
    %143 = vector.shape_cast %142 : vector<1x48x48xf32> to vector<48x48xf32>
    %cst_43 = arith.constant dense<0.000000e+00> : vector<256x48xf32>
    %144 = tpu.matmul %141, %143, %cst_43 {dimension_numbers = #tpu.dot_dimension_numbers<[1], [0], [0], [1], [0, 0, 1, 1], [], []>} : vector<256x48xf32>, vector<48x48xf32>, vector<256x48xf32> -> vector<256x48xf32>
    %145 = arith.addf %140, %144 : vector<256x48xf32>
    %146 = vector.extract_strided_slice %124 {offsets = [64, 0], sizes = [256, 48], strides = [1, 1]} : vector<384x48xf32> to vector<256x48xf32>
    %147 = vector.extract_strided_slice %5 {offsets = [4, 0, 0], sizes = [1, 48, 48], strides = [1, 1, 1]} : vector<9x48x48xf32> to vector<1x48x48xf32>
    %148 = vector.shape_cast %147 : vector<1x48x48xf32> to vector<48x48xf32>
    %cst_44 = arith.constant dense<0.000000e+00> : vector<256x48xf32>
    %149 = tpu.matmul %146, %148, %cst_44 {dimension_numbers = #tpu.dot_dimension_numbers<[1], [0], [0], [1], [0, 0, 1, 1], [], []>} : vector<256x48xf32>, vector<48x48xf32>, vector<256x48xf32> -> vector<256x48xf32>
    %150 = arith.addf %145, %149 : vector<256x48xf32>
    %151 = vector.extract_strided_slice %124 {offsets = [80, 0], sizes = [256, 48], strides = [1, 1]} : vector<384x48xf32> to vector<256x48xf32>
    %152 = vector.extract_strided_slice %5 {offsets = [5, 0, 0], sizes = [1, 48, 48], strides = [1, 1, 1]} : vector<9x48x48xf32> to vector<1x48x48xf32>
    %153 = vector.shape_cast %152 : vector<1x48x48xf32> to vector<48x48xf32>
    %cst_45 = arith.constant dense<0.000000e+00> : vector<256x48xf32>
    %154 = tpu.matmul %151, %153, %cst_45 {dimension_numbers = #tpu.dot_dimension_numbers<[1], [0], [0], [1], [0, 0, 1, 1], [], []>} : vector<256x48xf32>, vector<48x48xf32>, vector<256x48xf32> -> vector<256x48xf32>
    %155 = arith.addf %150, %154 : vector<256x48xf32>
    %156 = vector.extract_strided_slice %124 {offsets = [96, 0], sizes = [256, 48], strides = [1, 1]} : vector<384x48xf32> to vector<256x48xf32>
    %157 = vector.extract_strided_slice %5 {offsets = [6, 0, 0], sizes = [1, 48, 48], strides = [1, 1, 1]} : vector<9x48x48xf32> to vector<1x48x48xf32>
    %158 = vector.shape_cast %157 : vector<1x48x48xf32> to vector<48x48xf32>
    %cst_46 = arith.constant dense<0.000000e+00> : vector<256x48xf32>
    %159 = tpu.matmul %156, %158, %cst_46 {dimension_numbers = #tpu.dot_dimension_numbers<[1], [0], [0], [1], [0, 0, 1, 1], [], []>} : vector<256x48xf32>, vector<48x48xf32>, vector<256x48xf32> -> vector<256x48xf32>
    %160 = arith.addf %155, %159 : vector<256x48xf32>
    %161 = vector.extract_strided_slice %124 {offsets = [112, 0], sizes = [256, 48], strides = [1, 1]} : vector<384x48xf32> to vector<256x48xf32>
    %162 = vector.extract_strided_slice %5 {offsets = [7, 0, 0], sizes = [1, 48, 48], strides = [1, 1, 1]} : vector<9x48x48xf32> to vector<1x48x48xf32>
    %163 = vector.shape_cast %162 : vector<1x48x48xf32> to vector<48x48xf32>
    %cst_47 = arith.constant dense<0.000000e+00> : vector<256x48xf32>
    %164 = tpu.matmul %161, %163, %cst_47 {dimension_numbers = #tpu.dot_dimension_numbers<[1], [0], [0], [1], [0, 0, 1, 1], [], []>} : vector<256x48xf32>, vector<48x48xf32>, vector<256x48xf32> -> vector<256x48xf32>
    %165 = arith.addf %160, %164 : vector<256x48xf32>
    %166 = vector.extract_strided_slice %124 {offsets = [128, 0], sizes = [256, 48], strides = [1, 1]} : vector<384x48xf32> to vector<256x48xf32>
    %167 = vector.extract_strided_slice %5 {offsets = [8, 0, 0], sizes = [1, 48, 48], strides = [1, 1, 1]} : vector<9x48x48xf32> to vector<1x48x48xf32>
    %168 = vector.shape_cast %167 : vector<1x48x48xf32> to vector<48x48xf32>
    %cst_48 = arith.constant dense<0.000000e+00> : vector<256x48xf32>
    %169 = tpu.matmul %166, %168, %cst_48 {dimension_numbers = #tpu.dot_dimension_numbers<[1], [0], [0], [1], [0, 0, 1, 1], [], []>} : vector<256x48xf32>, vector<48x48xf32>, vector<256x48xf32> -> vector<256x48xf32>
    %170 = arith.addf %165, %169 : vector<256x48xf32>
    %cst_49 = arith.constant 0xFF800000 : f32
    %171 = vector.shape_cast %13 : vector<384x1xi1> to vector<384x1xi1>
    %172 = vector.broadcast %171 : vector<384x1xi1> to vector<384x48xi1>
    %173 = vector.broadcast %cst_49 : f32 to vector<384x48xf32>
    %174 = arith.select %172, %120, %173 : vector<384x48xi1>, vector<384x48xf32>
    %175 = vector.extract_strided_slice %174 {offsets = [64, 0], sizes = [256, 48], strides = [1, 1]} : vector<384x48xf32> to vector<256x48xf32>
    %176 = vector.extract_strided_slice %174 {offsets = [48, 0], sizes = [256, 48], strides = [1, 1]} : vector<384x48xf32> to vector<256x48xf32>
    %177 = arith.maximumf %175, %176 : vector<256x48xf32>
    %178 = vector.extract_strided_slice %174 {offsets = [80, 0], sizes = [256, 48], strides = [1, 1]} : vector<384x48xf32> to vector<256x48xf32>
    %179 = arith.maximumf %177, %178 : vector<256x48xf32>
    %c32_i32_50 = arith.constant 32 : i32
    %180 = vector.broadcast %c32_i32_50 : i32 to vector<1x48xi32>
    %181 = arith.cmpi sge, %14, %180 : vector<1x48xi32>
    %c40_i32_51 = arith.constant 40 : i32
    %182 = vector.broadcast %c40_i32_51 : i32 to vector<1x48xi32>
    %183 = arith.cmpi slt, %14, %182 : vector<1x48xi32>
    %184 = arith.andi %181, %183 : vector<1x48xi1>
    %cst_52 = arith.constant 0.000000e+00 : f32
    %185 = vector.shape_cast %184 : vector<1x48xi1> to vector<1x48xi1>
    %186 = vector.broadcast %185 : vector<1x48xi1> to vector<256x48xi1>
    %187 = vector.broadcast %cst_52 : f32 to vector<256x48xf32>
    %188 = arith.select %186, %179, %187 : vector<256x48xi1>, vector<256x48xf32>
    %189 = arith.addf %170, %188 : vector<256x48xf32>
    %c40_i32_53 = arith.constant 40 : i32
    %190 = vector.broadcast %c40_i32_53 : i32 to vector<1x48xi32>
    %191 = arith.cmpi sge, %14, %190 : vector<1x48xi32>
    %c48_i32_54 = arith.constant 48 : i32
    %192 = vector.broadcast %c48_i32_54 : i32 to vector<1x48xi32>
    %193 = arith.cmpi slt, %14, %192 : vector<1x48xi32>
    %194 = arith.andi %191, %193 : vector<1x48xi1>
    %195 = vector.extract_strided_slice %118 {offsets = [64, 0], sizes = [256, 48], strides = [1, 1]} : vector<384x48xf32> to vector<256x48xf32>
    %cst_55 = arith.constant 0.000000e+00 : f32
    %196 = vector.shape_cast %194 : vector<1x48xi1> to vector<1x48xi1>
    %197 = vector.broadcast %196 : vector<1x48xi1> to vector<256x48xi1>
    %198 = vector.broadcast %cst_55 : f32 to vector<256x48xf32>
    %199 = arith.select %197, %195, %198 : vector<256x48xi1>, vector<256x48xf32>
    %200 = arith.addf %189, %199 : vector<256x48xf32>
    %201 = vector.broadcast %3 : vector<1x48xf32> to vector<256x48xf32>
    %202 = arith.mulf %201, %200 : vector<256x48xf32>
    %203 = vector.broadcast %4 : vector<1x48xf32> to vector<256x48xf32>
    %204 = arith.addf %202, %203 : vector<256x48xf32>
    %cst_56 = arith.constant 0.000000e+00 : f32
    %205 = vector.broadcast %cst_56 : f32 to vector<256x48xf32>
    %206 = arith.maximumf %204, %205 : vector<256x48xf32>
    %cst_57 = arith.constant dense<0.000000e+00> : vector<256x128xf32>
    %207 = tpu.matmul %206, %6, %cst_57 {dimension_numbers = #tpu.dot_dimension_numbers<[1], [0], [0], [1], [0, 0, 1, 1], [], []>} : vector<256x48xf32>, vector<48x128xf32>, vector<256x128xf32> -> vector<256x128xf32>
    %208 = vector.broadcast %7 : vector<1x128xf32> to vector<256x128xf32>
    %209 = arith.addf %207, %208 : vector<256x128xf32>
    %c1_58 = arith.constant 1 : index
    %c0_59 = arith.constant 0 : index
    %c0_60 = arith.constant 0 : index
    %210 = vector.load %arg7[%c1_58, %c0_59, %c0_60] : memref<2x256x128xf32, #tpu.memory_space<vmem>>, vector<1x256x128xf32>
    %211 = vector.shape_cast %210 : vector<1x256x128xf32> to vector<256x128xf32>
    %212 = vector.shape_cast %209 : vector<256x128xf32> to vector<1x256x128xf32>
    tpu.vector_store %arg7[%c1_58, %c0_59, %c0_60], %212 {strides = array<i32>} : memref<2x256x128xf32, #tpu.memory_space<vmem>>, vector<1x256x128xf32>,
    return
  }
  func.func @transform_0(%arg0: i32) -> (i32, i32, i32) {
    %c0_i32 = arith.constant 0 : i32
    %c0_i32_0 = arith.constant 0 : i32
    %c0_i32_1 = arith.constant 0 : i32
    return %arg0, %c0_i32, %c0_i32_0 : i32, i32, i32
  }
  func.func @transform_1(%arg0: i32) -> (i32, i32) {
    %c0_i32 = arith.constant 0 : i32
    %c0_i32_0 = arith.constant 0 : i32
    %c0_i32_1 = arith.constant 0 : i32
    return %c0_i32, %c0_i32_0 : i32, i32
  }
  func.func @transform_2(%arg0: i32) -> (i32, i32) {
    %c0_i32 = arith.constant 0 : i32
    %c0_i32_0 = arith.constant 0 : i32
    %c0_i32_1 = arith.constant 0 : i32
    return %c0_i32, %c0_i32_0 : i32, i32
  }
  func.func @transform_3(%arg0: i32) -> (i32, i32, i32) {
    %c0_i32 = arith.constant 0 : i32
    %c0_i32_0 = arith.constant 0 : i32
    %c0_i32_1 = arith.constant 0 : i32
    %c0_i32_2 = arith.constant 0 : i32
    return %c0_i32, %c0_i32_0, %c0_i32_1 : i32, i32, i32
  }
  func.func @transform_4(%arg0: i32) -> (i32, i32) {
    %c0_i32 = arith.constant 0 : i32
    %c0_i32_0 = arith.constant 0 : i32
    %c0_i32_1 = arith.constant 0 : i32
    return %c0_i32, %c0_i32_0 : i32, i32
  }
  func.func @transform_5(%arg0: i32) -> (i32, i32) {
    %c0_i32 = arith.constant 0 : i32
    %c0_i32_0 = arith.constant 0 : i32
    %c0_i32_1 = arith.constant 0 : i32
    return %c0_i32, %c0_i32_0 : i32, i32
  }
  func.func @transform_6(%arg0: i32) -> (i32, i32, i32) {
    %c0_i32 = arith.constant 0 : i32
    %c0_i32_0 = arith.constant 0 : i32
    %c0_i32_1 = arith.constant 0 : i32
    return %arg0, %c0_i32, %c0_i32_0 : i32, i32, i32
  }
}

</mosaic_0001>

<bundles_post_ra>
// kernel: tpu_custom_call.1
= control target key start
LH: loop header
LB: loop body
LE: loop exit
PB: predicated region body
PF: predicated region fallthrough
CT: control target
= control target key end

     0   :  { %vm479_vm0 = vcmask 1043456   ;;  %vm334_vm1 = vcmask 31744   ;;  %s14702_s0 = inlined_call_operand.vmem [shape: f32[2,384,4], index: 0, kind: input, shape index: {}]   ;;  %s14703_s1 = inlined_call_operand.vmem [shape: f32[4,48], index: 1, kind: input, shape index: {}]   ;;  %s14704_s2 = inlined_call_operand.vmem [shape: f32[3,48], index: 2, kind: input, shape index: {}]   ;;  %s14705_s3 = inlined_call_operand.vmem [shape: f32[9,48,48], index: 3, kind: input, shape index: {}]   ;;  %s14706_s4 = inlined_call_operand.vmem [shape: f32[48,128], index: 4, kind: input, shape index: {}]   ;;  %s14707_s5 = inlined_call_operand.vmem [shape: f32[1,128], index: 5, kind: input, shape index: {}]   ;;  %s14708_s6 = inlined_call_operand.hbm [shape: f32[2,256,128], index: 6, kind: output, shape index: {}]  }
   0x1   :  { %v24_v0 = vld [vmem:[%s14703_s1] sm:$0xf]  ;;  %v283_v2 = vld [vmem:[%s14702_s0 + $0x8] sm:$0xff]  ;;  %v284_v3 = vld [vmem:[%s14702_s0 + $0x10] sm:$0xff] }
   0x2   :  { %v282_v1 = vld [vmem:[%s14702_s0] sm:$0xff]  ;;  %9321 = vmatprep.subr.msk.mxu1 %vm479_vm0, %v24_v0  ;;  %v285_v4 = vld [vmem:[%s14702_s0 + $0x18] sm:$0xff]  ;;  %v287_v6 = vld [vmem:[%s14702_s0 + $0x28] sm:$0xff] }
   0x3   :  { %9323 = vmatprep.mubr.msk.f32.mxu1 %vm334_vm1, %v282_v1  ;;  %9322 = vmatpush3.msk.msra.mxu1 %vm479_vm0, %v24_v0  ;;  %v286_v5 = vld [vmem:[%s14702_s0 + $0x20] sm:$0xff]  ;;  %v288_v7 = vld [vmem:[%s14702_s0 + $0x30] sm:$0xff]  ;;  %v289_v8 = vld [vmem:[%s14702_s0 + $0x38] sm:$0xff] }
   0x4   :  { %9324 = vmatmul.mubr.msk.f32.vlgmr.msra.gmra.mrb[0].mxu1 %vm334_vm1, %v283_v2  ;;  %v290_v9 = vld [vmem:[%s14702_s0 + $0x40] sm:$0xff]  ;;  %v32_v10 = vld [vmem:[%s14705_s3 + $0x30] sm:$0xff]  ;;  %v33_v11 = vld [vmem:[%s14705_s3 + $0x38] sm:$0xff] }
   0x5   :  { %9326 = vmatprep.mubr.msk.f32.mxu1 %vm334_vm1, %v284_v3  ;;  %v34_v12 = vld [vmem:[%s14705_s3 + $0x40] sm:$0xff]  ;;  %v11539_v13 = vpack.c.bf16 %v33_v11, %v32_v10  ;;  %v35_v14 = vld [vmem:[%s14705_s3 + $0x48] sm:$0xff]  ;;  %v36_v16 = vld [vmem:[%s14705_s3 + $0x50] sm:$0xff] }
   0x6   :  { %v11545_v15 = vpack.c.bf16 %v35_v14, %v34_v12  ;;  %v37_v17 = vld [vmem:[%s14705_s3 + $0x58] sm:$0xff]  ;;  %v291_v18 = vld [vmem:[%s14702_s0 + $0x48] sm:$0xff]  ;;  %v292_v19 = vld [vmem:[%s14702_s0 + $0x50] sm:$0xff] }
   0x7   :  { %10670 = vmatprep.subr.bf16.mxu1 %v11539_v13 }
   0x8   :  { %9327 = vmatmul.mubr.msk.f32.gmra.mrb[2].mxu1 %vm334_vm1, %v285_v4  ;;  %14821 = vst [vmem:[#allocation5_spill] sm:$0xff] %v11545_v15 }
   0x9   :  { %9329 = vmatprep.mubr.msk.f32.mxu1 %vm334_vm1, %v286_v5  ;;  %10672 = vmatpush3.bf16.msra.mxu1 %v11539_v13 }
   0xc   :  { %9330 = vmatmul.mubr.msk.f32.gmra.mrb[4].mxu1 %vm334_vm1, %v287_v6 }
   0xd   :  { %9332 = vmatprep.mubr.msk.f32.mxu1 %vm334_vm1, %v288_v7 }
  0x10   :  { %9333 = vmatmul.mubr.msk.f32.gmra.mrb[6].mxu1 %vm334_vm1, %v289_v8 }
  0x11   :  { %9335 = vmatprep.mubr.msk.f32.mxu1 %vm334_vm1, %v290_v9 }
  0x12   :  { %11 = vsyncpa [#allocation3], 0  ;;  %10674 = vmatprep.subr.bf16.mxu1 %v11545_v15  ;;  %v11563_v20 = vpack.c.bf16 %v37_v17, %v36_v16  ;;  %v293_v21 = vld [vmem:[%s14702_s0 + $0x58] sm:$0xff]  ;;  %v294_v22 = vld [vmem:[%s14702_s0 + $0x60] sm:$0xff]  ;;  %v14710_v60 = vmov 0.0   ;;  %v14709_v9 = vlaneseq  ;;  %vm980_vm2 = vcmask 392192  }
  0x13   :  { %10676 = vmatpush3.bf16.msra.mxu1 %v11545_v15  ;;  %v295_v23 = vld [vmem:[%s14702_s0 + $0x68] sm:$0xff]  ;;  %v296_v24 = vld [vmem:[%s14702_s0 + $0x70] sm:$0xff]  ;;  %v297_v25 = vld [vmem:[%s14702_s0 + $0x78] sm:$0xff] }
  0x14   :  { %14822 = vst [vmem:[#allocation6_spill] sm:$0xff] %v11563_v20  ;;  %9336 = vmatmul.mubr.msk.f32.gmra.mrb[8].mxu1 %vm334_vm1, %v291_v18  ;;  %10678 = vmatprep.subr.bf16.mxu1 %v11563_v20  ;;  %v298_v26 = vld [vmem:[%s14702_s0 + $0x80] sm:$0xff]  ;;  %v299_v27 = vld [vmem:[%s14702_s0 + $0x88] sm:$0xff]  ;;  %v300_v28 = vld [vmem:[%s14702_s0 + $0x90] sm:$0xff]  ;;  %v11764_v12 = vshrl.u32 %v14709_v9, 7 }
  0x15   :  { %9338 = vmatprep.mubr.msk.f32.mxu1 %vm334_vm1, %v292_v19  ;;  %v301_v29 = vld [vmem:[%s14702_s0 + $0x98] sm:$0xff]  ;;  %v302_v30 = vld [vmem:[%s14702_s0 + $0xa0] sm:$0xff]  ;;  %v303_v31 = vld [vmem:[%s14702_s0 + $0xa8] sm:$0xff] }
  0x16   :  { %v304_v32 = vld [vmem:[%s14702_s0 + $0xb0] sm:$0xff]  ;;  %v305_v33 = vld [vmem:[%s14702_s0 + $0xb8] sm:$0xff]  ;;  %v306_v34 = vld [vmem:[%s14702_s0 + $0xc0] sm:$0xff]  ;;  %v332_v17 = vsub.s32 0, %v11764_v12 }
  0x17   :  { %10680 = vmatpush3.bf16.msra.mxu1 %v11563_v20  ;;  %v307_v35 = vld [vmem:[%s14702_s0 + $0xc8] sm:$0xff]  ;;  %v308_v36 = vld [vmem:[%s14702_s0 + $0xd0] sm:$0xff]  ;;  %v309_v37 = vld [vmem:[%s14702_s0 + $0xd8] sm:$0xff] }
  0x18   :  { %9339 = vmatmul.mubr.msk.f32.gmra.mrb[10].mxu1 %vm334_vm1, %v293_v21  ;;  %v310_v38 = vld [vmem:[%s14702_s0 + $0xe0] sm:$0xff]  ;;  %v311_v39 = vld [vmem:[%s14702_s0 + $0xe8] sm:$0xff]  ;;  %v312_v40 = vld [vmem:[%s14702_s0 + $0xf0] sm:$0xff] }
  0x19   :  { %9341 = vmatprep.mubr.msk.f32.mxu1 %vm334_vm1, %v294_v22  ;;  %v313_v41 = vld [vmem:[%s14702_s0 + $0xf8] sm:$0xff]  ;;  %v314_v42 = vld [vmem:[%s14702_s0 + $0x100] sm:$0xff]  ;;  %v315_v43 = vld [vmem:[%s14702_s0 + $0x108] sm:$0xff] }
  0x1a   :  { %v316_v44 = vld [vmem:[%s14702_s0 + $0x110] sm:$0xff]  ;;  %v317_v45 = vld [vmem:[%s14702_s0 + $0x118] sm:$0xff]  ;;  %v318_v46 = vld [vmem:[%s14702_s0 + $0x120] sm:$0xff] }
  0x1b   :  { %v319_v47 = vld [vmem:[%s14702_s0 + $0x128] sm:$0xff]  ;;  %v320_v48 = vld [vmem:[%s14702_s0 + $0x130] sm:$0xff]  ;;  %v321_v49 = vld [vmem:[%s14702_s0 + $0x138] sm:$0xff] }
  0x1c   :  { %9342 = vmatmul.mubr.msk.f32.gmra.mrb[12].mxu1 %vm334_vm1, %v295_v23  ;;  %v322_v50 = vld [vmem:[%s14702_s0 + $0x140] sm:$0xff]  ;;  %v323_v51 = vld [vmem:[%s14702_s0 + $0x148] sm:$0xff]  ;;  %v324_v52 = vld [vmem:[%s14702_s0 + $0x150] sm:$0xff] }
  0x1d   :  { %9344 = vmatprep.mubr.msk.f32.mxu1 %vm334_vm1, %v296_v24  ;;  %v325_v53 = vld [vmem:[%s14702_s0 + $0x158] sm:$0xff]  ;;  %v326_v54 = vld [vmem:[%s14702_s0 + $0x160] sm:$0xff]  ;;  %v327_v55 = vld [vmem:[%s14702_s0 + $0x168] sm:$0xff] }
  0x1e   :  { %v328_v56 = vld [vmem:[%s14702_s0 + $0x170] sm:$0xff]  ;;  %v329_v57 = vld [vmem:[%s14702_s0 + $0x178] sm:$0xff]  ;;  %v26_v58 = vld [vmem:[%s14705_s3] sm:$0xff] }
  0x1f   :  { %v27_v59 = vld [vmem:[%s14705_s3 + $0x8] sm:$0xff]  ;;  %v28_v62 = vld [vmem:[%s14705_s3 + $0x10] sm:$0xff]  ;;  %v29_v63 = vld [vmem:[%s14705_s3 + $0x18] sm:$0xff] }
  0x20   :  { %9345 = vmatmul.mubr.msk.f32.gmra.mrb[14].mxu1 %vm334_vm1, %v297_v25  ;;  %v11725_v61 = vpack.c.bf16 %v27_v59, %v26_v58  ;;  %v11740_v0 = vpack.c.bf16 %v29_v63, %v28_v62  ;;  %v30_v1 = vld [vmem:[%s14705_s3 + $0x20] sm:$0xff]  ;;  %v31_v2 = vld [vmem:[%s14705_s3 + $0x28] sm:$0xff] }
  0x21   :  { %9347 = vmatprep.mubr.msk.f32.mxu1 %vm334_vm1, %v298_v26  ;;  %v11750_v3 = vpack.c.bf16 %v31_v2, %v30_v1  ;;  %v38_v4 = vld [vmem:[%s14705_s3 + $0x60] sm:$0xff]  ;;  %v39_v5 = vld [vmem:[%s14705_s3 + $0x68] sm:$0xff] }
  0x22   :  { %14823 = vst [vmem:[#allocation7_spill] sm:$0xff] %v11725_v61  ;;  %10682 = vmatprep.subr.bf16.mxu1 %v11725_v61  ;;  %14824 = vst [vmem:[#allocation8_spill] sm:$0xff] %v11740_v0  ;;  %v11760_v6 = vpack.c.bf16 %v39_v5, %v38_v4  ;;  %v25_v18 = vld [vmem:[%s14704_s2] sm:$0x7] }
  0x23   :  { %14825 = vst [vmem:[#allocation9_spill] sm:$0xff] %v11750_v3  ;;  %v11770_v22 = vrot.slane %v25_v18, %v332_v17 }
  0x24   :  { %9348 = vmatmul.mubr.msk.f32.gmra.mrb[16].mxu1 %vm334_vm1, %v299_v27  ;;  %14826 = vst [vmem:[#allocation10_spill] sm:$0xff] %v11760_v6 }
  0x25   :  { %9350 = vmatprep.mubr.msk.f32.mxu1 %vm334_vm1, %v300_v28  ;;  %14827 = vst [vmem:[#allocation11_spill] sm:$0xff] %v11770_v22 }
  0x28   :  { %9351 = vmatmul.mubr.msk.f32.gmra.mrb[18].mxu1 %vm334_vm1, %v301_v29 }
  0x29   :  { %9353 = vmatprep.mubr.msk.f32.mxu1 %vm334_vm1, %v302_v30 }
  0x2c   :  { %9354 = vmatmul.mubr.msk.f32.gmra.mrb[20].mxu1 %vm334_vm1, %v303_v31 }
  0x2d   :  { %9356 = vmatprep.mubr.msk.f32.mxu1 %vm334_vm1, %v304_v32 }
  0x30   :  { %9357 = vmatmul.mubr.msk.f32.gmra.mrb[22].mxu1 %vm334_vm1, %v305_v33 }
  0x31   :  { %9359 = vmatprep.mubr.msk.f32.mxu1 %vm334_vm1, %v306_v34 }
  0x34   :  { %9360 = vmatmul.mubr.msk.f32.gmra.mrb[24].mxu1 %vm334_vm1, %v307_v35 }
  0x35   :  { %9362 = vmatprep.mubr.msk.f32.mxu1 %vm334_vm1, %v308_v36 }
  0x38   :  { %9363 = vmatmul.mubr.msk.f32.gmra.mrb[26].mxu1 %vm334_vm1, %v309_v37 }
  0x39   :  { %9365 = vmatprep.mubr.msk.f32.mxu1 %vm334_vm1, %v310_v38 }
  0x3c   :  { %9366 = vmatmul.mubr.msk.f32.gmra.mrb[28].mxu1 %vm334_vm1, %v311_v39 }
  0x3d   :  { %9368 = vmatprep.mubr.msk.f32.mxu1 %vm334_vm1, %v312_v40 }
  0x40   :  { %9369 = vmatmul.mubr.msk.f32.gmra.mrb[30].mxu1 %vm334_vm1, %v313_v41 }
  0x41   :  { %9371 = vmatprep.mubr.msk.f32.mxu1 %vm334_vm1, %v314_v42 }
  0x44   :  { %9372 = vmatmul.mubr.msk.f32.gmra.mrb[32].mxu1 %vm334_vm1, %v315_v43 }
  0x45   :  { %9374 = vmatprep.mubr.msk.f32.mxu1 %vm334_vm1, %v316_v44 }
  0x48   :  { %9375 = vmatmul.mubr.msk.f32.gmra.mrb[34].mxu1 %vm334_vm1, %v317_v45 }
  0x49   :  { %9377 = vmatprep.mubr.msk.f32.mxu1 %vm334_vm1, %v318_v46 }
  0x4c   :  { %9378 = vmatmul.mubr.msk.f32.gmra.mrb[36].mxu1 %vm334_vm1, %v319_v47 }
  0x4d   :  { %9380 = vmatprep.mubr.msk.f32.mxu1 %vm334_vm1, %v320_v48 }
  0x50   :  { %9381 = vmatmul.mubr.msk.f32.gmra.mrb[38].mxu1 %vm334_vm1, %v321_v49 }
  0x51   :  { %9383 = vmatprep.mubr.msk.f32.mxu1 %vm334_vm1, %v322_v50 }
  0x54   :  { %9384 = vmatmul.mubr.msk.f32.gmra.mrb[40].mxu1 %vm334_vm1, %v323_v51 }
  0x55   :  { %9386 = vmatprep.mubr.msk.f32.mxu1 %vm334_vm1, %v324_v52 }
  0x58   :  { %9387 = vmatmul.mubr.msk.f32.gmra.mrb[42].mxu1 %vm334_vm1, %v325_v53 }
  0x59   :  { %9389 = vmatprep.mubr.msk.f32.mxu1 %vm334_vm1, %v326_v54 }
  0x5c   :  { %9390 = vmatmul.mubr.msk.f32.gmra.mrb[44].mxu1 %vm334_vm1, %v327_v55 }
  0x5d   :  { %9392 = vmatprep.mubr.msk.f32.mxu1 %vm334_vm1, %v328_v56 }
  0x60   :  { %9393 = vmatmul.mubr.msk.f32.gmra.mrb[46].mxu1 %vm334_vm1, %v329_v57 }
  0x61   :  { %9407 = vmatprep.mubr.f32.mxu1 %v14710_v60 }
  0x64   :  { %9408 = vmatmul.mubr.f32.vlgmr.msra.gmra.mrb[48].mxu1 %v14710_v60 }
  0x65   :  { %10684 = vmatpush3.bf16.msra.mxu1 %v11725_v61  ;;  %9410 = vmatprep.mubr.f32.mxu1 %v14710_v60  ;;  %v14835_v61 = vmov 0.0  }
  0x66   :  { %10686 = vmatprep.subr.bf16.mxu1 %v11740_v0 }
  0x68   :  { %9411 = vmatmul.mubr.f32.gmra.mrb[50].mxu1 %v14710_v60 }
  0x69   :  { %9413 = vmatprep.mubr.f32.mxu1 %v14710_v60  ;;  %10688 = vmatpush3.bf16.msra.mxu1 %v11740_v0 }
  0x6a   :  { %10690 = vmatprep.subr.bf16.mxu1 %v11750_v3 }
  0x6c   :  { %9414 = vmatmul.mubr.f32.gmra.mrb[52].mxu1 %v14710_v60 }
  0x6d   :  { %10692 = vmatpush3.bf16.msra.mxu1 %v11750_v3  ;;  %v41_v3 = vld [vmem:[%s14705_s3 + $0x78] sm:$0xff] }
  0x6e   :  { %10694 = vmatprep.subr.bf16.mxu1 %v11760_v6 }
  0xd7   :  { %v9325_v7 = vpop.f32.mrb[0].mxu1 }
  0xd8   :  { %v549_v8 = vpop.f32.mrb[1].mxu1 }
  0xdb   :  { %v9328_v10 = vpop.f32.mrb[2].mxu1 }
  0xdc   :  { %v559_v11 = vpop.f32.mrb[3].mxu1 }
  0xdf   :  { %v9331_v14 = vpop.f32.mrb[4].mxu1 }
  0xe0   :  { %v569_v16 = vpop.f32.mrb[5].mxu1 }
  0xe3   :  { %v9334_v19 = vpop.f32.mrb[6].mxu1 }
  0xe4   :  { %v579_v21 = vpop.f32.mrb[7].mxu1 }
  0xe7   :  { %v9337_v23 = vpop.f32.mrb[8].mxu1 }
  0xe8   :  { %v11773_v24 = vadd.f32 %v9337_v23, %v11770_v22  ;;  %v589_v25 = vpop.f32.mrb[9].mxu1 }
  0xe9   :  { %v11776_v26 = vadd.f32 %v589_v25, %v11770_v22 }
  0xea   :  { %v11782_v29 = vmax.f32 %v11773_v24, 0.0 }
  0xeb   :  { %v11779_v27 = vmax.f32 %v11776_v26, 0.0  ;;  %v9340_v28 = vpop.f32.mrb[10].mxu1 }
  0xec   :  { %v11785_v30 = vadd.f32 %v9340_v28, %v11770_v22  ;;  %v599_v31 = vpop.f32.mrb[11].mxu1 }
  0xed   :  { %v11788_v32 = vadd.f32 %v599_v31, %v11770_v22  ;;  %9416 = vmatprep.mubr.msk.f32.mxu1 %vm980_vm2, %v11779_v27 }
  0xee   :  { %9417 = vmatmul.mubr.msk.f32.gmra.mrb[54].mxu1 %vm980_vm2, %v11782_v29  ;;  %v11798_v35 = vmax.f32 %v11785_v30, 0.0 }
  0xef   :  { %v11795_v33 = vmax.f32 %v11788_v32, 0.0  ;;  %v9343_v34 = vpop.f32.mrb[12].mxu1 }
  0xf0   :  { %v11801_v36 = vadd.f32 %v9343_v34, %v11770_v22  ;;  %v609_v37 = vpop.f32.mrb[13].mxu1 }
  0xf1   :  { %v11804_v38 = vadd.f32 %v609_v37, %v11770_v22  ;;  %9419 = vmatprep.mubr.msk.f32.mxu1 %vm980_vm2, %v11795_v33 }
  0xf2   :  { %9420 = vmatmul.mubr.msk.f32.gmra.mrb[56].mxu1 %vm980_vm2, %v11798_v35  ;;  %v11814_v41 = vmax.f32 %v11801_v36, 0.0 }
  0xf3   :  { %v11811_v39 = vmax.f32 %v11804_v38, 0.0  ;;  %v9346_v40 = vpop.f32.mrb[14].mxu1 }
  0xf4   :  { %v11817_v42 = vadd.f32 %v9346_v40, %v11770_v22  ;;  %v619_v43 = vpop.f32.mrb[15].mxu1 }
  0xf5   :  { %v11820_v44 = vadd.f32 %v619_v43, %v11770_v22  ;;  %9422 = vmatprep.mubr.msk.f32.mxu1 %vm980_vm2, %v11811_v39 }
  0xf6   :  { %9423 = vmatmul.mubr.msk.f32.gmra.mrb[58].mxu1 %vm980_vm2, %v11814_v41  ;;  %v11830_v47 = vmax.f32 %v11817_v42, 0.0 }
  0xf7   :  { %v11827_v45 = vmax.f32 %v11820_v44, 0.0  ;;  %v9349_v46 = vpop.f32.mrb[16].mxu1 }
  0xf8   :  { %v11833_v48 = vadd.f32 %v9349_v46, %v11770_v22  ;;  %v629_v49 = vpop.f32.mrb[17].mxu1 }
  0xf9   :  { %v11836_v50 = vadd.f32 %v629_v49, %v11770_v22  ;;  %9425 = vmatprep.mubr.msk.f32.mxu1 %vm980_vm2, %v11827_v45 }
  0xfa   :  { %9426 = vmatmul.mubr.msk.f32.gmra.mrb[60].mxu1 %vm980_vm2, %v11830_v47  ;;  %v11846_v53 = vmax.f32 %v11833_v48, 0.0 }
  0xfb   :  { %v11843_v51 = vmax.f32 %v11836_v50, 0.0  ;;  %v9352_v52 = vpop.f32.mrb[18].mxu1 }
  0xfc   :  { %v11849_v54 = vadd.f32 %v9352_v52, %v11770_v22  ;;  %v639_v55 = vpop.f32.mrb[19].mxu1 }
  0xfd   :  { %v11852_v56 = vadd.f32 %v639_v55, %v11770_v22  ;;  %9428 = vmatprep.mubr.msk.f32.mxu1 %vm980_vm2, %v11843_v51 }
  0xfe   :  { %9429 = vmatmul.mubr.msk.f32.gmra.mrb[62].mxu1 %vm980_vm2, %v11846_v53  ;;  %v11862_v59 = vmax.f32 %v11849_v54, 0.0 }
  0xff   :  { %v11859_v57 = vmax.f32 %v11852_v56, 0.0  ;;  %v9355_v58 = vpop.f32.mrb[20].mxu1 }
 0x100   :  { %v11865_v62 = vadd.f32 %v9355_v58, %v11770_v22  ;;  %v649_v63 = vpop.f32.mrb[21].mxu1 }
 0x101   :  { %v11868_v1 = vadd.f32 %v649_v63, %v11770_v22  ;;  %9431 = vmatprep.mubr.msk.f32.mxu1 %vm980_vm2, %v11859_v57 }
 0x102   :  { %9432 = vmatmul.mubr.msk.f32.gmra.mrb[64].mxu1 %vm980_vm2, %v11862_v59  ;;  %v11878_v5 = vmax.f32 %v11865_v62, 0.0 }
 0x103   :  { %v11875_v2 = vmax.f32 %v11868_v1, 0.0  ;;  %v9358_v4 = vpop.f32.mrb[22].mxu1 }
 0x104   :  { %v11881_v7 = vadd.f32 %v9358_v4, %v11770_v22  ;;  %v659_v8 = vpop.f32.mrb[23].mxu1 }
 0x105   :  { %v11884_v10 = vadd.f32 %v659_v8, %v11770_v22  ;;  %9434 = vmatprep.mubr.msk.f32.mxu1 %vm980_vm2, %v11875_v2 }
 0x106   :  { %9435 = vmatmul.mubr.msk.f32.gmra.mrb[66].mxu1 %vm980_vm2, %v11878_v5  ;;  %v11894_v16 = vmax.f32 %v11881_v7, 0.0 }
 0x107   :  { %v11891_v11 = vmax.f32 %v11884_v10, 0.0  ;;  %v9361_v14 = vpop.f32.mrb[24].mxu1 }
 0x108   :  { %v11897_v17 = vadd.f32 %v9361_v14, %v11770_v22  ;;  %v669_v18 = vpop.f32.mrb[25].mxu1 }
 0x109   :  { %v11900_v19 = vadd.f32 %v669_v18, %v11770_v22  ;;  %9437 = vmatprep.mubr.msk.f32.mxu1 %vm980_vm2, %v11891_v11 }
 0x10a   :  { %9438 = vmatmul.mubr.msk.f32.gmra.mrb[68].mxu1 %vm980_vm2, %v11894_v16  ;;  %v11910_v25 = vmax.f32 %v11897_v17, 0.0 }
 0x10b   :  { %v11907_v21 = vmax.f32 %v11900_v19, 0.0  ;;  %v9364_v23 = vpop.f32.mrb[26].mxu1 }
 0x10c   :  { %v11913_v28 = vadd.f32 %v9364_v23, %v11770_v22  ;;  %v679_v31 = vpop.f32.mrb[27].mxu1 }
 0x10d   :  { %v11916_v34 = vadd.f32 %v679_v31, %v11770_v22  ;;  %9440 = vmatprep.mubr.msk.f32.mxu1 %vm980_vm2, %v11907_v21 }
 0x10e   :  { %9441 = vmatmul.mubr.msk.f32.gmra.mrb[70].mxu1 %vm980_vm2, %v11910_v25  ;;  %v11926_v43 = vmax.f32 %v11913_v28, 0.0 }
 0x10f   :  { %14828 = vst [vmem:[#allocation12_spill] sm:$0xff] %v11916_v34  ;;  %v11923_v37 = vmax.f32 %v11916_v34, 0.0  ;;  %v9367_v40 = vpop.f32.mrb[28].mxu1 }
 0x110   :  { %v11929_v46 = vadd.f32 %v9367_v40, %v11770_v22  ;;  %v689_v49 = vpop.f32.mrb[29].mxu1 }
 0x111   :  { %v11932_v52 = vadd.f32 %v689_v49, %v11770_v22  ;;  %9443 = vmatprep.mubr.msk.f32.mxu1 %vm980_vm2, %v11923_v37 }
 0x112   :  { %14829 = vst [vmem:[#allocation13_spill] sm:$0xff] %v11929_v46  ;;  %9444 = vmatmul.mubr.msk.f32.gmra.mrb[72].mxu1 %vm980_vm2, %v11926_v43  ;;  %v11942_v63 = vmax.f32 %v11929_v46, 0.0 }
 0x113   :  { %14830 = vst [vmem:[#allocation14_spill] sm:$0xff] %v11932_v52  ;;  %v11939_v55 = vmax.f32 %v11932_v52, 0.0  ;;  %v9370_v58 = vpop.f32.mrb[30].mxu1  ;;  %v45_v52 = vld [vmem:[%s14705_s3 + $0x98] sm:$0xff] }
 0x114   :  { %v11945_v4 = vadd.f32 %v9370_v58, %v11770_v22  ;;  %v699_v8 = vpop.f32.mrb[31].mxu1 }
 0x115   :  { %v11948_v14 = vadd.f32 %v699_v8, %v11770_v22  ;;  %9446 = vmatprep.mubr.msk.f32.mxu1 %vm980_vm2, %v11939_v55 }
 0x116   :  { %14831 = vst [vmem:[#allocation15_spill] sm:$0xff] %v11945_v4  ;;  %9447 = vmatmul.mubr.msk.f32.gmra.mrb[74].mxu1 %vm980_vm2, %v11942_v63  ;;  %v11958_v31 = vmax.f32 %v11945_v4, 0.0  ;;  %v44_v4 = vld [vmem:[%s14705_s3 + $0x90] sm:$0xff] }
 0x117   :  { %14832 = vst [vmem:[#allocation16_spill] sm:$0xff] %v11948_v14  ;;  %v11955_v18 = vmax.f32 %v11948_v14, 0.0  ;;  %v9373_v23 = vpop.f32.mrb[32].mxu1 }
 0x118   :  { %v11961_v40 = vadd.f32 %v9373_v23, %v11770_v22  ;;  %v709_v49 = vpop.f32.mrb[33].mxu1 }
 0x119   :  { %v11964_v58 = vadd.f32 %v709_v49, %v11770_v22  ;;  %9449 = vmatprep.mubr.msk.f32.mxu1 %vm980_vm2, %v11955_v18  ;;  %v40_v49 = vld [vmem:[%s14705_s3 + $0x70] sm:$0xff] }
 0x11a   :  { %14833 = vst [vmem:[#allocation17_spill] sm:$0xff] %v11961_v40  ;;  %9450 = vmatmul.mubr.msk.f32.gmra.mrb[76].mxu1 %vm980_vm2, %v11958_v31  ;;  %v11976_v60 = vmax.f32 %v11961_v40, 0.0  ;;  %v11995_v15 = vpack.c.bf16 %v41_v3, %v40_v49  ;;  %v43_v40 = vld [vmem:[%s14705_s3 + $0x88] sm:$0xff] }
 0x11b   :  { %14834 = vst [vmem:[#allocation18_spill] sm:$0xff] %v11964_v58  ;;  %v11971_v8 = vmax.f32 %v11964_v58, 0.0  ;;  %v11973_v9 = vpop.f32.mrb[34].mxu1  ;;  %v42_v58 = vld [vmem:[%s14705_s3 + $0x80] sm:$0xff] }
 0x11c   :  { %v11978_v23 = vpop.f32.mrb[35].mxu1  ;;  %14836 = vst [vmem:[#allocation19_spill] sm:$0xff] %v11995_v15  ;;  %v12009_v3 = vpack.c.bf16 %v43_v40, %v42_v58  ;;  %v12023_v40 = vpack.c.bf16 %v45_v52, %v44_v4 }
 0x11d   :  { %9452 = vmatprep.mubr.msk.f32.mxu1 %vm980_vm2, %v11971_v8 }
 0x11e   :  { %9453 = vmatmul.mubr.msk.f32.gmra.mrb[78].mxu1 %vm980_vm2, %v11976_v60  ;;  %14837 = vst [vmem:[#allocation20_spill] sm:$0xff] %v12009_v3  ;;  %14838 = vst [vmem:[#allocation21_spill] sm:$0xff] %v12023_v40 }
 0x11f   :  { %v11990_v0 = vpop.f32.mrb[36].mxu1  ;;  %9467 = vmatprep.mubr.f32.mxu1 %v14835_v61 }
 0x120   :  { %v11993_v20 = vpop.f32.mrb[37].mxu1 }
 0x122   :  { %9468 = vmatmul.mubr.f32.vlgmr.msra.gmra.mrb[48].mxu1 %v14835_v61 }
 0x123   :  { %10696 = vmatpush3.bf16.msra.mxu1 %v11760_v6  ;;  %9470 = vmatprep.mubr.f32.mxu1 %v14835_v61  ;;  %v12006_v14 = vpop.f32.mrb[38].mxu1 }
 0x124   :  { %10698 = vmatprep.subr.bf16.mxu1 %v11995_v15  ;;  %v12011_v49 = vpop.f32.mrb[39].mxu1 }
 0x126   :  { %9471 = vmatmul.mubr.f32.gmra.mrb[50].mxu1 %v14835_v61 }
 0x127   :  { %9473 = vmatprep.mubr.f32.mxu1 %v14835_v61  ;;  %10700 = vmatpush3.bf16.msra.mxu1 %v11995_v15  ;;  %v9385_v6 = vpop.f32.mrb[40].mxu1 }
 0x128   :  { %10702 = vmatprep.subr.bf16.mxu1 %v12009_v3  ;;  %v749_v58 = vpop.f32.mrb[41].mxu1 }
 0x129   :  { %v48_v58 = vld [vmem:[%s14705_s3 + $0xb0] sm:$0xff] }
 0x12a   :  { %9474 = vmatmul.mubr.f32.gmra.mrb[52].mxu1 %v14835_v61 }
 0x12b   :  { %9476 = vmatprep.mubr.f32.mxu1 %v14835_v61  ;;  %10704 = vmatpush3.bf16.msra.mxu1 %v12009_v3  ;;  %v9388_v46 = vpop.f32.mrb[42].mxu1 }
 0x12c   :  { %10706 = vmatprep.subr.bf16.mxu1 %v12023_v40  ;;  %v759_v34 = vpop.f32.mrb[43].mxu1 }
 0x12d   :  { %v47_v34 = vld [vmem:[%s14705_s3 + $0xa8] sm:$0xff] }
 0x12e   :  { %9477 = vmatmul.mubr.f32.gmra.mrb[54].mxu1 %v14835_v61 }
 0x12f   :  { %9479 = vmatprep.mubr.msk.f32.mxu1 %vm980_vm2, %v11779_v27  ;;  %v9391_v6 = vpop.f32.mrb[44].mxu1 }
 0x130   :  { %v769_v15 = vpop.f32.mrb[45].mxu1  ;;  %v49_v6 = vld [vmem:[%s14705_s3 + $0xb8] sm:$0xff] }
 0x131   :  { %v46_v15 = vld [vmem:[%s14705_s3 + $0xa0] sm:$0xff] }
 0x132   :  { %9480 = vmatmul.mubr.msk.f32.gmra.mrb[56].mxu1 %vm980_vm2, %v11782_v29  ;;  %v12085_v46 = vpack.c.bf16 %v47_v34, %v46_v15  ;;  %v51_v15 = vld [vmem:[%s14705_s3 + $0xc8] sm:$0xff] }
 0x133   :  { %9482 = vmatprep.mubr.msk.f32.mxu1 %vm980_vm2, %v11795_v33  ;;  %v9394_v52 = vpop.f32.mrb[46].mxu1 }
 0x134   :  { %v779_v4 = vpop.f32.mrb[47].mxu1  ;;  %14839 = vst [vmem:[#allocation22_spill] sm:$0xff] %v12085_v46  ;;  %v12097_v52 = vpack.c.bf16 %v49_v6, %v48_v58  ;;  %v12160_v58 = vadd.f32 %v11978_v23, %v11770_v22  ;;  %v12168_v6 = vadd.f32 %v11973_v9, %v11770_v22  ;;  %v53_v9 = vld [vmem:[%s14705_s3 + $0xd8] sm:$0xff] }
 0x135   :  { %v50_v4 = vld [vmem:[%s14705_s3 + $0xc0] sm:$0xff] }
 0x136   :  { %9483 = vmatmul.mubr.msk.f32.gmra.mrb[58].mxu1 %vm980_vm2, %v11798_v35  ;;  %14840 = vst [vmem:[#allocation23_spill] sm:$0xff] %v12097_v52  ;;  %v12110_v34 = vpack.c.bf16 %v51_v15, %v50_v4  ;;  %14842 = vst [vmem:[#allocation25_spill] sm:$0xff] %v12160_v58  ;;  %v12171_v4 = vmax.f32 %v12160_v58, 0.0  ;;  %v12178_v23 = vmax.f32 %v12168_v6, 0.0  ;;  %v52_v15 = vld [vmem:[%s14705_s3 + $0xd0] sm:$0xff] }
 0x137   :  { %9485 = vmatprep.mubr.msk.f32.mxu1 %vm980_vm2, %v11811_v39  ;;  %14843 = vst [vmem:[#allocation26_spill] sm:$0xff] %v12168_v6 }
 0x138   :  { %14841 = vst [vmem:[#allocation24_spill] sm:$0xff] %v12110_v34  ;;  %14844 = vst [vmem:[#allocation27_spill] sm:$0xff] %v12171_v4 }
 0x139   :  { %14845 = vst [vmem:[#allocation28_spill] sm:$0xff] %v12178_v23 }
 0x13a   :  { %9486 = vmatmul.mubr.msk.f32.gmra.mrb[60].mxu1 %vm980_vm2, %v11814_v41 }
 0x13b   :  { %9488 = vmatprep.mubr.msk.f32.mxu1 %vm980_vm2, %v11827_v45 }
 0x13e   :  { %9489 = vmatmul.mubr.msk.f32.gmra.mrb[62].mxu1 %vm980_vm2, %v11830_v47 }
 0x13f   :  { %9491 = vmatprep.mubr.msk.f32.mxu1 %vm980_vm2, %v11843_v51 }
 0x142   :  { %9492 = vmatmul.mubr.msk.f32.gmra.mrb[64].mxu1 %vm980_vm2, %v11846_v53 }
 0x143   :  { %9494 = vmatprep.mubr.msk.f32.mxu1 %vm980_vm2, %v11859_v57 }
 0x146   :  { %9495 = vmatmul.mubr.msk.f32.gmra.mrb[66].mxu1 %vm980_vm2, %v11862_v59 }
 0x147   :  { %9497 = vmatprep.mubr.msk.f32.mxu1 %vm980_vm2, %v11875_v2 }
 0x14a   :  { %9498 = vmatmul.mubr.msk.f32.gmra.mrb[68].mxu1 %vm980_vm2, %v11878_v5 }
 0x14b   :  { %9500 = vmatprep.mubr.msk.f32.mxu1 %vm980_vm2, %v11891_v11 }
 0x14e   :  { %9501 = vmatmul.mubr.msk.f32.gmra.mrb[70].mxu1 %vm980_vm2, %v11894_v16 }
 0x14f   :  { %9503 = vmatprep.mubr.msk.f32.mxu1 %vm980_vm2, %v11907_v21 }
 0x152   :  { %9504 = vmatmul.mubr.msk.f32.gmra.mrb[72].mxu1 %vm980_vm2, %v11910_v25 }
 0x153   :  { %9506 = vmatprep.mubr.msk.f32.mxu1 %vm980_vm2, %v11923_v37 }
 0x156   :  { %9507 = vmatmul.mubr.msk.f32.gmra.mrb[74].mxu1 %vm980_vm2, %v11926_v43 }
 0x157   :  { %9509 = vmatprep.mubr.msk.f32.mxu1 %vm980_vm2, %v11939_v55 }
 0x15a   :  { %9510 = vmatmul.mubr.msk.f32.gmra.mrb[76].mxu1 %vm980_vm2, %v11942_v63 }
 0x15b   :  { %9512 = vmatprep.mubr.msk.f32.mxu1 %vm980_vm2, %v11955_v18 }
 0x15e   :  { %9513 = vmatmul.mubr.msk.f32.gmra.mrb[78].mxu1 %vm980_vm2, %v11958_v31 }
 0x15f   :  { %9527 = vmatprep.mubr.f32.mxu1 %v14835_v61 }
 0x162   :  { %9528 = vmatmul.mubr.f32.vlgmr.msra.gmra.mrb[48].mxu1 %v14835_v61 }
 0x163   :  { %10708 = vmatpush3.bf16.msra.mxu1 %v12023_v40  ;;  %9530 = vmatprep.mubr.f32.mxu1 %v14835_v61  ;;  %v55_v40 = vld [vmem:[%s14705_s3 + $0xe8] sm:$0xff] }
 0x164   :  { %10710 = vmatprep.subr.bf16.mxu1 %v12085_v46 }
 0x166   :  { %9531 = vmatmul.mubr.f32.gmra.mrb[50].mxu1 %v14835_v61 }
 0x167   :  { %9533 = vmatprep.mubr.msk.f32.mxu1 %vm980_vm2, %v11779_v27  ;;  %10712 = vmatpush3.bf16.msra.mxu1 %v12085_v46  ;;  %v54_v46 = vld [vmem:[%s14705_s3 + $0xe0] sm:$0xff] }
 0x168   :  { %10714 = vmatprep.subr.bf16.mxu1 %v12097_v52  ;;  %v12202_v3 = vpack.c.bf16 %v55_v40, %v54_v46  ;;  %v12266_v46 = vadd.f32 %v11993_v20, %v11770_v22 }
 0x16a   :  { %9534 = vmatmul.mubr.msk.f32.gmra.mrb[52].mxu1 %vm980_vm2, %v11782_v29  ;;  %14847 = vst [vmem:[#allocation30_spill] sm:$0xff] %v12202_v3  ;;  %14849 = vst [vmem:[#allocation32_spill] sm:$0xff] %v12266_v46 }
 0x16b   :  { %9536 = vmatprep.mubr.msk.f32.mxu1 %vm980_vm2, %v11795_v33  ;;  %10716 = vmatpush3.bf16.msra.mxu1 %v12097_v52  ;;  %v12189_v52 = vpack.c.bf16 %v53_v9, %v52_v15  ;;  %v56_v15 = vld [vmem:[%s14705_s3 + $0xf0] sm:$0xff]  ;;  %v57_v9 = vld [vmem:[%s14705_s3 + $0xf8] sm:$0xff] }
 0x16c   :  { %10718 = vmatprep.subr.bf16.mxu1 %v12110_v34  ;;  %v12216_v40 = vpack.c.bf16 %v57_v9, %v56_v15  ;;  %v12274_v15 = vadd.f32 %v11990_v0, %v11770_v22  ;;  %v12277_v9 = vmax.f32 %v12266_v46, 0.0  ;;  %v59_v0 = vld [vmem:[%s14705_s3 + $0x108] sm:$0xff]  ;;  %v61_v46 = vld [vmem:[%s14705_s3 + $0x118] sm:$0xff] }
 0x16d   :  { %14846 = vst [vmem:[#allocation29_spill] sm:$0xff] %v12189_v52 }
 0x16e   :  { %9537 = vmatmul.mubr.msk.f32.gmra.mrb[54].mxu1 %vm980_vm2, %v11798_v35  ;;  %14848 = vst [vmem:[#allocation31_spill] sm:$0xff] %v12216_v40  ;;  %14850 = vst [vmem:[#allocation33_spill] sm:$0xff] %v12274_v15  ;;  %v12284_v20 = vmax.f32 %v12274_v15, 0.0  ;;  %v63_v15 = vld [vmem:[%s14705_s3 + $0x128] sm:$0xff] }
 0x16f   :  { %9539 = vmatprep.mubr.msk.f32.mxu1 %vm980_vm2, %v11811_v39  ;;  %14851 = vst [vmem:[#allocation34_spill] sm:$0xff] %v12277_v9 }
 0x170   :  { %14852 = vst [vmem:[#allocation35_spill] sm:$0xff] %v12284_v20 }
 0x172   :  { %9540 = vmatmul.mubr.msk.f32.gmra.mrb[56].mxu1 %vm980_vm2, %v11814_v41 }
 0x173   :  { %9542 = vmatprep.mubr.msk.f32.mxu1 %vm980_vm2, %v11827_v45 }
 0x176   :  { %9543 = vmatmul.mubr.msk.f32.gmra.mrb[58].mxu1 %vm980_vm2, %v11830_v47 }
 0x177   :  { %9545 = vmatprep.mubr.msk.f32.mxu1 %vm980_vm2, %v11843_v51 }
 0x17a   :  { %9546 = vmatmul.mubr.msk.f32.gmra.mrb[60].mxu1 %vm980_vm2, %v11846_v53 }
 0x17b   :  { %9548 = vmatprep.mubr.msk.f32.mxu1 %vm980_vm2, %v11859_v57 }
 0x17e   :  { %9549 = vmatmul.mubr.msk.f32.gmra.mrb[62].mxu1 %vm980_vm2, %v11862_v59 }
 0x17f   :  { %9551 = vmatprep.mubr.msk.f32.mxu1 %vm980_vm2, %v11875_v2 }
 0x182   :  { %9552 = vmatmul.mubr.msk.f32.gmra.mrb[64].mxu1 %vm980_vm2, %v11878_v5 }
 0x183   :  { %9554 = vmatprep.mubr.msk.f32.mxu1 %vm980_vm2, %v11891_v11 }
 0x186   :  { %9555 = vmatmul.mubr.msk.f32.gmra.mrb[66].mxu1 %vm980_vm2, %v11894_v16 }
 0x187   :  { %9557 = vmatprep.mubr.msk.f32.mxu1 %vm980_vm2, %v11907_v21 }
 0x18a   :  { %9558 = vmatmul.mubr.msk.f32.gmra.mrb[68].mxu1 %vm980_vm2, %v11910_v25 }
 0x18b   :  { %9560 = vmatprep.mubr.msk.f32.mxu1 %vm980_vm2, %v11923_v37 }
 0x18e   :  { %9561 = vmatmul.mubr.msk.f32.gmra.mrb[70].mxu1 %vm980_vm2, %v11926_v43 }
 0x18f   :  { %9563 = vmatprep.mubr.msk.f32.mxu1 %vm980_vm2, %v11939_v55 }
 0x192   :  { %9564 = vmatmul.mubr.msk.f32.gmra.mrb[72].mxu1 %vm980_vm2, %v11942_v63 }
 0x193   :  { %9566 = vmatprep.mubr.msk.f32.mxu1 %vm980_vm2, %v11955_v18 }
 0x196   :  { %9567 = vmatmul.mubr.msk.f32.gmra.mrb[74].mxu1 %vm980_vm2, %v11958_v31 }
 0x197   :  { %9569 = vmatprep.mubr.msk.f32.mxu1 %vm980_vm2, %v11971_v8 }
 0x19a   :  { %9570 = vmatmul.mubr.msk.f32.gmra.mrb[76].mxu1 %vm980_vm2, %v11976_v60 }
 0x19b   :  { %9572 = vmatprep.mubr.msk.f32.mxu1 %vm980_vm2, %v12171_v4 }
 0x19e   :  { %9573 = vmatmul.mubr.msk.f32.gmra.mrb[78].mxu1 %vm980_vm2, %v12178_v23 }
 0x19f   :  { %9587 = vmatprep.mubr.f32.mxu1 %v14835_v61 }
 0x1a2   :  { %9588 = vmatmul.mubr.f32.vlgmr.msra.gmra.mrb[48].mxu1 %v14835_v61 }
 0x1a3   :  { %10720 = vmatpush3.bf16.msra.mxu1 %v12110_v34  ;;  %9590 = vmatprep.mubr.msk.f32.mxu1 %vm980_vm2, %v11779_v27  ;;  %v60_v34 = vld [vmem:[%s14705_s3 + $0x110] sm:$0xff] }
 0x1a4   :  { %10722 = vmatprep.subr.bf16.mxu1 %v12189_v52 }
 0x1a6   :  { %9591 = vmatmul.mubr.msk.f32.gmra.mrb[50].mxu1 %vm980_vm2, %v11782_v29 }
 0x1a7   :  { %9593 = vmatprep.mubr.msk.f32.mxu1 %vm980_vm2, %v11795_v33  ;;  %10724 = vmatpush3.bf16.msra.mxu1 %v12189_v52 }
 0x1a8   :  { %10726 = vmatprep.subr.bf16.mxu1 %v12202_v3 }
 0x1aa   :  { %9594 = vmatmul.mubr.msk.f32.gmra.mrb[52].mxu1 %vm980_vm2, %v11798_v35 }
 0x1ab   :  { %9596 = vmatprep.mubr.msk.f32.mxu1 %vm980_vm2, %v11811_v39  ;;  %10728 = vmatpush3.bf16.msra.mxu1 %v12202_v3  ;;  %v58_v3 = vld [vmem:[%s14705_s3 + $0x100] sm:$0xff] }
 0x1ac   :  { %10730 = vmatprep.subr.bf16.mxu1 %v12216_v40  ;;  %v12296_v52 = vpack.c.bf16 %v59_v0, %v58_v3  ;;  %v12310_v3 = vpack.c.bf16 %v61_v46, %v60_v34  ;;  %v62_v0 = vld [vmem:[%s14705_s3 + $0x120] sm:$0xff]  ;;  %v12374_v46 = vadd.f32 %v12011_v49, %v11770_v22 }
 0x1ad   :  { %v12324_v34 = vpack.c.bf16 %v63_v15, %v62_v0  ;;  %v12382_v15 = vadd.f32 %v12006_v14, %v11770_v22  ;;  %v65_v14 = vld [vmem:[%s14705_s3 + $0x138] sm:$0xff]  ;;  %v67_v22 = vld [vmem:[%s14705_s3 + $0x148] sm:$0xff] }
 0x1ae   :  { %9597 = vmatmul.mubr.msk.f32.gmra.mrb[54].mxu1 %vm980_vm2, %v11814_v41  ;;  %14853 = vst [vmem:[#allocation36_spill] sm:$0xff] %v12296_v52  ;;  %14854 = vst [vmem:[#allocation37_spill] sm:$0xff] %v12310_v3  ;;  %v12385_v0 = vmax.f32 %v12374_v46, 0.0 }
 0x1af   :  { %9599 = vmatprep.mubr.msk.f32.mxu1 %vm980_vm2, %v11827_v45  ;;  %14855 = vst [vmem:[#allocation38_spill] sm:$0xff] %v12324_v34  ;;  %14856 = vst [vmem:[#allocation39_spill] sm:$0xff] %v12374_v46  ;;  %v12392_v49 = vmax.f32 %v12382_v15, 0.0  ;;  %v69_v46 = vld [vmem:[%s14705_s3 + $0x158] sm:$0xff] }
 0x1b0   :  { %14857 = vst [vmem:[#allocation40_spill] sm:$0xff] %v12382_v15  ;;  %14858 = vst [vmem:[#allocation41_spill] sm:$0xff] %v12385_v0 }
 0x1b1   :  { %14859 = vst [vmem:[#allocation42_spill] sm:$0xff] %v12392_v49 }
 0x1b2   :  { %9600 = vmatmul.mubr.msk.f32.gmra.mrb[56].mxu1 %vm980_vm2, %v11830_v47 }
 0x1b3   :  { %9602 = vmatprep.mubr.msk.f32.mxu1 %vm980_vm2, %v11843_v51 }
 0x1b6   :  { %9603 = vmatmul.mubr.msk.f32.gmra.mrb[58].mxu1 %vm980_vm2, %v11846_v53 }
 0x1b7   :  { %9605 = vmatprep.mubr.msk.f32.mxu1 %vm980_vm2, %v11859_v57 }
 0x1ba   :  { %9606 = vmatmul.mubr.msk.f32.gmra.mrb[60].mxu1 %vm980_vm2, %v11862_v59 }
 0x1bb   :  { %9608 = vmatprep.mubr.msk.f32.mxu1 %vm980_vm2, %v11875_v2 }
 0x1be   :  { %9609 = vmatmul.mubr.msk.f32.gmra.mrb[62].mxu1 %vm980_vm2, %v11878_v5 }
 0x1bf   :  { %9611 = vmatprep.mubr.msk.f32.mxu1 %vm980_vm2, %v11891_v11 }
 0x1c2   :  { %9612 = vmatmul.mubr.msk.f32.gmra.mrb[64].mxu1 %vm980_vm2, %v11894_v16 }
 0x1c3   :  { %9614 = vmatprep.mubr.msk.f32.mxu1 %vm980_vm2, %v11907_v21 }
 0x1c6   :  { %9615 = vmatmul.mubr.msk.f32.gmra.mrb[66].mxu1 %vm980_vm2, %v11910_v25 }
 0x1c7   :  { %9617 = vmatprep.mubr.msk.f32.mxu1 %vm980_vm2, %v11923_v37 }
 0x1ca   :  { %9618 = vmatmul.mubr.msk.f32.gmra.mrb[68].mxu1 %vm980_vm2, %v11926_v43 }
 0x1cb   :  { %9620 = vmatprep.mubr.msk.f32.mxu1 %vm980_vm2, %v11939_v55 }
 0x1ce   :  { %9621 = vmatmul.mubr.msk.f32.gmra.mrb[70].mxu1 %vm980_vm2, %v11942_v63 }
 0x1cf   :  { %9623 = vmatprep.mubr.msk.f32.mxu1 %vm980_vm2, %v11955_v18 }
 0x1d2   :  { %9624 = vmatmul.mubr.msk.f32.gmra.mrb[72].mxu1 %vm980_vm2, %v11958_v31 }
 0x1d3   :  { %9626 = vmatprep.mubr.msk.f32.mxu1 %vm980_vm2, %v11971_v8 }
 0x1d6   :  { %9627 = vmatmul.mubr.msk.f32.gmra.mrb[74].mxu1 %vm980_vm2, %v11976_v60 }
 0x1d7   :  { %9629 = vmatprep.mubr.msk.f32.mxu1 %vm980_vm2, %v12171_v4 }
 0x1da   :  { %9630 = vmatmul.mubr.msk.f32.gmra.mrb[76].mxu1 %vm980_vm2, %v12178_v23 }
 0x1db   :  { %9632 = vmatprep.mubr.msk.f32.mxu1 %vm980_vm2, %v12277_v9 }
 0x1de   :  { %9633 = vmatmul.mubr.msk.f32.gmra.mrb[78].mxu1 %vm980_vm2, %v12284_v20 }
 0x1df   :  { %9647 = vmatprep.mubr.msk.f32.mxu1 %vm980_vm2, %v11779_v27 }
 0x1e2   :  { %9648 = vmatmul.mubr.msk.f32.vlgmr.msra.gmra.mrb[48].mxu1 %vm980_vm2, %v11782_v29 }
 0x1e3   :  { %10732 = vmatpush3.bf16.msra.mxu1 %v12216_v40  ;;  %9650 = vmatprep.mubr.msk.f32.mxu1 %vm980_vm2, %v11795_v33  ;;  %v66_v40 = vld [vmem:[%s14705_s3 + $0x140] sm:$0xff] }
 0x1e4   :  { %10734 = vmatprep.subr.bf16.mxu1 %v12296_v52 }
 0x1e6   :  { %9651 = vmatmul.mubr.msk.f32.gmra.mrb[50].mxu1 %vm980_vm2, %v11798_v35 }
 0x1e7   :  { %9653 = vmatprep.mubr.msk.f32.mxu1 %vm980_vm2, %v11811_v39  ;;  %10736 = vmatpush3.bf16.msra.mxu1 %v12296_v52 }
 0x1e8   :  { %10738 = vmatprep.subr.bf16.mxu1 %v12310_v3 }
 0x1ea   :  { %9654 = vmatmul.mubr.msk.f32.gmra.mrb[52].mxu1 %vm980_vm2, %v11814_v41 }
 0x1eb   :  { %9656 = vmatprep.mubr.msk.f32.mxu1 %vm980_vm2, %v11827_v45  ;;  %10740 = vmatpush3.bf16.msra.mxu1 %v12310_v3  ;;  %v64_v3 = vld [vmem:[%s14705_s3 + $0x130] sm:$0xff] }
 0x1ec   :  { %10742 = vmatprep.subr.bf16.mxu1 %v12324_v34  ;;  %v12404_v52 = vpack.c.bf16 %v65_v14, %v64_v3  ;;  %v12418_v3 = vpack.c.bf16 %v67_v22, %v66_v40  ;;  %v68_v14 = vld [vmem:[%s14705_s3 + $0x150] sm:$0xff]  ;;  %v70_v40 = vld [vmem:[%s14705_s3 + $0x160] sm:$0xff] }
 0x1ed   :  { %v12432_v22 = vpack.c.bf16 %v69_v46, %v68_v14  ;;  %v71_v46 = vld [vmem:[%s14705_s3 + $0x168] sm:$0xff] }
 0x1ee   :  { %9657 = vmatmul.mubr.msk.f32.gmra.mrb[54].mxu1 %vm980_vm2, %v11830_v47  ;;  %14860 = vst [vmem:[#allocation43_spill] sm:$0xff] %v12404_v52  ;;  %14861 = vst [vmem:[#allocation44_spill] sm:$0xff] %v12418_v3  ;;  %v12496_v14 = vpack.c.bf16 %v71_v46, %v70_v40  ;;  %v74_v46 = vld [vmem:[%s14705_s3 + $0x180] sm:$0xff] }
 0x1ef   :  { %9659 = vmatprep.mubr.msk.f32.mxu1 %vm980_vm2, %v11843_v51  ;;  %14862 = vst [vmem:[#allocation45_spill] sm:$0xff] %v12432_v22 }
 0x1f0   :  { %14863 = vst [vmem:[#allocation46_spill] sm:$0xff] %v12496_v14 }
 0x1f2   :  { %9660 = vmatmul.mubr.msk.f32.gmra.mrb[56].mxu1 %vm980_vm2, %v11846_v53 }
 0x1f3   :  { %9662 = vmatprep.mubr.msk.f32.mxu1 %vm980_vm2, %v11859_v57 }
 0x1f6   :  { %9663 = vmatmul.mubr.msk.f32.gmra.mrb[58].mxu1 %vm980_vm2, %v11862_v59 }
 0x1f7   :  { %9665 = vmatprep.mubr.msk.f32.mxu1 %vm980_vm2, %v11875_v2 }
 0x1fa   :  { %9666 = vmatmul.mubr.msk.f32.gmra.mrb[60].mxu1 %vm980_vm2, %v11878_v5 }
 0x1fb   :  { %9668 = vmatprep.mubr.msk.f32.mxu1 %vm980_vm2, %v11891_v11 }
 0x1fe   :  { %9669 = vmatmul.mubr.msk.f32.gmra.mrb[62].mxu1 %vm980_vm2, %v11894_v16 }
 0x1ff   :  { %9671 = vmatprep.mubr.msk.f32.mxu1 %vm980_vm2, %v11907_v21 }
 0x202   :  { %9672 = vmatmul.mubr.msk.f32.gmra.mrb[64].mxu1 %vm980_vm2, %v11910_v25 }
 0x203   :  { %9674 = vmatprep.mubr.msk.f32.mxu1 %vm980_vm2, %v11923_v37 }
 0x206   :  { %9675 = vmatmul.mubr.msk.f32.gmra.mrb[66].mxu1 %vm980_vm2, %v11926_v43 }
 0x207   :  { %9677 = vmatprep.mubr.msk.f32.mxu1 %vm980_vm2, %v11939_v55 }
 0x20a   :  { %9678 = vmatmul.mubr.msk.f32.gmra.mrb[68].mxu1 %vm980_vm2, %v11942_v63 }
 0x20b   :  { %9680 = vmatprep.mubr.msk.f32.mxu1 %vm980_vm2, %v11955_v18 }
 0x20e   :  { %9681 = vmatmul.mubr.msk.f32.gmra.mrb[70].mxu1 %vm980_vm2, %v11958_v31 }
 0x20f   :  { %9683 = vmatprep.mubr.msk.f32.mxu1 %vm980_vm2, %v11971_v8 }
 0x212   :  { %9684 = vmatmul.mubr.msk.f32.gmra.mrb[72].mxu1 %vm980_vm2, %v11976_v60 }
 0x213   :  { %9686 = vmatprep.mubr.msk.f32.mxu1 %vm980_vm2, %v12171_v4 }
 0x216   :  { %9687 = vmatmul.mubr.msk.f32.gmra.mrb[74].mxu1 %vm980_vm2, %v12178_v23 }
 0x217   :  { %9689 = vmatprep.mubr.msk.f32.mxu1 %vm980_vm2, %v12277_v9 }
 0x21a   :  { %9690 = vmatmul.mubr.msk.f32.gmra.mrb[76].mxu1 %vm980_vm2, %v12284_v20 }
 0x21b   :  { %9692 = vmatprep.mubr.msk.f32.mxu1 %vm980_vm2, %v12385_v0 }
 0x21e   :  { %9693 = vmatmul.mubr.msk.f32.gmra.mrb[78].mxu1 %vm980_vm2, %v12392_v49 }
 0x21f   :  { %9707 = vmatprep.mubr.msk.f32.mxu1 %vm980_vm2, %v11795_v33 }
 0x222   :  { %9708 = vmatmul.mubr.msk.f32.vlgmr.msra.gmra.mrb[48].mxu1 %vm980_vm2, %v11798_v35 }
 0x223   :  { %10744 = vmatpush3.bf16.msra.mxu1 %v12324_v34  ;;  %9710 = vmatprep.mubr.msk.f32.mxu1 %vm980_vm2, %v11811_v39  ;;  %v75_v34 = vld [vmem:[%s14705_s3 + $0x188] sm:$0xff] }
 0x224   :  { %10746 = vmatprep.subr.bf16.mxu1 %v12404_v52 }
 0x226   :  { %9711 = vmatmul.mubr.msk.f32.gmra.mrb[50].mxu1 %vm980_vm2, %v11814_v41 }
 0x227   :  { %9713 = vmatprep.mubr.msk.f32.mxu1 %vm980_vm2, %v11827_v45  ;;  %10748 = vmatpush3.bf16.msra.mxu1 %v12404_v52  ;;  %v73_v52 = vld [vmem:[%s14705_s3 + $0x178] sm:$0xff] }
 0x228   :  { %10750 = vmatprep.subr.bf16.mxu1 %v12418_v3 }
 0x22a   :  { %9714 = vmatmul.mubr.msk.f32.gmra.mrb[52].mxu1 %vm980_vm2, %v11830_v47 }
 0x22b   :  { %9716 = vmatprep.mubr.msk.f32.mxu1 %vm980_vm2, %v11843_v51  ;;  %10752 = vmatpush3.bf16.msra.mxu1 %v12418_v3  ;;  %v72_v3 = vld [vmem:[%s14705_s3 + $0x170] sm:$0xff] }
 0x22c   :  { %10754 = vmatprep.subr.bf16.mxu1 %v12432_v22  ;;  %v12510_v40 = vpack.c.bf16 %v73_v52, %v72_v3  ;;  %v12524_v52 = vpack.c.bf16 %v75_v34, %v74_v46  ;;  %v76_v34 = vld [vmem:[%s14705_s3 + $0x190] sm:$0xff]  ;;  %v77_v3 = vld [vmem:[%s14705_s3 + $0x198] sm:$0xff] }
 0x22d   :  { %v12586_v46 = vpack.c.bf16 %v77_v3, %v76_v34 }
 0x22e   :  { %9717 = vmatmul.mubr.msk.f32.gmra.mrb[54].mxu1 %vm980_vm2, %v11846_v53  ;;  %14864 = vst [vmem:[#allocation47_spill] sm:$0xff] %v12510_v40  ;;  %14865 = vst [vmem:[#allocation48_spill] sm:$0xff] %v12524_v52 }
 0x22f   :  { %9719 = vmatprep.mubr.msk.f32.mxu1 %vm980_vm2, %v11859_v57  ;;  %14866 = vst [vmem:[#allocation49_spill] sm:$0xff] %v12586_v46 }
 0x232   :  { %9720 = vmatmul.mubr.msk.f32.gmra.mrb[56].mxu1 %vm980_vm2, %v11862_v59 }
 0x233   :  { %9722 = vmatprep.mubr.msk.f32.mxu1 %vm980_vm2, %v11875_v2 }
 0x236   :  { %9723 = vmatmul.mubr.msk.f32.gmra.mrb[58].mxu1 %vm980_vm2, %v11878_v5 }
 0x237   :  { %9725 = vmatprep.mubr.msk.f32.mxu1 %vm980_vm2, %v11891_v11 }
 0x23a   :  { %9726 = vmatmul.mubr.msk.f32.gmra.mrb[60].mxu1 %vm980_vm2, %v11894_v16 }
 0x23b   :  { %9728 = vmatprep.mubr.msk.f32.mxu1 %vm980_vm2, %v11907_v21 }
 0x23e   :  { %9729 = vmatmul.mubr.msk.f32.gmra.mrb[62].mxu1 %vm980_vm2, %v11910_v25 }
 0x23f   :  { %9731 = vmatprep.mubr.msk.f32.mxu1 %vm980_vm2, %v11923_v37 }
 0x242   :  { %9732 = vmatmul.mubr.msk.f32.gmra.mrb[64].mxu1 %vm980_vm2, %v11926_v43 }
 0x243   :  { %9734 = vmatprep.mubr.msk.f32.mxu1 %vm980_vm2, %v11939_v55 }
 0x246   :  { %9735 = vmatmul.mubr.msk.f32.gmra.mrb[66].mxu1 %vm980_vm2, %v11942_v63 }
 0x247   :  { %9737 = vmatprep.mubr.msk.f32.mxu1 %vm980_vm2, %v11955_v18 }
 0x24a   :  { %9738 = vmatmul.mubr.msk.f32.gmra.mrb[68].mxu1 %vm980_vm2, %v11958_v31 }
 0x24b   :  { %9740 = vmatprep.mubr.msk.f32.mxu1 %vm980_vm2, %v11971_v8 }
 0x24e   :  { %9741 = vmatmul.mubr.msk.f32.gmra.mrb[70].mxu1 %vm980_vm2, %v11976_v60 }
 0x24f   :  { %9743 = vmatprep.mubr.msk.f32.mxu1 %vm980_vm2, %v12171_v4 }
 0x252   :  { %9744 = vmatmul.mubr.msk.f32.gmra.mrb[72].mxu1 %vm980_vm2, %v12178_v23 }
 0x253   :  { %9746 = vmatprep.mubr.msk.f32.mxu1 %vm980_vm2, %v12277_v9 }
 0x256   :  { %9747 = vmatmul.mubr.msk.f32.gmra.mrb[74].mxu1 %vm980_vm2, %v12284_v20 }
 0x257   :  { %9749 = vmatprep.mubr.msk.f32.mxu1 %vm980_vm2, %v12385_v0 }
 0x25a   :  { %9750 = vmatmul.mubr.msk.f32.gmra.mrb[76].mxu1 %vm980_vm2, %v12392_v49 }
 0x25b   :  { %9752 = vmatprep.mubr.f32.mxu1 %v14835_v61 }
 0x25e   :  { %9753 = vmatmul.mubr.f32.gmra.mrb[78].mxu1 %v14835_v61 }
 0x25f   :  { %9767 = vmatprep.mubr.msk.f32.mxu1 %vm980_vm2, %v11811_v39 }
 0x262   :  { %9768 = vmatmul.mubr.msk.f32.vlgmr.msra.gmra.mrb[48].mxu1 %vm980_vm2, %v11814_v41 }
 0x263   :  { %10756 = vmatpush3.bf16.msra.mxu1 %v12432_v22  ;;  %9770 = vmatprep.mubr.msk.f32.mxu1 %vm980_vm2, %v11827_v45 }
 0x264   :  { %10758 = vmatprep.subr.bf16.mxu1 %v12496_v14 }
 0x266   :  { %9771 = vmatmul.mubr.msk.f32.gmra.mrb[50].mxu1 %vm980_vm2, %v11830_v47 }
 0x267   :  { %9773 = vmatprep.mubr.msk.f32.mxu1 %vm980_vm2, %v11843_v51  ;;  %10760 = vmatpush3.bf16.msra.mxu1 %v12496_v14  ;;  %v79_v14 = vld [vmem:[%s14705_s3 + $0x1a8] sm:$0xff] }
 0x268   :  { %10762 = vmatprep.subr.bf16.mxu1 %v12510_v40 }
 0x26a   :  { %9774 = vmatmul.mubr.msk.f32.gmra.mrb[52].mxu1 %vm980_vm2, %v11846_v53 }
 0x26b   :  { %9776 = vmatprep.mubr.msk.f32.mxu1 %vm980_vm2, %v11859_v57  ;;  %10764 = vmatpush3.bf16.msra.mxu1 %v12510_v40  ;;  %v78_v40 = vld [vmem:[%s14705_s3 + $0x1a0] sm:$0xff] }
 0x26c   :  { %10766 = vmatprep.subr.bf16.mxu1 %v12524_v52  ;;  %v12600_v34 = vpack.c.bf16 %v79_v14, %v78_v40  ;;  %v80_v14 = vld [vmem:[%s14706_s4] sm:$0xff]  ;;  %v81_v40 = vld [vmem:[%s14706_s4 + $0x8] sm:$0xff] }
 0x26d   :  { %v10777_v3 = vpack.c.bf16 %v81_v40, %v80_v14  ;;  %v84_v14 = vld [vmem:[%s14706_s4 + $0x20] sm:$0xff]  ;;  %v85_v40 = vld [vmem:[%s14706_s4 + $0x28] sm:$0xff] }
 0x26e   :  { %9777 = vmatmul.mubr.msk.f32.gmra.mrb[54].mxu1 %vm980_vm2, %v11862_v59  ;;  %14867 = vst [vmem:[#allocation50_spill] sm:$0xff] %v12600_v34  ;;  %v10785_v22 = vpack.c.bf16 %v85_v40, %v84_v14  ;;  %v3413_v14 = vmax.f32 %v11798_v35, %v11782_v29 }
 0x26f   :  { %9779 = vmatprep.mubr.msk.f32.mxu1 %vm980_vm2, %v11875_v2  ;;  %10778 = vmatprep.subr.bf16.mxu0 %v10777_v3 }
 0x270   :  { %10780 = vmatpush3.bf16.msra.mxu0 %v10777_v3  ;;  %v3445_v58 = vmax.f32 %v3413_v14, %v11814_v41 }
 0x272   :  { %9780 = vmatmul.mubr.msk.f32.gmra.mrb[56].mxu1 %vm980_vm2, %v11878_v5 }
 0x273   :  { %9782 = vmatprep.mubr.msk.f32.mxu1 %vm980_vm2, %v11891_v11 }
 0x276   :  { %9783 = vmatmul.mubr.msk.f32.gmra.mrb[58].mxu1 %vm980_vm2, %v11894_v16 }
 0x277   :  { %9785 = vmatprep.mubr.msk.f32.mxu1 %vm980_vm2, %v11907_v21 }
 0x27a   :  { %9786 = vmatmul.mubr.msk.f32.gmra.mrb[60].mxu1 %vm980_vm2, %v11910_v25 }
 0x27b   :  { %9788 = vmatprep.mubr.msk.f32.mxu1 %vm980_vm2, %v11923_v37 }
 0x27e   :  { %9789 = vmatmul.mubr.msk.f32.gmra.mrb[62].mxu1 %vm980_vm2, %v11926_v43 }
 0x27f   :  { %9791 = vmatprep.mubr.msk.f32.mxu1 %vm980_vm2, %v11939_v55 }
 0x282   :  { %9792 = vmatmul.mubr.msk.f32.gmra.mrb[64].mxu1 %vm980_vm2, %v11942_v63 }
 0x283   :  { %9794 = vmatprep.mubr.msk.f32.mxu1 %vm980_vm2, %v11955_v18 }
 0x286   :  { %9795 = vmatmul.mubr.msk.f32.gmra.mrb[66].mxu1 %vm980_vm2, %v11958_v31 }
 0x287   :  { %9797 = vmatprep.mubr.msk.f32.mxu1 %vm980_vm2, %v11971_v8 }
 0x28a   :  { %9798 = vmatmul.mubr.msk.f32.gmra.mrb[68].mxu1 %vm980_vm2, %v11976_v60 }
 0x28b   :  { %9800 = vmatprep.mubr.msk.f32.mxu1 %vm980_vm2, %v12171_v4 }
 0x28e   :  { %9801 = vmatmul.mubr.msk.f32.gmra.mrb[70].mxu1 %vm980_vm2, %v12178_v23 }
 0x28f   :  { %9803 = vmatprep.mubr.msk.f32.mxu1 %vm980_vm2, %v12277_v9 }
 0x292   :  { %9804 = vmatmul.mubr.msk.f32.gmra.mrb[72].mxu1 %vm980_vm2, %v12284_v20 }
 0x293   :  { %9806 = vmatprep.mubr.msk.f32.mxu1 %vm980_vm2, %v12385_v0 }
 0x296   :  { %9807 = vmatmul.mubr.msk.f32.gmra.mrb[74].mxu1 %vm980_vm2, %v12392_v49 }
 0x297   :  { %9809 = vmatprep.mubr.f32.mxu1 %v14835_v61 }
 0x29a   :  { %9810 = vmatmul.mubr.f32.gmra.mrb[76].mxu1 %v14835_v61 }
 0x29b   :  { %9812 = vmatprep.mubr.f32.mxu1 %v14835_v61 }
 0x29e   :  { %9813 = vmatmul.mubr.f32.gmra.mrb[78].mxu1 %v14835_v61 }
 0x29f   :  { %9827 = vmatprep.mubr.msk.f32.mxu1 %vm980_vm2, %v11827_v45 }
 0x2a2   :  { %9828 = vmatmul.mubr.msk.f32.vlgmr.msra.gmra.mrb[48].mxu1 %vm980_vm2, %v11830_v47 }
 0x2a3   :  { %10768 = vmatpush3.bf16.msra.mxu1 %v12524_v52  ;;  %9830 = vmatprep.mubr.msk.f32.mxu1 %vm980_vm2, %v11843_v51 }
 0x2a4   :  { %10770 = vmatprep.subr.bf16.mxu1 %v12586_v46 }
 0x2a6   :  { %9831 = vmatmul.mubr.msk.f32.gmra.mrb[50].mxu1 %vm980_vm2, %v11846_v53 }
 0x2a7   :  { %9833 = vmatprep.mubr.msk.f32.mxu1 %vm980_vm2, %v11859_v57  ;;  %10772 = vmatpush3.bf16.msra.mxu1 %v12586_v46  ;;  %v83_v46 = vld [vmem:[%s14706_s4 + $0x18] sm:$0xff] }
 0x2a8   :  { %10774 = vmatprep.subr.bf16.mxu1 %v12600_v34 }
 0x2aa   :  { %9834 = vmatmul.mubr.msk.f32.gmra.mrb[52].mxu1 %vm980_vm2, %v11862_v59 }
 0x2ab   :  { %9836 = vmatprep.mubr.msk.f32.mxu1 %vm980_vm2, %v11875_v2  ;;  %10776 = vmatpush3.bf16.msra.mxu1 %v12600_v34  ;;  %v82_v34 = vld [vmem:[%s14706_s4 + $0x10] sm:$0xff] }
 0x2ac   :  { %10898 = vmatprep.subr.bf16.mxu1 %v10777_v3  ;;  %v10781_v52 = vpack.c.bf16 %v83_v46, %v82_v34  ;;  %v12734_v46 = vld [vmem:[%s14703_s1] sm:$0xf]  ;;  %v14868_v34 = vlaneseq }
 0x2ae   :  { %9837 = vmatmul.mubr.msk.f32.gmra.mrb[54].mxu1 %vm980_vm2, %v11878_v5  ;;  %10782 = vmatprep.subr.bf16.mxu0 %v10781_v52 }
 0x2af   :  { %9839 = vmatprep.mubr.msk.f32.mxu1 %vm980_vm2, %v11891_v11  ;;  %10784 = vmatpush3.bf16.msra.mxu0 %v10781_v52 }
 0x2b0   :  { %10786 = vmatprep.subr.bf16.mxu0 %v10785_v22 }
 0x2b2   :  { %9840 = vmatmul.mubr.msk.f32.gmra.mrb[56].mxu1 %vm980_vm2, %v11894_v16 }
 0x2b3   :  { %9842 = vmatprep.mubr.msk.f32.mxu1 %vm980_vm2, %v11907_v21  ;;  %10788 = vmatpush3.bf16.msra.mxu0 %v10785_v22 }
 0x2b4   :  { %9995 = vmatprep.subr.msk.mxu0 %vm479_vm0, %v12734_v46 }
 0x2b6   :  { %9843 = vmatmul.mubr.msk.f32.gmra.mrb[58].mxu1 %vm980_vm2, %v11910_v25 }
 0x2b7   :  { %9845 = vmatprep.mubr.msk.f32.mxu1 %vm980_vm2, %v11923_v37 }
 0x2ba   :  { %9846 = vmatmul.mubr.msk.f32.gmra.mrb[60].mxu1 %vm980_vm2, %v11926_v43 }
 0x2bb   :  { %9848 = vmatprep.mubr.msk.f32.mxu1 %vm980_vm2, %v11939_v55 }
 0x2be   :  { %9849 = vmatmul.mubr.msk.f32.gmra.mrb[62].mxu1 %vm980_vm2, %v11942_v63 }
 0x2bf   :  { %9851 = vmatprep.mubr.msk.f32.mxu1 %vm980_vm2, %v11955_v18 }
 0x2c2   :  { %9852 = vmatmul.mubr.msk.f32.gmra.mrb[64].mxu1 %vm980_vm2, %v11958_v31 }
 0x2c3   :  { %9854 = vmatprep.mubr.msk.f32.mxu1 %vm980_vm2, %v11971_v8 }
 0x2c6   :  { %9855 = vmatmul.mubr.msk.f32.gmra.mrb[66].mxu1 %vm980_vm2, %v11976_v60 }
 0x2c7   :  { %9857 = vmatprep.mubr.msk.f32.mxu1 %vm980_vm2, %v12171_v4 }
 0x2ca   :  { %9858 = vmatmul.mubr.msk.f32.gmra.mrb[68].mxu1 %vm980_vm2, %v12178_v23 }
 0x2cb   :  { %9860 = vmatprep.mubr.msk.f32.mxu1 %vm980_vm2, %v12277_v9 }
 0x2ce   :  { %9861 = vmatmul.mubr.msk.f32.gmra.mrb[70].mxu1 %vm980_vm2, %v12284_v20 }
 0x2cf   :  { %9863 = vmatprep.mubr.msk.f32.mxu1 %vm980_vm2, %v12385_v0 }
 0x2d2   :  { %9864 = vmatmul.mubr.msk.f32.gmra.mrb[72].mxu1 %vm980_vm2, %v12392_v49 }
 0x2d3   :  { %9866 = vmatprep.mubr.f32.mxu1 %v14835_v61 }
 0x2d6   :  { %9867 = vmatmul.mubr.f32.gmra.mrb[74].mxu1 %v14835_v61 }
 0x2d7   :  { %9869 = vmatprep.mubr.f32.mxu1 %v14835_v61 }
 0x2da   :  { %9870 = vmatmul.mubr.f32.gmra.mrb[76].mxu1 %v14835_v61 }
 0x2db   :  { %9872 = vmatprep.mubr.f32.mxu1 %v14835_v61 }
 0x2de   :  { %9873 = vmatmul.mubr.f32.gmra.mrb[78].mxu1 %v14835_v61 }
 0x2df   :  { %9887 = vmatprep.mubr.msk.f32.mxu1 %vm980_vm2, %v11843_v51 }
 0x2e2   :  { %9888 = vmatmul.mubr.msk.f32.vlgmr.msra.gmra.mrb[48].mxu1 %vm980_vm2, %v11846_v53 }
 0x2e3   :  { %9890 = vmatprep.mubr.msk.f32.mxu1 %vm980_vm2, %v11859_v57  ;;  %10900 = vmatpush3.bf16.msra.mxu1 %v10777_v3  ;;  %v281_v3 = vand.u32 127, %v14868_v34  ;;  %v3442_v34 = vmax.f32 %v11779_v27, %v11795_v33 }
 0x2e4   :  { %10902 = vmatprep.subr.bf16.mxu1 %v10781_v52 }
 0x2e5   :  { %vm3543_vm3 = vcmp.ge.s32.totalorder %v281_v3, 40  ;;  %vm3544_vm4 = vcmp.lt.s32.totalorder %v281_v3, 48  ;;  %vm3474_vm5 = vcmp.ge.s32.totalorder %v281_v3, 32  ;;  %vm3475_vm6 = vcmp.lt.s32.totalorder %v281_v3, 40 }
 0x2e6   :  { %9891 = vmatmul.mubr.msk.f32.gmra.mrb[50].mxu1 %vm980_vm2, %v11862_v59  ;;  %vm12739_vm7 = vmand %vm3543_vm3, %vm3544_vm4  ;;  %v3412_v3 = vmax.f32 %v11795_v33, %v11779_v27 }
 0x2e7   :  { %9893 = vmatprep.mubr.msk.f32.mxu1 %vm980_vm2, %v11875_v2  ;;  %10904 = vmatpush3.bf16.msra.mxu1 %v10781_v52  ;;  %vm12747_vm8 = vmand %vm3474_vm5, %vm3475_vm6  ;;  %v3548_v15 = vsel %vm12739_vm7, %v11776_v26, 0.0  ;;  %v3550_v6 = vsel %vm12739_vm7, %v11788_v32, 0.0  ;;  %v3614_v32 = vsub.s32 1, %v11764_v12 }
 0x2e8   :  { %10906 = vmatprep.subr.bf16.mxu1 %v10785_v22  ;;  %v3444_v27 = vmax.f32 %v3412_v3, %v11811_v39  ;;  %v3479_v3 = vsel %vm12747_vm8, %v3442_v34, 0.0 }
 0x2ea   :  { %9894 = vmatmul.mubr.msk.f32.gmra.mrb[52].mxu1 %vm980_vm2, %v11878_v5 }
 0x2eb   :  { %9896 = vmatprep.mubr.msk.f32.mxu1 %vm980_vm2, %v11891_v11  ;;  %10908 = vmatpush3.bf16.msra.mxu1 %v10785_v22  ;;  %v3443_v22 = vmax.f32 %v11782_v29, %v11798_v35  ;;  %v3551_v29 = vsel %vm12739_vm7, %v11785_v30, 0.0  ;;  %v3650_v30 = vsub.s32 2, %v11764_v12 }
 0x2ed   :  { %v3480_v14 = vsel %vm12747_vm8, %v3443_v22, 0.0  ;;  %v3482_v22 = vsel %vm12747_vm8, %v3445_v58, 0.0  ;;  %v11426_v58 = vld [vmem:[%s14704_s2] sm:$0x7] }
 0x2ee   :  { %9897 = vmatmul.mubr.msk.f32.gmra.mrb[54].mxu1 %vm980_vm2, %v11894_v16 }
 0x2ef   :  { %9899 = vmatprep.mubr.msk.f32.mxu1 %vm980_vm2, %v11907_v21 }
 0x2f2   :  { %9900 = vmatmul.mubr.msk.f32.gmra.mrb[56].mxu1 %vm980_vm2, %v11910_v25 }
 0x2f3   :  { %9902 = vmatprep.mubr.msk.f32.mxu1 %vm980_vm2, %v11923_v37 }
 0x2f6   :  { %9903 = vmatmul.mubr.msk.f32.gmra.mrb[58].mxu1 %vm980_vm2, %v11926_v43 }
 0x2f7   :  { %9905 = vmatprep.mubr.msk.f32.mxu1 %vm980_vm2, %v11939_v55 }
 0x2fa   :  { %9906 = vmatmul.mubr.msk.f32.gmra.mrb[60].mxu1 %vm980_vm2, %v11942_v63 }
 0x2fb   :  { %9908 = vmatprep.mubr.msk.f32.mxu1 %vm980_vm2, %v11955_v18 }
 0x2fe   :  { %9909 = vmatmul.mubr.msk.f32.gmra.mrb[62].mxu1 %vm980_vm2, %v11958_v31 }
 0x2ff   :  { %9911 = vmatprep.mubr.msk.f32.mxu1 %vm980_vm2, %v11971_v8 }
 0x302   :  { %9912 = vmatmul.mubr.msk.f32.gmra.mrb[64].mxu1 %vm980_vm2, %v11976_v60 }
 0x303   :  { %9914 = vmatprep.mubr.msk.f32.mxu1 %vm980_vm2, %v12171_v4  ;;  %v3419_v4 = vmax.f32 %v11846_v53, %v11830_v47 }
 0x306   :  { %9915 = vmatmul.mubr.msk.f32.gmra.mrb[66].mxu1 %vm980_vm2, %v12178_v23  ;;  %v12823_v23 = vmax.f32 %v3419_v4, %v11862_v59 }
 0x307   :  { %9917 = vmatprep.mubr.msk.f32.mxu1 %vm980_vm2, %v12277_v9  ;;  %v3416_v9 = vmax.f32 %v11827_v45, %v11811_v39 }
 0x30a   :  { %9918 = vmatmul.mubr.msk.f32.gmra.mrb[68].mxu1 %vm980_vm2, %v12284_v20 }
 0x30b   :  { %9920 = vmatprep.mubr.msk.f32.mxu1 %vm980_vm2, %v12385_v0  ;;  %v3415_v0 = vmax.f32 %v11814_v41, %v11798_v35 }
 0x30d   :  { %v3447_v35 = vmax.f32 %v3415_v0, %v11830_v47  ;;  %v3448_v0 = vmax.f32 %v3416_v9, %v11843_v51 }
 0x30e   :  { %9921 = vmatmul.mubr.msk.f32.gmra.mrb[70].mxu1 %vm980_vm2, %v12392_v49  ;;  %v3417_v49 = vmax.f32 %v11830_v47, %v11814_v41  ;;  %v3556_v41 = vsel %vm12739_vm7, %v11836_v50, 0.0  ;;  %v3418_v47 = vmax.f32 %v11843_v51, %v11827_v45  ;;  %v3426_v50 = vmax.f32 %v11907_v21, %v11891_v11 }
 0x30f   :  { %9923 = vmatprep.mubr.f32.mxu1 %v14835_v61 }
 0x310   :  { %v3449_v12 = vmax.f32 %v3417_v49, %v11846_v53  ;;  %v3484_v49 = vsel %vm12747_vm8, %v3447_v35, 0.0 }
 0x312   :  { %9924 = vmatmul.mubr.f32.gmra.mrb[72].mxu1 %v14835_v61 }
 0x313   :  { %9926 = vmatprep.mubr.f32.mxu1 %v14835_v61 }
 0x316   :  { %9927 = vmatmul.mubr.f32.gmra.mrb[74].mxu1 %v14835_v61 }
 0x317   :  { %9929 = vmatprep.mubr.f32.mxu1 %v14835_v61 }
 0x31a   :  { %9930 = vmatmul.mubr.f32.gmra.mrb[76].mxu1 %v14835_v61 }
 0x31b   :  { %9932 = vmatprep.mubr.f32.mxu1 %v14835_v61 }
 0x31e   :  { %9933 = vmatmul.mubr.f32.gmra.mrb[78].mxu1 %v14835_v61  ;;  %v3549_v61 = vsel %vm12739_vm7, %v11773_v24, 0.0  ;;  %v3414_v24 = vmax.f32 %v11811_v39, %v11795_v33  ;;  %v12808_v39 = vrot.slane %v11426_v58, %v3614_v32  ;;  %v12820_v32 = vrot.slane %v11426_v58, %v3650_v30 }
 0x320   :  { %v3446_v33 = vmax.f32 %v3414_v24, %v11827_v45  ;;  %v3481_v24 = vsel %vm12747_vm8, %v3444_v27, 0.0  ;;  %v3485_v45 = vsel %vm12747_vm8, %v3448_v0, 0.0  ;;  %v3488_v0 = vsel %vm12747_vm8, %v12823_v23, 0.0 }
 0x321   :  { %v3423_v23 = vmax.f32 %v11878_v5, %v11862_v59 }
 0x3b5   :  { %v9889_v34 = vpop.f32.mrb[48].mxu1 }
 0x3b6   :  { %v3512_v26 = vadd.f32 %v9889_v34, %v3480_v14  ;;  %v3183_v20 = vpop.f32.mrb[49].mxu1  ;;  %v3483_v14 = vsel %vm12747_vm8, %v3446_v33, 0.0  ;;  %v12839_v33 = vmax.f32 %v3418_v47, %v11859_v57 }
 0x3b7   :  { %v3511_v27 = vadd.f32 %v3479_v3, %v3183_v20  ;;  %v3558_v20 = vsel %vm12739_vm7, %v11852_v56, 0.0 }
 0x3b8   :  { %v3581_v34 = vadd.f32 %v3549_v61, %v3512_v26  ;;  %v3486_v61 = vsel %vm12747_vm8, %v3449_v12, 0.0 }
 0x3b9   :  { %v3580_v3 = vadd.f32 %v3548_v15, %v3511_v27  ;;  %v9892_v35 = vpop.f32.mrb[50].mxu1  ;;  %v3421_v15 = vmax.f32 %v11862_v59, %v11846_v53  ;;  %v3420_v27 = vmax.f32 %v11859_v57, %v11843_v51  ;;  %v3563_v59 = vsel %vm12739_vm7, %v11881_v7, 0.0  ;;  %v14883_v7 = vld [vmem:[#allocation15_spill] sm:$0xff] }
 0x3ba   :  { %v3617_v26 = vmul.f32 %v12808_v39, %v3581_v34  ;;  %v3514_v4 = vadd.f32 %v9892_v35, %v3482_v22  ;;  %v3193_v30 = vpop.f32.mrb[51].mxu1  ;;  %v3561_v22 = vsel %vm12739_vm7, %v11865_v62, 0.0 }
 0x3bb   :  { %v3513_v58 = vadd.f32 %v3481_v24, %v3193_v30  ;;  %v3616_v9 = vmul.f32 %v12808_v39, %v3580_v3  ;;  %v12858_v51 = vmax.f32 %v3421_v15, %v11878_v5 }
 0x3bc   :  { %v3653_v12 = vadd.f32 %v12820_v32, %v3617_v26  ;;  %v3583_v34 = vadd.f32 %v3551_v29, %v3514_v4  ;;  %v3487_v29 = vsel %vm12747_vm8, %v12839_v33, 0.0  ;;  %v3422_v33 = vmax.f32 %v11875_v2, %v11859_v57 }
 0x3bd   :  { %v3582_v47 = vadd.f32 %v3550_v6, %v3513_v58  ;;  %v9895_v53 = vpop.f32.mrb[52].mxu1  ;;  %v3652_v3 = vadd.f32 %v12820_v32, %v3616_v9  ;;  %v12868_v9 = vmax.f32 %v3420_v27, %v11875_v2  ;;  %v14874_v27 = vsel %vm12739_vm7, %v11804_v38, 0.0 }
 0x3be   :  { %v3619_v35 = vmul.f32 %v12808_v39, %v3583_v34  ;;  %v3516_v30 = vadd.f32 %v9895_v53, %v3484_v49  ;;  %v3203_v26 = vpop.f32.mrb[53].mxu1  ;;  %v3685_v15 = vmax.f32 %v3653_v12, 0.0  ;;  %v14873_v49 = vsel %vm12739_vm7, %v11801_v36, 0.0 }
 0x3bf   :  { %v3618_v4 = vmul.f32 %v12808_v39, %v3582_v47  ;;  %v3515_v6 = vadd.f32 %v3483_v14, %v3203_v26  ;;  %v3684_v58 = vmax.f32 %v3652_v3, 0.0  ;;  %v3490_v36 = vsel %vm12747_vm8, %v12858_v51, 0.0 }
 0x3c0   :  { %v3655_v24 = vadd.f32 %v12820_v32, %v3619_v35  ;;  %v3585_v34 = vadd.f32 %v14873_v49, %v3516_v30  ;;  %v3562_v57 = vsel %vm12739_vm7, %v11884_v10, 0.0  ;;  %v3455_v38 = vmax.f32 %v3423_v23, %v11894_v16 }
 0x3c1   :  { %v3654_v14 = vadd.f32 %v12820_v32, %v3618_v4  ;;  %v3584_v12 = vadd.f32 %v14874_v27, %v3515_v6  ;;  %v9898_v47 = vpop.f32.mrb[54].mxu1  ;;  %9947 = vmatprep.mubr.msk.f32.mxu0 %vm980_vm2, %v3684_v58  ;;  %v3489_v51 = vsel %vm12747_vm8, %v12868_v9, 0.0  ;;  %v3425_v23 = vmax.f32 %v11894_v16, %v11878_v5 }
 0x3c2   :  { %v3621_v53 = vmul.f32 %v12808_v39, %v3585_v34  ;;  %v3518_v3 = vadd.f32 %v9898_v47, %v3486_v61  ;;  %v3213_v35 = vpop.f32.mrb[55].mxu1  ;;  %9948 = vmatmul.mubr.msk.f32.vlgmr.msra.gmra.mrb[0].mxu0 %vm980_vm2, %v3685_v15  ;;  %v3687_v6 = vmax.f32 %v3655_v24, 0.0  ;;  %v14875_v61 = vsel %vm12739_vm7, %v11817_v42, 0.0 }
 0x3c3   :  { %v3686_v30 = vmax.f32 %v3654_v14, 0.0  ;;  %v3620_v26 = vmul.f32 %v12808_v39, %v3584_v12  ;;  %v3517_v4 = vadd.f32 %v3485_v45, %v3213_v35  ;;  %9996 = vmatpush3.msk.msra.mxu0 %vm479_vm0, %v12734_v46  ;;  %v14876_v46 = vsel %vm12739_vm7, %v11820_v44, 0.0 }
 0x3c4   :  { %v3657_v58 = vadd.f32 %v12820_v32, %v3621_v53  ;;  %v3587_v15 = vadd.f32 %v14875_v61, %v3518_v3  ;;  %10790 = vmatprep.subr.bf16.mxu0 %v11539_v13  ;;  %v3454_v49 = vmax.f32 %v3422_v33, %v11891_v11  ;;  %v3424_v42 = vmax.f32 %v11891_v11, %v11875_v2  ;;  %v14879_v11 = vld [vmem:[#allocation12_spill] sm:$0xff] }
 0x3c5   :  { %v3656_v45 = vadd.f32 %v12820_v32, %v3620_v26  ;;  %v3586_v9 = vadd.f32 %v14876_v46, %v3517_v4  ;;  %v9901_v24 = vpop.f32.mrb[56].mxu1  ;;  %9950 = vmatprep.mubr.msk.f32.mxu0 %vm980_vm2, %v3686_v30  ;;  %v3565_v5 = vsel %vm12739_vm7, %v11897_v17, 0.0  ;;  %v3492_v44 = vsel %vm12747_vm8, %v3455_v38, 0.0 }
 0x3c6   :  { %v3623_v34 = vmul.f32 %v12808_v39, %v3587_v15  ;;  %v3520_v14 = vadd.f32 %v9901_v24, %v3488_v0  ;;  %v3223_v27 = vpop.f32.mrb[57].mxu1  ;;  %9951 = vmatmul.mubr.msk.f32.gmra.mrb[2].mxu0 %vm980_vm2, %v3687_v6  ;;  %v3564_v33 = vsel %vm12739_vm7, %v11900_v19, 0.0  ;;  %v3689_v53 = vmax.f32 %v3657_v58, 0.0 }
 0x3c7   :  { %v3688_v12 = vmax.f32 %v3656_v45, 0.0  ;;  %v3622_v2 = vmul.f32 %v12808_v39, %v3586_v9  ;;  %v3519_v47 = vadd.f32 %v3487_v29, %v3223_v27  ;;  %v14877_v0 = vsel %vm12739_vm7, %v11833_v48, 0.0 }
 0x3c8   :  { %v3659_v3 = vadd.f32 %v12820_v32, %v3623_v34  ;;  %v3589_v35 = vadd.f32 %v14877_v0, %v3520_v14  ;;  %v3457_v30 = vmax.f32 %v3425_v23, %v11910_v25  ;;  %v3491_v29 = vsel %vm12747_vm8, %v3454_v49, 0.0 }
 0x3c9   :  { %v3658_v38 = vadd.f32 %v12820_v32, %v3622_v2  ;;  %v3588_v26 = vadd.f32 %v3556_v41, %v3519_v47  ;;  %v9904_v4 = vpop.f32.mrb[58].mxu1  ;;  %9953 = vmatprep.mubr.msk.f32.mxu0 %vm980_vm2, %v3688_v12  ;;  %v3427_v6 = vmax.f32 %v11910_v25, %v11894_v16  ;;  %v3456_v15 = vmax.f32 %v3424_v42, %v11907_v21 }
 0x3ca   :  { %v3625_v48 = vmul.f32 %v12808_v39, %v3589_v35  ;;  %v3522_v58 = vadd.f32 %v9904_v4, %v3490_v36  ;;  %v3233_v61 = vpop.f32.mrb[59].mxu1  ;;  %9954 = vmatmul.mubr.msk.f32.gmra.mrb[4].mxu0 %vm980_vm2, %v3689_v53  ;;  %v3567_v41 = vsel %vm12739_vm7, %v11913_v28, 0.0  ;;  %v3691_v16 = vmax.f32 %v3659_v3, 0.0 }
 0x3cb   :  { %v3690_v23 = vmax.f32 %v3658_v38, 0.0  ;;  %v3624_v45 = vmul.f32 %v12808_v39, %v3588_v26  ;;  %v3521_v46 = vadd.f32 %v3489_v51, %v3233_v61  ;;  %v14878_v36 = vsel %vm12739_vm7, %v11849_v54, 0.0  ;;  %v14880_v26 = vld [vmem:[#allocation13_spill] sm:$0xff] }
 0x3cc   :  { %v3661_v9 = vadd.f32 %v12820_v32, %v3625_v48  ;;  %v3591_v24 = vadd.f32 %v14878_v36, %v3522_v58  ;;  %v3494_v49 = vsel %vm12747_vm8, %v3457_v30, 0.0  ;;  %v3566_v42 = vsel %vm12739_vm7, %v14879_v11, 0.0 }
 0x3cd   :  { %v3660_v34 = vadd.f32 %v12820_v32, %v3624_v45  ;;  %v3590_v51 = vadd.f32 %v3558_v20, %v3521_v46  ;;  %v9907_v14 = vpop.f32.mrb[60].mxu1  ;;  %9956 = vmatprep.mubr.msk.f32.mxu0 %vm980_vm2, %v3690_v23  ;;  %v3459_v54 = vmax.f32 %v3427_v6, %v11926_v43  ;;  %v3493_v47 = vsel %vm12747_vm8, %v3456_v15, 0.0 }
 0x3ce   :  { %v3627_v27 = vmul.f32 %v12808_v39, %v3591_v24  ;;  %v3524_v12 = vadd.f32 %v9907_v14, %v3492_v44  ;;  %v3243_v2 = vpop.f32.mrb[61].mxu1  ;;  %9957 = vmatmul.mubr.msk.f32.gmra.mrb[6].mxu0 %vm980_vm2, %v3691_v16  ;;  %v3429_v53 = vmax.f32 %v11926_v43, %v11910_v25  ;;  %v3458_v0 = vmax.f32 %v3426_v50, %v11923_v37 }
 0x3cf   :  { %v3692_v3 = vmax.f32 %v3660_v34, 0.0  ;;  %v3626_v56 = vmul.f32 %v12808_v39, %v3590_v51  ;;  %v3523_v20 = vadd.f32 %v3491_v29, %v3243_v2  ;;  %v3693_v35 = vmax.f32 %v3661_v9, 0.0 }
 0x3d0   :  { %v3663_v30 = vadd.f32 %v12820_v32, %v3627_v27  ;;  %v3593_v44 = vadd.f32 %v3561_v22, %v3524_v12  ;;  %v3428_v38 = vmax.f32 %v11923_v37, %v11907_v21  ;;  %v3569_v25 = vsel %vm12739_vm7, %v14880_v26, 0.0  ;;  %v14882_v22 = vld [vmem:[#allocation14_spill] sm:$0xff] }
 0x3d1   :  { %v3662_v4 = vadd.f32 %v12820_v32, %v3626_v56  ;;  %v14881_v29 = vsel %vm12739_vm7, %v11868_v1, 0.0  ;;  %v9910_v48 = vpop.f32.mrb[62].mxu1  ;;  %9959 = vmatprep.mubr.msk.f32.mxu0 %vm980_vm2, %v3692_v3  ;;  %v3496_v62 = vsel %vm12747_vm8, %v3459_v54, 0.0  ;;  %v3568_v21 = vsel %vm12739_vm7, %v14882_v22, 0.0 }
 0x3d2   :  { %v3592_v6 = vadd.f32 %v14881_v29, %v3523_v20  ;;  %v3629_v58 = vmul.f32 %v12808_v39, %v3593_v44  ;;  %v3526_v61 = vadd.f32 %v9910_v48, %v3494_v49  ;;  %v3253_v15 = vpop.f32.mrb[63].mxu1  ;;  %9960 = vmatmul.mubr.msk.f32.gmra.mrb[8].mxu0 %vm980_vm2, %v3693_v35  ;;  %v3461_v50 = vmax.f32 %v3429_v53, %v11942_v63 }
 0x3d3   :  { %v3694_v1 = vmax.f32 %v3662_v4, 0.0  ;;  %v3525_v45 = vadd.f32 %v3493_v47, %v3253_v15  ;;  %v3495_v46 = vsel %vm12747_vm8, %v3458_v0, 0.0  ;;  %v3695_v16 = vmax.f32 %v3663_v30, 0.0 }
 0x3d4   :  { %v3628_v23 = vmul.f32 %v12808_v39, %v3592_v6  ;;  %v3665_v9 = vadd.f32 %v12820_v32, %v3629_v58  ;;  %v3595_v36 = vadd.f32 %v3563_v59, %v3526_v61  ;;  %v3431_v24 = vmax.f32 %v11942_v63, %v11926_v43 }
 0x3d5   :  { %v3594_v34 = vadd.f32 %v3562_v57, %v3525_v45  ;;  %v9913_v51 = vpop.f32.mrb[64].mxu1  ;;  %9962 = vmatprep.mubr.msk.f32.mxu0 %vm980_vm2, %v3694_v1  ;;  %v3460_v14 = vmax.f32 %v3428_v38, %v11939_v55  ;;  %v3430_v54 = vmax.f32 %v11939_v55, %v11923_v37  ;;  %v3571_v59 = vsel %vm12739_vm7, %v14883_v7, 0.0  ;;  %v14884_v37 = vld [vmem:[#allocation16_spill] sm:$0xff] }
 0x3d6   :  { %v3664_v49 = vadd.f32 %v12820_v32, %v3628_v23  ;;  %v3631_v43 = vmul.f32 %v12808_v39, %v3595_v36  ;;  %v3528_v27 = vadd.f32 %v9913_v51, %v3496_v62  ;;  %v3263_v12 = vpop.f32.mrb[65].mxu1  ;;  %9963 = vmatmul.mubr.msk.f32.gmra.mrb[10].mxu0 %vm980_vm2, %v3695_v16  ;;  %v3498_v10 = vsel %vm12747_vm8, %v3461_v50, 0.0 }
 0x3d7   :  { %v3630_v2 = vmul.f32 %v12808_v39, %v3594_v34  ;;  %v3527_v47 = vadd.f32 %v3495_v46, %v3263_v12  ;;  %v3463_v53 = vmax.f32 %v3431_v24, %v11958_v31  ;;  %v3570_v3 = vsel %vm12739_vm7, %v14884_v37, 0.0 }
 0x3d8   :  { %v3696_v57 = vmax.f32 %v3664_v49, 0.0  ;;  %v3697_v56 = vmax.f32 %v3665_v9, 0.0  ;;  %v3667_v20 = vadd.f32 %v12820_v32, %v3631_v43  ;;  %v3597_v0 = vadd.f32 %v3565_v5, %v3528_v27  ;;  %v14885_v49 = vld [vmem:[#allocation28_spill] sm:$0xff] }
 0x3d9   :  { %v3666_v35 = vadd.f32 %v12820_v32, %v3630_v2  ;;  %v3596_v30 = vadd.f32 %v3564_v33, %v3527_v47  ;;  %v9916_v44 = vpop.f32.mrb[66].mxu1  ;;  %v3497_v38 = vsel %vm12747_vm8, %v3460_v14, 0.0  ;;  %v3433_v4 = vmax.f32 %v11958_v31, %v11942_v63 }
 0x3da   :  { %9965 = vmatprep.mubr.msk.f32.mxu0 %vm980_vm2, %v3696_v57  ;;  %v3633_v29 = vmul.f32 %v12808_v39, %v3597_v0  ;;  %v3530_v17 = vadd.f32 %v9916_v44, %v3498_v10  ;;  %v3273_v5 = vpop.f32.mrb[67].mxu1  ;;  %v3462_v6 = vmax.f32 %v3430_v54, %v11955_v18  ;;  %v3432_v19 = vmax.f32 %v11955_v18, %v11939_v55  ;;  %v14886_v54 = vld [vmem:[#allocation27_spill] sm:$0xff] }
 0x3db   :  { %9966 = vmatmul.mubr.msk.f32.gmra.mrb[12].mxu0 %vm980_vm2, %v3697_v56  ;;  %v3698_v33 = vmax.f32 %v3666_v35, 0.0  ;;  %v3632_v48 = vmul.f32 %v12808_v39, %v3596_v30  ;;  %v3529_v62 = vadd.f32 %v3497_v38, %v3273_v5  ;;  %v3500_v58 = vsel %vm12747_vm8, %v3463_v53, 0.0 }
 0x3dc   :  { %v3699_v61 = vmax.f32 %v3667_v20, 0.0  ;;  %v3669_v63 = vadd.f32 %v12820_v32, %v3633_v29  ;;  %v3599_v15 = vadd.f32 %v3567_v41, %v3530_v17  ;;  %v3465_v50 = vmax.f32 %v3433_v4, %v11976_v60  ;;  %v14887_v4 = vld [vmem:[#allocation35_spill] sm:$0xff] }
 0x3dd   :  { %v3668_v1 = vadd.f32 %v12820_v32, %v3632_v48  ;;  %v3598_v55 = vadd.f32 %v3566_v42, %v3529_v62  ;;  %v9919_v23 = vpop.f32.mrb[68].mxu1  ;;  %9968 = vmatprep.mubr.msk.f32.mxu0 %vm980_vm2, %v3698_v33  ;;  %v3464_v45 = vmax.f32 %v3432_v19, %v11971_v8  ;;  %v3435_v46 = vmax.f32 %v11976_v60, %v11958_v31 }
 0x3de   :  { %v3635_v28 = vmul.f32 %v12808_v39, %v3599_v15  ;;  %v3532_v41 = vadd.f32 %v9919_v23, %v3500_v58  ;;  %v3283_v16 = vpop.f32.mrb[69].mxu1  ;;  %v3499_v9 = vsel %vm12747_vm8, %v3462_v6, 0.0  ;;  %v3434_v11 = vmax.f32 %v11971_v8, %v11955_v18  ;;  %v14888_v6 = vld [vmem:[#allocation34_spill] sm:$0xff] }
 0x3df   :  { %9969 = vmatmul.mubr.msk.f32.gmra.mrb[14].mxu0 %vm980_vm2, %v3699_v61  ;;  %v3700_v42 = vmax.f32 %v3668_v1, 0.0  ;;  %v3634_v36 = vmul.f32 %v12808_v39, %v3598_v55  ;;  %v3531_v24 = vadd.f32 %v3499_v9, %v3283_v16  ;;  %v3467_v34 = vmax.f32 %v3435_v46, %v14885_v49  ;;  %v14890_v61 = vld [vmem:[#allocation18_spill] sm:$0xff] }
 0x3e0   :  { %v3701_v51 = vmax.f32 %v3669_v63, 0.0  ;;  %v3671_v31 = vadd.f32 %v12820_v32, %v3635_v28  ;;  %v3601_v14 = vadd.f32 %v3569_v25, %v3532_v41  ;;  %v3466_v43 = vmax.f32 %v3434_v11, %v14886_v54  ;;  %v14891_v28 = vld [vmem:[#allocation42_spill] sm:$0xff] }
 0x3e1   :  { %v3670_v27 = vadd.f32 %v12820_v32, %v3634_v36  ;;  %v3600_v18 = vadd.f32 %v3568_v21, %v3531_v24  ;;  %v9922_v12 = vpop.f32.mrb[70].mxu1  ;;  %v3502_v10 = vsel %vm12747_vm8, %v3465_v50, 0.0  ;;  %9971 = vmatprep.mubr.msk.f32.mxu0 %vm980_vm2, %v3700_v42  ;;  %v3501_v57 = vsel %vm12747_vm8, %v3464_v45, 0.0  ;;  %v14892_v36 = vld [vmem:[#allocation41_spill] sm:$0xff] }
 0x3e2   :  { %v3637_v26 = vmul.f32 %v12808_v39, %v3601_v14  ;;  %v3534_v25 = vadd.f32 %v9922_v12, %v3502_v10  ;;  %v3293_v2 = vpop.f32.mrb[71].mxu1  ;;  %v3437_v47 = vmax.f32 %v14885_v49, %v11976_v60  ;;  %v3436_v22 = vmax.f32 %v14886_v54, %v11971_v8 }
 0x3e3   :  { %9972 = vmatmul.mubr.msk.f32.gmra.mrb[16].mxu0 %vm980_vm2, %v3701_v51  ;;  %v3702_v21 = vmax.f32 %v3670_v27, 0.0  ;;  %v3636_v53 = vmul.f32 %v12808_v39, %v3600_v18  ;;  %v3533_v56 = vadd.f32 %v3501_v57, %v3293_v2  ;;  %v3504_v20 = vsel %vm12747_vm8, %v3467_v34, 0.0 }
 0x3e4   :  { %v3703_v0 = vmax.f32 %v3671_v31, 0.0  ;;  %v3673_v35 = vadd.f32 %v12820_v32, %v3637_v26  ;;  %v3603_v30 = vadd.f32 %v3571_v59, %v3534_v25  ;;  %v3503_v60 = vsel %vm12747_vm8, %v3466_v43, 0.0 }
 0x3e5   :  { %v3672_v8 = vadd.f32 %v12820_v32, %v3636_v53  ;;  %v3602_v44 = vadd.f32 %v3570_v3, %v3533_v56  ;;  %v9925_v38 = vpop.f32.mrb[72].mxu1  ;;  %9974 = vmatprep.mubr.msk.f32.mxu0 %vm980_vm2, %v3702_v21  ;;  %v3469_v29 = vmax.f32 %v3437_v47, %v14887_v4  ;;  %v3439_v17 = vmax.f32 %v14887_v4, %v14885_v49  ;;  %v14889_v3 = vld [vmem:[#allocation17_spill] sm:$0xff]  ;;  %v14893_v49 = vld [vmem:[#allocation26_spill] sm:$0xff] }
 0x3e6   :  { %v3639_v7 = vmul.f32 %v12808_v39, %v3603_v30  ;;  %v3536_v59 = vadd.f32 %v9925_v38, %v3504_v20  ;;  %v3303_v5 = vpop.f32.mrb[73].mxu1  ;;  %v3468_v19 = vmax.f32 %v3436_v22, %v14888_v6  ;;  %v3438_v37 = vmax.f32 %v14888_v6, %v14886_v54  ;;  %v14894_v54 = vld [vmem:[#allocation25_spill] sm:$0xff] }
 0x3e7   :  { %9975 = vmatmul.mubr.msk.f32.gmra.mrb[18].mxu0 %vm980_vm2, %v3703_v0  ;;  %v3573_v33 = vsel %vm12739_vm7, %v14889_v3, 0.0  ;;  %v3704_v48 = vmax.f32 %v3672_v8, 0.0  ;;  %v3638_v62 = vmul.f32 %v12808_v39, %v3602_v44  ;;  %v3535_v58 = vadd.f32 %v3503_v60, %v3303_v5  ;;  %v14895_v20 = vld [vmem:[#allocation33_spill] sm:$0xff]  ;;  %v14896_v8 = vld [vmem:[#allocation32_spill] sm:$0xff] }
 0x3e8   :  { %v3572_v63 = vsel %vm12739_vm7, %v14890_v61, 0.0  ;;  %v3705_v15 = vmax.f32 %v3673_v35, 0.0  ;;  %v3675_v50 = vadd.f32 %v12820_v32, %v3639_v7  ;;  %v3605_v1 = vadd.f32 %v3573_v33, %v3536_v59  ;;  %v14897_v33 = vld [vmem:[#allocation40_spill] sm:$0xff] }
 0x3e9   :  { %v3674_v55 = vadd.f32 %v12820_v32, %v3638_v62  ;;  %v3604_v23 = vadd.f32 %v3572_v63, %v3535_v58  ;;  %v9928_v45 = vpop.f32.mrb[74].mxu1  ;;  %v3506_v46 = vsel %vm12747_vm8, %v3469_v29, 0.0  ;;  %9977 = vmatprep.mubr.msk.f32.mxu0 %vm980_vm2, %v3704_v48  ;;  %v3471_v41 = vmax.f32 %v3439_v17, %v14891_v28  ;;  %v14898_v63 = vld [vmem:[#allocation39_spill] sm:$0xff] }
 0x3ea   :  { %v3641_v16 = vmul.f32 %v12808_v39, %v3605_v1  ;;  %v3538_v9 = vadd.f32 %v9928_v45, %v3506_v46  ;;  %v3313_v11 = vpop.f32.mrb[75].mxu1  ;;  %v3505_v42 = vsel %vm12747_vm8, %v3468_v19, 0.0  ;;  %v3470_v24 = vmax.f32 %v3438_v37, %v14892_v36 }
 0x3eb   :  { %9978 = vmatmul.mubr.msk.f32.gmra.mrb[20].mxu0 %vm980_vm2, %v3705_v15  ;;  %v3575_v34 = vsel %vm12739_vm7, %v14893_v49, 0.0  ;;  %v3706_v51 = vmax.f32 %v3674_v55, 0.0  ;;  %v3640_v31 = vmul.f32 %v12808_v39, %v3604_v23  ;;  %v3537_v14 = vadd.f32 %v3505_v42, %v3313_v11  ;;  %v8087_v49 = vld [vmem:[%s14702_s0 + $0x188] sm:$0xff] }
 0x3ec   :  { %v3574_v43 = vsel %vm12739_vm7, %v14894_v54, 0.0  ;;  %v3707_v27 = vmax.f32 %v3675_v50, 0.0  ;;  %v3677_v18 = vadd.f32 %v12820_v32, %v3641_v16  ;;  %v3607_v12 = vadd.f32 %v3575_v34, %v3538_v9  ;;  %v8088_v34 = vld [vmem:[%s14702_s0 + $0x190] sm:$0xff]  ;;  %v8091_v54 = vld [vmem:[%s14702_s0 + $0x1a8] sm:$0xff] }
 0x3ed   :  { %v3676_v10 = vadd.f32 %v12820_v32, %v3640_v31  ;;  %v3606_v57 = vadd.f32 %v3574_v43, %v3537_v14  ;;  %v9931_v26 = vpop.f32.mrb[76].mxu1  ;;  %v3508_v25 = vsel %vm12747_vm8, %v3471_v41, 0.0  ;;  %9980 = vmatprep.mubr.msk.f32.mxu0 %vm980_vm2, %v3706_v51  ;;  %v3441_v2 = vmax.f32 %v14891_v28, %v14887_v4  ;;  %v8089_v51 = vld [vmem:[%s14702_s0 + $0x198] sm:$0xff]  ;;  %v8090_v31 = vld [vmem:[%s14702_s0 + $0x1a0] sm:$0xff]  ;;  %v14899_v14 = vld [vmem:[#allocation5_spill] sm:$0xff] }
 0x3ee   :  { %v3643_v47 = vmul.f32 %v12808_v39, %v3607_v12  ;;  %v3540_v22 = vadd.f32 %v9931_v26, %v3508_v25  ;;  %v3323_v21 = vpop.f32.mrb[77].mxu1  ;;  %v3507_v53 = vsel %vm12747_vm8, %v3470_v24, 0.0  ;;  %v3440_v56 = vmax.f32 %v14892_v36, %v14888_v6  ;;  %v8086_v24 = vld [vmem:[%s14702_s0 + $0x180] sm:$0xff]  ;;  %v14900_v43 = vld [vmem:[#allocation6_spill] sm:$0xff] }
 0x3ef   :  { %9981 = vmatmul.mubr.msk.f32.gmra.mrb[22].mxu0 %vm980_vm2, %v3707_v27  ;;  %v3577_v0 = vsel %vm12739_vm7, %v14895_v20, 0.0  ;;  %v3708_v35 = vmax.f32 %v3676_v10, 0.0  ;;  %v3642_v30 = vmul.f32 %v12808_v39, %v3606_v57  ;;  %v3539_v60 = vadd.f32 %v3507_v53, %v3323_v21  ;;  %v8093_v27 = vld [vmem:[%s14702_s0 + $0x1b8] sm:$0xff]  ;;  %v14901_v12 = vld [vmem:[#allocation7_spill] sm:$0xff]  ;;  %v8095_v10 = vld [vmem:[%s14702_s0 + $0x1c8] sm:$0xff] }
 0x3f0   :  { %v3576_v44 = vsel %vm12739_vm7, %v14896_v8, 0.0  ;;  %v3709_v38 = vmax.f32 %v3677_v18, 0.0  ;;  %v3679_v4 = vadd.f32 %v12820_v32, %v3643_v47  ;;  %v3609_v29 = vadd.f32 %v3577_v0, %v3540_v22  ;;  %v8094_v18 = vld [vmem:[%s14702_s0 + $0x1c0] sm:$0xff]  ;;  %v8096_v57 = vld [vmem:[%s14702_s0 + $0x1d0] sm:$0xff]  ;;  %v8097_v26 = vld [vmem:[%s14702_s0 + $0x1d8] sm:$0xff] }
 0x3f1   :  { %v3678_v17 = vadd.f32 %v12820_v32, %v3642_v30  ;;  %v3608_v7 = vadd.f32 %v3576_v44, %v3539_v60  ;;  %v9934_v59 = vpop.f32.mrb[78].mxu1  ;;  %v3510_v5 = vsel %vm12747_vm8, %v3441_v2, 0.0  ;;  %9983 = vmatprep.mubr.msk.f32.mxu0 %vm980_vm2, %v3708_v35  ;;  %v3509_v3 = vsel %vm12747_vm8, %v3440_v56, 0.0  ;;  %v8098_v25 = vld [vmem:[%s14702_s0 + $0x1e0] sm:$0xff]  ;;  %v8099_v2 = vld [vmem:[%s14702_s0 + $0x1e8] sm:$0xff]  ;;  %v8100_v47 = vld [vmem:[%s14702_s0 + $0x1f0] sm:$0xff] }
 0x3f2   :  { %v3645_v6 = vmul.f32 %v12808_v39, %v3609_v29  ;;  %v3542_v19 = vadd.f32 %v9934_v59, %v3510_v5  ;;  %v3333_v37 = vpop.f32.mrb[79].mxu1  ;;  %v3579_v48 = vsel %vm12739_vm7, %v14897_v33, 0.0  ;;  %v3578_v15 = vsel %vm12739_vm7, %v14898_v63, 0.0  ;;  %v8101_v22 = vld [vmem:[%s14702_s0 + $0x1f8] sm:$0xff]  ;;  %v8102_v21 = vld [vmem:[%s14702_s0 + $0x200] sm:$0xff]  ;;  %v8103_v53 = vld [vmem:[%s14702_s0 + $0x208] sm:$0xff] }
 0x3f3   :  { %9984 = vmatmul.mubr.msk.f32.gmra.mrb[24].mxu0 %vm980_vm2, %v3709_v38  ;;  %v3710_v62 = vmax.f32 %v3678_v17, 0.0  ;;  %v3644_v58 = vmul.f32 %v12808_v39, %v3608_v7  ;;  %v3541_v61 = vadd.f32 %v3509_v3, %v3333_v37  ;;  %v3711_v50 = vmax.f32 %v3679_v4, 0.0  ;;  %v8104_v56 = vld [vmem:[%s14702_s0 + $0x210] sm:$0xff]  ;;  %v8105_v20 = vld [vmem:[%s14702_s0 + $0x218] sm:$0xff]  ;;  %v8106_v0 = vld [vmem:[%s14702_s0 + $0x220] sm:$0xff] }
 0x3f4   :  { %v3681_v1 = vadd.f32 %v12820_v32, %v3645_v6  ;;  %v3611_v55 = vadd.f32 %v3579_v48, %v3542_v19  ;;  %v8107_v35 = vld [vmem:[%s14702_s0 + $0x228] sm:$0xff]  ;;  %v8108_v30 = vld [vmem:[%s14702_s0 + $0x230] sm:$0xff]  ;;  %v8109_v60 = vld [vmem:[%s14702_s0 + $0x238] sm:$0xff] }
 0x3f5   :  { %v3680_v23 = vadd.f32 %v12820_v32, %v3644_v58  ;;  %v3610_v45 = vadd.f32 %v3578_v15, %v3541_v61  ;;  %9986 = vmatprep.mubr.msk.f32.mxu0 %vm980_vm2, %v3710_v62  ;;  %v8110_v8 = vld [vmem:[%s14702_s0 + $0x240] sm:$0xff]  ;;  %v8111_v44 = vld [vmem:[%s14702_s0 + $0x248] sm:$0xff]  ;;  %v8112_v38 = vld [vmem:[%s14702_s0 + $0x250] sm:$0xff] }
 0x3f6   :  { %v3647_v46 = vmul.f32 %v12808_v39, %v3611_v55  ;;  %v3713_v16 = vmax.f32 %v3681_v1, 0.0  ;;  %v8113_v4 = vld [vmem:[%s14702_s0 + $0x258] sm:$0xff]  ;;  %v8114_v29 = vld [vmem:[%s14702_s0 + $0x260] sm:$0xff]  ;;  %v8115_v17 = vld [vmem:[%s14702_s0 + $0x268] sm:$0xff] }
 0x3f7   :  { %9987 = vmatmul.mubr.msk.f32.gmra.mrb[26].mxu0 %vm980_vm2, %v3711_v50  ;;  %v3712_v28 = vmax.f32 %v3680_v23, 0.0  ;;  %v3646_v41 = vmul.f32 %v12808_v39, %v3610_v45  ;;  %v8116_v7 = vld [vmem:[%s14702_s0 + $0x270] sm:$0xff]  ;;  %v8117_v59 = vld [vmem:[%s14702_s0 + $0x278] sm:$0xff]  ;;  %v8118_v5 = vld [vmem:[%s14702_s0 + $0x280] sm:$0xff]  ;;  %v14902_v45 = vmov 0.0  }
 0x3f8   :  { %v3683_v9 = vadd.f32 %v12820_v32, %v3647_v46  ;;  %v8119_v6 = vld [vmem:[%s14702_s0 + $0x288] sm:$0xff]  ;;  %v8120_v19 = vld [vmem:[%s14702_s0 + $0x290] sm:$0xff]  ;;  %v8121_v37 = vld [vmem:[%s14702_s0 + $0x298] sm:$0xff] }
 0x3f9   :  { %v3682_v11 = vadd.f32 %v12820_v32, %v3646_v41  ;;  %9989 = vmatprep.mubr.msk.f32.mxu0 %vm980_vm2, %v3712_v28  ;;  %v8122_v3 = vld [vmem:[%s14702_s0 + $0x2a0] sm:$0xff]  ;;  %v8123_v33 = vld [vmem:[%s14702_s0 + $0x2a8] sm:$0xff]  ;;  %v8124_v48 = vld [vmem:[%s14702_s0 + $0x2b0] sm:$0xff] }
 0x3fa   :  { %v3715_v36 = vmax.f32 %v3683_v9, 0.0  ;;  %v8125_v62 = vld [vmem:[%s14702_s0 + $0x2b8] sm:$0xff]  ;;  %v8126_v58 = vld [vmem:[%s14702_s0 + $0x2c0] sm:$0xff]  ;;  %v8127_v61 = vld [vmem:[%s14702_s0 + $0x2c8] sm:$0xff] }
 0x3fb   :  { %9990 = vmatmul.mubr.msk.f32.gmra.mrb[28].mxu0 %vm980_vm2, %v3713_v16  ;;  %v3714_v42 = vmax.f32 %v3682_v11, 0.0  ;;  %v8128_v63 = vld [vmem:[%s14702_s0 + $0x2d0] sm:$0xff]  ;;  %v8129_v15 = vld [vmem:[%s14702_s0 + $0x2d8] sm:$0xff]  ;;  %v8130_v50 = vld [vmem:[%s14702_s0 + $0x2e0] sm:$0xff] }
 0x3fc   :  { %v8131_v1 = vld [vmem:[%s14702_s0 + $0x2e8] sm:$0xff]  ;;  %v8132_v55 = vld [vmem:[%s14702_s0 + $0x2f0] sm:$0xff]  ;;  %v8133_v23 = vld [vmem:[%s14702_s0 + $0x2f8] sm:$0xff] }
 0x3fd   :  { %9992 = vmatprep.mubr.msk.f32.mxu0 %vm980_vm2, %v3714_v42  ;;  %v14903_v46 = vld [vmem:[#allocation8_spill] sm:$0xff]  ;;  %v14904_v28 = vld [vmem:[#allocation9_spill] sm:$0xff]  ;;  %v14905_v41 = vld [vmem:[#allocation10_spill] sm:$0xff] }
 0x3fe   :  { %v13412_v16 = vld [vmem:[%s14707_s5] ss:$0 sm:$0xff] }
 0x3ff   :  { %9993 = vmatmul.mubr.msk.f32.gmra.mrb[30].mxu0 %vm980_vm2, %v3715_v36 }
 0x400   :  { %9997 = vmatprep.mubr.msk.f32.mxu0 %vm334_vm1, %v8086_v24 }
 0x403   :  { %9998 = vmatmul.mubr.msk.f32.vlgmr.msra.gmra.mrb[32].mxu0 %vm334_vm1, %v8087_v49 }
 0x404   :  { %10000 = vmatprep.mubr.msk.f32.mxu0 %vm334_vm1, %v8088_v34  ;;  %10792 = vmatpush3.bf16.msra.mxu0 %v11539_v13  ;;  %v8092_v13 = vld [vmem:[%s14702_s0 + $0x1b0] sm:$0xff] }
 0x405   :  { %10794 = vmatprep.subr.bf16.mxu0 %v14899_v14 }
 0x407   :  { %10001 = vmatmul.mubr.msk.f32.gmra.mrb[34].mxu0 %vm334_vm1, %v8089_v51 }
 0x408   :  { %10003 = vmatprep.mubr.msk.f32.mxu0 %vm334_vm1, %v8090_v31  ;;  %10796 = vmatpush3.bf16.msra.mxu0 %v14899_v14 }
 0x409   :  { %10798 = vmatprep.subr.bf16.mxu0 %v14900_v43 }
 0x40b   :  { %10004 = vmatmul.mubr.msk.f32.gmra.mrb[36].mxu0 %vm334_vm1, %v8091_v54 }
 0x40c   :  { %10006 = vmatprep.mubr.msk.f32.mxu0 %vm334_vm1, %v8092_v13  ;;  %10800 = vmatpush3.bf16.msra.mxu0 %v14900_v43 }
 0x40d   :  { %10802 = vmatprep.subr.bf16.mxu0 %v14901_v12 }
 0x40f   :  { %10007 = vmatmul.mubr.msk.f32.gmra.mrb[38].mxu0 %vm334_vm1, %v8093_v27 }
 0x410   :  { %10009 = vmatprep.mubr.msk.f32.mxu0 %vm334_vm1, %v8094_v18 }
 0x413   :  { %10010 = vmatmul.mubr.msk.f32.gmra.mrb[40].mxu0 %vm334_vm1, %v8095_v10 }
 0x414   :  { %10012 = vmatprep.mubr.msk.f32.mxu0 %vm334_vm1, %v8096_v57 }
 0x417   :  { %10013 = vmatmul.mubr.msk.f32.gmra.mrb[42].mxu0 %vm334_vm1, %v8097_v26 }
 0x418   :  { %10015 = vmatprep.mubr.msk.f32.mxu0 %vm334_vm1, %v8098_v25 }
 0x41b   :  { %10016 = vmatmul.mubr.msk.f32.gmra.mrb[44].mxu0 %vm334_vm1, %v8099_v2 }
 0x41c   :  { %10018 = vmatprep.mubr.msk.f32.mxu0 %vm334_vm1, %v8100_v47 }
 0x41f   :  { %10019 = vmatmul.mubr.msk.f32.gmra.mrb[46].mxu0 %vm334_vm1, %v8101_v22 }
 0x420   :  { %10021 = vmatprep.mubr.msk.f32.mxu0 %vm334_vm1, %v8102_v21 }
 0x423   :  { %10022 = vmatmul.mubr.msk.f32.gmra.mrb[48].mxu0 %vm334_vm1, %v8103_v53 }
 0x424   :  { %10024 = vmatprep.mubr.msk.f32.mxu0 %vm334_vm1, %v8104_v56 }
 0x427   :  { %10025 = vmatmul.mubr.msk.f32.gmra.mrb[50].mxu0 %vm334_vm1, %v8105_v20 }
 0x428   :  { %10027 = vmatprep.mubr.msk.f32.mxu0 %vm334_vm1, %v8106_v0 }
 0x42b   :  { %10028 = vmatmul.mubr.msk.f32.gmra.mrb[52].mxu0 %vm334_vm1, %v8107_v35 }
 0x42c   :  { %10030 = vmatprep.mubr.msk.f32.mxu0 %vm334_vm1, %v8108_v30 }
 0x42f   :  { %10031 = vmatmul.mubr.msk.f32.gmra.mrb[54].mxu0 %vm334_vm1, %v8109_v60 }
 0x430   :  { %10033 = vmatprep.mubr.msk.f32.mxu0 %vm334_vm1, %v8110_v8 }
 0x433   :  { %10034 = vmatmul.mubr.msk.f32.gmra.mrb[56].mxu0 %vm334_vm1, %v8111_v44 }
 0x434   :  { %10036 = vmatprep.mubr.msk.f32.mxu0 %vm334_vm1, %v8112_v38 }
 0x437   :  { %10037 = vmatmul.mubr.msk.f32.gmra.mrb[58].mxu0 %vm334_vm1, %v8113_v4 }
 0x438   :  { %10039 = vmatprep.mubr.msk.f32.mxu0 %vm334_vm1, %v8114_v29 }
 0x43b   :  { %10040 = vmatmul.mubr.msk.f32.gmra.mrb[60].mxu0 %vm334_vm1, %v8115_v17 }
 0x43c   :  { %10042 = vmatprep.mubr.msk.f32.mxu0 %vm334_vm1, %v8116_v7 }
 0x43f   :  { %10043 = vmatmul.mubr.msk.f32.gmra.mrb[62].mxu0 %vm334_vm1, %v8117_v59 }
 0x440   :  { %10045 = vmatprep.mubr.msk.f32.mxu0 %vm334_vm1, %v8118_v5 }
 0x443   :  { %10046 = vmatmul.mubr.msk.f32.gmra.mrb[64].mxu0 %vm334_vm1, %v8119_v6 }
 0x444   :  { %10048 = vmatprep.mubr.msk.f32.mxu0 %vm334_vm1, %v8120_v19 }
 0x447   :  { %10049 = vmatmul.mubr.msk.f32.gmra.mrb[66].mxu0 %vm334_vm1, %v8121_v37 }
 0x448   :  { %10051 = vmatprep.mubr.msk.f32.mxu0 %vm334_vm1, %v8122_v3 }
 0x44b   :  { %10052 = vmatmul.mubr.msk.f32.gmra.mrb[68].mxu0 %vm334_vm1, %v8123_v33 }
 0x44c   :  { %10054 = vmatprep.mubr.msk.f32.mxu0 %vm334_vm1, %v8124_v48 }
 0x44f   :  { %10055 = vmatmul.mubr.msk.f32.gmra.mrb[70].mxu0 %vm334_vm1, %v8125_v62 }
 0x450   :  { %10057 = vmatprep.mubr.msk.f32.mxu0 %vm334_vm1, %v8126_v58 }
 0x453   :  { %10058 = vmatmul.mubr.msk.f32.gmra.mrb[72].mxu0 %vm334_vm1, %v8127_v61 }
 0x454   :  { %10060 = vmatprep.mubr.msk.f32.mxu0 %vm334_vm1, %v8128_v63 }
 0x457   :  { %10061 = vmatmul.mubr.msk.f32.gmra.mrb[74].mxu0 %vm334_vm1, %v8129_v15 }
 0x458   :  { %10063 = vmatprep.mubr.msk.f32.mxu0 %vm334_vm1, %v8130_v50 }
 0x45b   :  { %10064 = vmatmul.mubr.msk.f32.gmra.mrb[76].mxu0 %vm334_vm1, %v8131_v1 }
 0x45c   :  { %10066 = vmatprep.mubr.msk.f32.mxu0 %vm334_vm1, %v8132_v55 }
 0x45f   :  { %10067 = vmatmul.mubr.msk.f32.gmra.mrb[78].mxu0 %vm334_vm1, %v8133_v23 }
 0x460   :  { %10081 = vmatprep.mubr.f32.mxu0 %v14902_v45 }
 0x463   :  { %10082 = vmatmul.mubr.f32.vlgmr.msra.gmra.mrb[80].mxu0 %v14902_v45 }
 0x464   :  { %10804 = vmatpush3.bf16.msra.mxu0 %v14901_v12  ;;  %10084 = vmatprep.mubr.f32.mxu0 %v14902_v45 }
 0x465   :  { %10806 = vmatprep.subr.bf16.mxu0 %v14903_v46 }
 0x467   :  { %10085 = vmatmul.mubr.f32.gmra.mrb[82].mxu0 %v14902_v45 }
 0x468   :  { %10087 = vmatprep.mubr.f32.mxu0 %v14902_v45  ;;  %10808 = vmatpush3.bf16.msra.mxu0 %v14903_v46 }
 0x469   :  { %10810 = vmatprep.subr.bf16.mxu0 %v14904_v28 }
 0x46b   :  { %10088 = vmatmul.mubr.f32.gmra.mrb[84].mxu0 %v14902_v45 }
 0x46c   :  { %10812 = vmatpush3.bf16.msra.mxu0 %v14904_v28 }
 0x46d   :  { %10814 = vmatprep.subr.bf16.mxu0 %v14905_v41 }
 0x495   :  { %v9949_v9 = vpop.f32.mrb[0].mxu0 }
 0x496   :  { %v3890_v11 = vadd.f32 %v9949_v9, %v13412_v16  ;;  %v3884_v42 = vpop.f32.mrb[1].mxu0 }
 0x497   :  { %v3885_v36 = vadd.f32 %v13412_v16, %v3884_v42 }
 0x498   :  { %4044 = vst [vmem:[#allocation2 + $0x8] sm:$0xff] %v3890_v11 }
 0x499   :  { %4043 = vst [vmem:[#allocation2] sm:$0xff] %v3885_v36  ;;  %v9952_v24 = vpop.f32.mrb[2].mxu0 }
 0x49a   :  { %v3900_v49 = vadd.f32 %v9952_v24, %v13412_v16  ;;  %v3894_v34 = vpop.f32.mrb[3].mxu0 }
 0x49b   :  { %v3895_v51 = vadd.f32 %v13412_v16, %v3894_v34 }
 0x49c   :  { %4046 = vst [vmem:[#allocation2 + $0x18] sm:$0xff] %v3900_v49 }
 0x49d   :  { %4045 = vst [vmem:[#allocation2 + $0x10] sm:$0xff] %v3895_v51  ;;  %v9955_v31 = vpop.f32.mrb[4].mxu0 }
 0x49e   :  { %v3910_v14 = vadd.f32 %v9955_v31, %v13412_v16  ;;  %v3904_v54 = vpop.f32.mrb[5].mxu0 }
 0x49f   :  { %v3905_v13 = vadd.f32 %v13412_v16, %v3904_v54 }
 0x4a0   :  { %4048 = vst [vmem:[#allocation2 + $0x28] sm:$0xff] %v3910_v14 }
 0x4a1   :  { %4047 = vst [vmem:[#allocation2 + $0x20] sm:$0xff] %v3905_v13  ;;  %v9958_v43 = vpop.f32.mrb[6].mxu0 }
 0x4a2   :  { %v3920_v27 = vadd.f32 %v9958_v43, %v13412_v16  ;;  %v3914_v18 = vpop.f32.mrb[7].mxu0 }
 0x4a3   :  { %v3915_v12 = vadd.f32 %v13412_v16, %v3914_v18 }
 0x4a4   :  { %4050 = vst [vmem:[#allocation2 + $0x38] sm:$0xff] %v3920_v27 }
 0x4a5   :  { %4049 = vst [vmem:[#allocation2 + $0x30] sm:$0xff] %v3915_v12  ;;  %v9961_v10 = vpop.f32.mrb[8].mxu0 }
 0x4a6   :  { %v3930_v57 = vadd.f32 %v9961_v10, %v13412_v16  ;;  %v3924_v26 = vpop.f32.mrb[9].mxu0  ;;  %v14906_v10 = vld [vmem:[#allocation11_spill] sm:$0xff] }
 0x4a7   :  { %v3925_v25 = vadd.f32 %v13412_v16, %v3924_v26 }
 0x4a8   :  { %4052 = vst [vmem:[#allocation2 + $0x48] sm:$0xff] %v3930_v57 }
 0x4a9   :  { %4051 = vst [vmem:[#allocation2 + $0x40] sm:$0xff] %v3925_v25  ;;  %v9964_v2 = vpop.f32.mrb[10].mxu0 }
 0x4aa   :  { %v3940_v47 = vadd.f32 %v9964_v2, %v13412_v16  ;;  %v3934_v22 = vpop.f32.mrb[11].mxu0 }
 0x4ab   :  { %v3935_v21 = vadd.f32 %v13412_v16, %v3934_v22 }
 0x4ac   :  { %4054 = vst [vmem:[#allocation2 + $0x58] sm:$0xff] %v3940_v47 }
 0x4ad   :  { %4053 = vst [vmem:[#allocation2 + $0x50] sm:$0xff] %v3935_v21 }
 0x4ae   :  { %v9967_v53 = vpop.f32.mrb[12].mxu0 }
 0x4af   :  { %v3950_v56 = vadd.f32 %v9967_v53, %v13412_v16  ;;  %v3944_v20 = vpop.f32.mrb[13].mxu0 }
 0x4b0   :  { %v3945_v0 = vadd.f32 %v13412_v16, %v3944_v20 }
 0x4b1   :  { %4056 = vst [vmem:[#allocation2 + $0x68] sm:$0xff] %v3950_v56 }
 0x4b2   :  { %4055 = vst [vmem:[#allocation2 + $0x60] sm:$0xff] %v3945_v0  ;;  %v9970_v35 = vpop.f32.mrb[14].mxu0 }
 0x4b3   :  { %v3960_v30 = vadd.f32 %v9970_v35, %v13412_v16  ;;  %v3954_v60 = vpop.f32.mrb[15].mxu0 }
 0x4b4   :  { %v3955_v8 = vadd.f32 %v13412_v16, %v3954_v60 }
 0x4b5   :  { %4058 = vst [vmem:[#allocation2 + $0x78] sm:$0xff] %v3960_v30 }
 0x4b6   :  { %4057 = vst [vmem:[#allocation2 + $0x70] sm:$0xff] %v3955_v8  ;;  %v9973_v44 = vpop.f32.mrb[16].mxu0 }
 0x4b7   :  { %v3970_v38 = vadd.f32 %v9973_v44, %v13412_v16  ;;  %v3964_v4 = vpop.f32.mrb[17].mxu0 }
 0x4b8   :  { %v3965_v29 = vadd.f32 %v13412_v16, %v3964_v4 }
 0x4b9   :  { %4060 = vst [vmem:[#allocation2 + $0x88] sm:$0xff] %v3970_v38 }
 0x4ba   :  { %4059 = vst [vmem:[#allocation2 + $0x80] sm:$0xff] %v3965_v29  ;;  %v9976_v17 = vpop.f32.mrb[18].mxu0 }
 0x4bb   :  { %v3980_v7 = vadd.f32 %v9976_v17, %v13412_v16  ;;  %v3974_v59 = vpop.f32.mrb[19].mxu0 }
 0x4bc   :  { %v3975_v5 = vadd.f32 %v13412_v16, %v3974_v59 }
 0x4bd   :  { %4062 = vst [vmem:[#allocation2 + $0x98] sm:$0xff] %v3980_v7 }
 0x4be   :  { %4061 = vst [vmem:[#allocation2 + $0x90] sm:$0xff] %v3975_v5  ;;  %v9979_v6 = vpop.f32.mrb[20].mxu0 }
 0x4bf   :  { %v3990_v19 = vadd.f32 %v9979_v6, %v13412_v16  ;;  %v3984_v37 = vpop.f32.mrb[21].mxu0 }
 0x4c0   :  { %v3985_v3 = vadd.f32 %v13412_v16, %v3984_v37 }
 0x4c1   :  { %4064 = vst [vmem:[#allocation2 + $0xa8] sm:$0xff] %v3990_v19 }
 0x4c2   :  { %4063 = vst [vmem:[#allocation2 + $0xa0] sm:$0xff] %v3985_v3  ;;  %v9982_v33 = vpop.f32.mrb[22].mxu0 }
 0x4c3   :  { %v4000_v48 = vadd.f32 %v9982_v33, %v13412_v16  ;;  %v3994_v62 = vpop.f32.mrb[23].mxu0 }
 0x4c4   :  { %v3995_v58 = vadd.f32 %v13412_v16, %v3994_v62 }
 0x4c5   :  { %4066 = vst [vmem:[#allocation2 + $0xb8] sm:$0xff] %v4000_v48 }
 0x4c6   :  { %4065 = vst [vmem:[#allocation2 + $0xb0] sm:$0xff] %v3995_v58  ;;  %v9985_v61 = vpop.f32.mrb[24].mxu0 }
 0x4c7   :  { %v4010_v63 = vadd.f32 %v9985_v61, %v13412_v16  ;;  %v4004_v15 = vpop.f32.mrb[25].mxu0 }
 0x4c8   :  { %v4005_v50 = vadd.f32 %v13412_v16, %v4004_v15 }
 0x4c9   :  { %4068 = vst [vmem:[#allocation2 + $0xc8] sm:$0xff] %v4010_v63 }
 0x4ca   :  { %4067 = vst [vmem:[#allocation2 + $0xc0] sm:$0xff] %v4005_v50  ;;  %v9988_v1 = vpop.f32.mrb[26].mxu0 }
 0x4cb   :  { %v4020_v55 = vadd.f32 %v9988_v1, %v13412_v16  ;;  %v4014_v23 = vpop.f32.mrb[27].mxu0 }
 0x4cc   :  { %v4015_v46 = vadd.f32 %v13412_v16, %v4014_v23 }
 0x4cd   :  { %4070 = vst [vmem:[#allocation2 + $0xd8] sm:$0xff] %v4020_v55 }
 0x4ce   :  { %4069 = vst [vmem:[#allocation2 + $0xd0] sm:$0xff] %v4015_v46  ;;  %v9991_v28 = vpop.f32.mrb[28].mxu0 }
 0x4cf   :  { %v4030_v9 = vadd.f32 %v9991_v28, %v13412_v16  ;;  %v4024_v11 = vpop.f32.mrb[29].mxu0 }
 0x4d0   :  { %v4025_v42 = vadd.f32 %v13412_v16, %v4024_v11 }
 0x4d1   :  { %4072 = vst [vmem:[#allocation2 + $0xe8] sm:$0xff] %v4030_v9 }
 0x4d2   :  { %4071 = vst [vmem:[#allocation2 + $0xe0] sm:$0xff] %v4025_v42  ;;  %v9994_v36 = vpop.f32.mrb[30].mxu0 }
 0x4d3   :  { %v4040_v24 = vadd.f32 %v9994_v36, %v13412_v16  ;;  %v4034_v49 = vpop.f32.mrb[31].mxu0 }
 0x4d4   :  { %v4035_v34 = vadd.f32 %v13412_v16, %v4034_v49 }
 0x4d5   :  { %4074 = vst [vmem:[#allocation2 + $0xf8] sm:$0xff] %v4040_v24 }
 0x4d6   :  { %4073 = vst [vmem:[#allocation2 + $0xf0] sm:$0xff] %v4035_v34  ;;  %v9999_v51 = vpop.f32.mrb[32].mxu0 }
 0x4d7   :  { %v4334_v31 = vpop.f32.mrb[33].mxu0 }
 0x4da   :  { %v10002_v14 = vpop.f32.mrb[34].mxu0 }
 0x4db   :  { %v4344_v54 = vpop.f32.mrb[35].mxu0 }
 0x4de   :  { %v10005_v13 = vpop.f32.mrb[36].mxu0 }
 0x4df   :  { %v4354_v43 = vpop.f32.mrb[37].mxu0 }
 0x4e2   :  { %v10008_v27 = vpop.f32.mrb[38].mxu0 }
 0x4e3   :  { %v4364_v18 = vpop.f32.mrb[39].mxu0 }
 0x4e6   :  { %v10011_v12 = vpop.f32.mrb[40].mxu0 }
 0x4e7   :  { %v13447_v57 = vadd.f32 %v10011_v12, %v14906_v10  ;;  %v4374_v26 = vpop.f32.mrb[41].mxu0 }
 0x4e8   :  { %v13450_v25 = vadd.f32 %v4374_v26, %v14906_v10 }
 0x4e9   :  { %v13456_v47 = vmax.f32 %v13447_v57, 0.0 }
 0x4ea   :  { %v13453_v16 = vmax.f32 %v13450_v25, 0.0  ;;  %v10014_v2 = vpop.f32.mrb[42].mxu0 }
 0x4eb   :  { %v13459_v22 = vadd.f32 %v10014_v2, %v14906_v10  ;;  %v4384_v21 = vpop.f32.mrb[43].mxu0 }
 0x4ec   :  { %v13462_v53 = vadd.f32 %v4384_v21, %v14906_v10  ;;  %10090 = vmatprep.mubr.msk.f32.mxu0 %vm980_vm2, %v13453_v16 }
 0x4ed   :  { %10091 = vmatmul.mubr.msk.f32.gmra.mrb[86].mxu0 %vm980_vm2, %v13456_v47  ;;  %v13472_v0 = vmax.f32 %v13459_v22, 0.0 }
 0x4ee   :  { %v13469_v56 = vmax.f32 %v13462_v53, 0.0  ;;  %v10017_v20 = vpop.f32.mrb[44].mxu0 }
 0x4ef   :  { %v13475_v35 = vadd.f32 %v10017_v20, %v14906_v10  ;;  %v4394_v30 = vpop.f32.mrb[45].mxu0 }
 0x4f0   :  { %v13478_v60 = vadd.f32 %v4394_v30, %v14906_v10  ;;  %10093 = vmatprep.mubr.msk.f32.mxu0 %vm980_vm2, %v13469_v56 }
 0x4f1   :  { %10094 = vmatmul.mubr.msk.f32.gmra.mrb[88].mxu0 %vm980_vm2, %v13472_v0  ;;  %v13488_v38 = vmax.f32 %v13475_v35, 0.0 }
 0x4f2   :  { %v13485_v8 = vmax.f32 %v13478_v60, 0.0  ;;  %v10020_v44 = vpop.f32.mrb[46].mxu0 }
 0x4f3   :  { %v13491_v4 = vadd.f32 %v10020_v44, %v14906_v10  ;;  %v4404_v29 = vpop.f32.mrb[47].mxu0 }
 0x4f4   :  { %v13494_v17 = vadd.f32 %v4404_v29, %v14906_v10  ;;  %10096 = vmatprep.mubr.msk.f32.mxu0 %vm980_vm2, %v13485_v8 }
 0x4f5   :  { %10097 = vmatmul.mubr.msk.f32.gmra.mrb[90].mxu0 %vm980_vm2, %v13488_v38  ;;  %v13504_v5 = vmax.f32 %v13491_v4, 0.0 }
 0x4f6   :  { %v13501_v7 = vmax.f32 %v13494_v17, 0.0  ;;  %v10023_v59 = vpop.f32.mrb[48].mxu0 }
 0x4f7   :  { %v13507_v6 = vadd.f32 %v10023_v59, %v14906_v10  ;;  %v4414_v19 = vpop.f32.mrb[49].mxu0 }
 0x4f8   :  { %v13510_v37 = vadd.f32 %v4414_v19, %v14906_v10  ;;  %10099 = vmatprep.mubr.msk.f32.mxu0 %vm980_vm2, %v13501_v7 }
 0x4f9   :  { %10100 = vmatmul.mubr.msk.f32.gmra.mrb[92].mxu0 %vm980_vm2, %v13504_v5  ;;  %v13520_v48 = vmax.f32 %v13507_v6, 0.0 }
 0x4fa   :  { %v13517_v3 = vmax.f32 %v13510_v37, 0.0  ;;  %v10026_v33 = vpop.f32.mrb[50].mxu0 }
 0x4fb   :  { %v13523_v62 = vadd.f32 %v10026_v33, %v14906_v10  ;;  %v4424_v58 = vpop.f32.mrb[51].mxu0 }
 0x4fc   :  { %v13526_v61 = vadd.f32 %v4424_v58, %v14906_v10  ;;  %10102 = vmatprep.mubr.msk.f32.mxu0 %vm980_vm2, %v13517_v3 }
 0x4fd   :  { %10103 = vmatmul.mubr.msk.f32.gmra.mrb[94].mxu0 %vm980_vm2, %v13520_v48  ;;  %v13536_v50 = vmax.f32 %v13523_v62, 0.0 }
 0x4fe   :  { %v13533_v63 = vmax.f32 %v13526_v61, 0.0  ;;  %v10029_v15 = vpop.f32.mrb[52].mxu0 }
 0x4ff   :  { %v13539_v1 = vadd.f32 %v10029_v15, %v14906_v10  ;;  %v4434_v55 = vpop.f32.mrb[53].mxu0 }
 0x500   :  { %v13542_v23 = vadd.f32 %v4434_v55, %v14906_v10  ;;  %10105 = vmatprep.mubr.msk.f32.mxu0 %vm980_vm2, %v13533_v63 }
 0x501   :  { %10106 = vmatmul.mubr.msk.f32.gmra.mrb[96].mxu0 %vm980_vm2, %v13536_v50  ;;  %v13552_v9 = vmax.f32 %v13539_v1, 0.0 }
 0x502   :  { %v13549_v46 = vmax.f32 %v13542_v23, 0.0  ;;  %v10032_v28 = vpop.f32.mrb[54].mxu0 }
 0x503   :  { %v13555_v11 = vadd.f32 %v10032_v28, %v14906_v10  ;;  %v4444_v42 = vpop.f32.mrb[55].mxu0 }
 0x504   :  { %v13558_v36 = vadd.f32 %v4444_v42, %v14906_v10  ;;  %10108 = vmatprep.mubr.msk.f32.mxu0 %vm980_vm2, %v13549_v46 }
 0x505   :  { %10109 = vmatmul.mubr.msk.f32.gmra.mrb[98].mxu0 %vm980_vm2, %v13552_v9  ;;  %v13568_v34 = vmax.f32 %v13555_v11, 0.0 }
 0x506   :  { %v13565_v24 = vmax.f32 %v13558_v36, 0.0  ;;  %v10035_v49 = vpop.f32.mrb[56].mxu0 }
 0x507   :  { %v13571_v51 = vadd.f32 %v10035_v49, %v14906_v10  ;;  %v4454_v31 = vpop.f32.mrb[57].mxu0 }
 0x508   :  { %v13574_v14 = vadd.f32 %v4454_v31, %v14906_v10  ;;  %10111 = vmatprep.mubr.msk.f32.mxu0 %vm980_vm2, %v13565_v24 }
 0x509   :  { %10112 = vmatmul.mubr.msk.f32.gmra.mrb[100].mxu0 %vm980_vm2, %v13568_v34  ;;  %v13584_v43 = vmax.f32 %v13571_v51, 0.0 }
 0x50a   :  { %v13581_v54 = vmax.f32 %v13574_v14, 0.0  ;;  %v10038_v13 = vpop.f32.mrb[58].mxu0 }
 0x50b   :  { %v13587_v27 = vadd.f32 %v10038_v13, %v14906_v10  ;;  %v4464_v18 = vpop.f32.mrb[59].mxu0 }
 0x50c   :  { %v13590_v12 = vadd.f32 %v4464_v18, %v14906_v10  ;;  %10114 = vmatprep.mubr.msk.f32.mxu0 %vm980_vm2, %v13581_v54 }
 0x50d   :  { %14907 = vst [vmem:[#allocation12_spill] sm:$0xff] %v13587_v27  ;;  %10115 = vmatmul.mubr.msk.f32.gmra.mrb[102].mxu0 %vm980_vm2, %v13584_v43  ;;  %v13600_v21 = vmax.f32 %v13587_v27, 0.0 }
 0x50e   :  { %14908 = vst [vmem:[#allocation13_spill] sm:$0xff] %v13590_v12  ;;  %v13597_v26 = vmax.f32 %v13590_v12, 0.0  ;;  %v10041_v2 = vpop.f32.mrb[60].mxu0 }
 0x50f   :  { %v13603_v20 = vadd.f32 %v10041_v2, %v14906_v10  ;;  %v4474_v30 = vpop.f32.mrb[61].mxu0 }
 0x510   :  { %v13606_v44 = vadd.f32 %v4474_v30, %v14906_v10  ;;  %10117 = vmatprep.mubr.msk.f32.mxu0 %vm980_vm2, %v13597_v26 }
 0x511   :  { %14909 = vst [vmem:[#allocation14_spill] sm:$0xff] %v13603_v20  ;;  %10118 = vmatmul.mubr.msk.f32.gmra.mrb[104].mxu0 %vm980_vm2, %v13600_v21  ;;  %v13616_v19 = vmax.f32 %v13603_v20, 0.0  ;;  %v14917_v20 = vld [vmem:[#allocation21_spill] sm:$0xff] }
 0x512   :  { %14910 = vst [vmem:[#allocation15_spill] sm:$0xff] %v13606_v44  ;;  %v13613_v29 = vmax.f32 %v13606_v44, 0.0  ;;  %v10044_v59 = vpop.f32.mrb[62].mxu0 }
 0x513   :  { %v13619_v33 = vadd.f32 %v10044_v59, %v14906_v10  ;;  %v4484_v58 = vpop.f32.mrb[63].mxu0 }
 0x514   :  { %v13622_v15 = vadd.f32 %v4484_v58, %v14906_v10  ;;  %10120 = vmatprep.mubr.msk.f32.mxu0 %vm980_vm2, %v13613_v29 }
 0x515   :  { %14911 = vst [vmem:[#allocation16_spill] sm:$0xff] %v13619_v33  ;;  %10121 = vmatmul.mubr.msk.f32.gmra.mrb[106].mxu0 %vm980_vm2, %v13616_v19  ;;  %v13632_v42 = vmax.f32 %v13619_v33, 0.0  ;;  %v14916_v33 = vld [vmem:[#allocation20_spill] sm:$0xff] }
 0x516   :  { %14912 = vst [vmem:[#allocation28_spill] sm:$0xff] %v13622_v15  ;;  %v13629_v55 = vmax.f32 %v13622_v15, 0.0  ;;  %v10047_v28 = vpop.f32.mrb[64].mxu0 }
 0x517   :  { %v13635_v49 = vadd.f32 %v10047_v28, %v14906_v10  ;;  %v4494_v31 = vpop.f32.mrb[65].mxu0 }
 0x518   :  { %v13638_v13 = vadd.f32 %v4494_v31, %v14906_v10  ;;  %10123 = vmatprep.mubr.msk.f32.mxu0 %vm980_vm2, %v13629_v55 }
 0x519   :  { %14913 = vst [vmem:[#allocation27_spill] sm:$0xff] %v13635_v49  ;;  %10124 = vmatmul.mubr.msk.f32.gmra.mrb[108].mxu0 %vm980_vm2, %v13632_v42  ;;  %v13650_v30 = vmax.f32 %v13635_v49, 0.0 }
 0x51a   :  { %14914 = vst [vmem:[#allocation35_spill] sm:$0xff] %v13638_v13  ;;  %v13645_v18 = vmax.f32 %v13638_v13, 0.0  ;;  %v13647_v2 = vpop.f32.mrb[66].mxu0  ;;  %v14915_v13 = vld [vmem:[#allocation19_spill] sm:$0xff] }
 0x51b   :  { %v13652_v59 = vpop.f32.mrb[67].mxu0 }
 0x51c   :  { %10126 = vmatprep.mubr.msk.f32.mxu0 %vm980_vm2, %v13645_v18 }
 0x51d   :  { %10127 = vmatmul.mubr.msk.f32.gmra.mrb[110].mxu0 %vm980_vm2, %v13650_v30 }
 0x51e   :  { %v13658_v58 = vpop.f32.mrb[68].mxu0  ;;  %10141 = vmatprep.mubr.f32.mxu0 %v14902_v45 }
 0x51f   :  { %v13661_v28 = vpop.f32.mrb[69].mxu0 }
 0x521   :  { %10142 = vmatmul.mubr.f32.vlgmr.msra.gmra.mrb[80].mxu0 %v14902_v45 }
 0x522   :  { %10816 = vmatpush3.bf16.msra.mxu0 %v14905_v41  ;;  %10144 = vmatprep.mubr.f32.mxu0 %v14902_v45  ;;  %v13666_v31 = vpop.f32.mrb[70].mxu0 }
 0x523   :  { %10818 = vmatprep.subr.bf16.mxu0 %v14915_v13  ;;  %v13669_v49 = vpop.f32.mrb[71].mxu0 }
 0x525   :  { %10145 = vmatmul.mubr.f32.gmra.mrb[82].mxu0 %v14902_v45 }
 0x526   :  { %10147 = vmatprep.mubr.f32.mxu0 %v14902_v45  ;;  %10820 = vmatpush3.bf16.msra.mxu0 %v14915_v13  ;;  %v10059_v15 = vpop.f32.mrb[72].mxu0 }
 0x527   :  { %10822 = vmatprep.subr.bf16.mxu0 %v14916_v33  ;;  %v4534_v44 = vpop.f32.mrb[73].mxu0 }
 0x529   :  { %10148 = vmatmul.mubr.f32.gmra.mrb[84].mxu0 %v14902_v45 }
 0x52a   :  { %10150 = vmatprep.mubr.f32.mxu0 %v14902_v45  ;;  %10824 = vmatpush3.bf16.msra.mxu0 %v14916_v33  ;;  %v10062_v41 = vpop.f32.mrb[74].mxu0  ;;  %v13786_v33 = vadd.f32 %v13652_v59, %v14906_v10 }
 0x52b   :  { %10826 = vmatprep.subr.bf16.mxu0 %v14917_v20  ;;  %v4544_v12 = vpop.f32.mrb[75].mxu0  ;;  %v13794_v41 = vadd.f32 %v13647_v2, %v14906_v10  ;;  %v14923_v2 = vld [vmem:[#allocation29_spill] sm:$0xff] }
 0x52c   :  { %v14919_v12 = vld [vmem:[#allocation23_spill] sm:$0xff]  ;;  %14921 = vst [vmem:[#allocation34_spill] sm:$0xff] %v13786_v33 }
 0x52d   :  { %10151 = vmatmul.mubr.f32.gmra.mrb[86].mxu0 %v14902_v45  ;;  %14922 = vst [vmem:[#allocation17_spill] sm:$0xff] %v13794_v41  ;;  %v13804_v59 = vmax.f32 %v13794_v41, 0.0 }
 0x52e   :  { %10153 = vmatprep.mubr.msk.f32.mxu0 %vm980_vm2, %v13453_v16  ;;  %v10065_v13 = vpop.f32.mrb[76].mxu0 }
 0x52f   :  { %v4554_v15 = vpop.f32.mrb[77].mxu0  ;;  %v13797_v13 = vmax.f32 %v13786_v33, 0.0 }
 0x530   :  { %v14924_v15 = vld [vmem:[#allocation30_spill] sm:$0xff] }
 0x531   :  { %10154 = vmatmul.mubr.msk.f32.gmra.mrb[88].mxu0 %vm980_vm2, %v13456_v47 }
 0x532   :  { %10156 = vmatprep.mubr.msk.f32.mxu0 %vm980_vm2, %v13469_v56  ;;  %v10068_v44 = vpop.f32.mrb[78].mxu0 }
 0x533   :  { %v4564_v27 = vpop.f32.mrb[79].mxu0  ;;  %v14925_v44 = vld [vmem:[#allocation31_spill] sm:$0xff] }
 0x534   :  { %v14918_v27 = vld [vmem:[#allocation22_spill] sm:$0xff] }
 0x535   :  { %10157 = vmatmul.mubr.msk.f32.gmra.mrb[90].mxu0 %vm980_vm2, %v13472_v0 }
 0x536   :  { %10159 = vmatprep.mubr.msk.f32.mxu0 %vm980_vm2, %v13485_v8 }
 0x539   :  { %10160 = vmatmul.mubr.msk.f32.gmra.mrb[92].mxu0 %vm980_vm2, %v13488_v38 }
 0x53a   :  { %10162 = vmatprep.mubr.msk.f32.mxu0 %vm980_vm2, %v13501_v7 }
 0x53d   :  { %10163 = vmatmul.mubr.msk.f32.gmra.mrb[94].mxu0 %vm980_vm2, %v13504_v5 }
 0x53e   :  { %10165 = vmatprep.mubr.msk.f32.mxu0 %vm980_vm2, %v13517_v3 }
 0x541   :  { %10166 = vmatmul.mubr.msk.f32.gmra.mrb[96].mxu0 %vm980_vm2, %v13520_v48 }
 0x542   :  { %10168 = vmatprep.mubr.msk.f32.mxu0 %vm980_vm2, %v13533_v63 }
 0x545   :  { %10169 = vmatmul.mubr.msk.f32.gmra.mrb[98].mxu0 %vm980_vm2, %v13536_v50 }
 0x546   :  { %10171 = vmatprep.mubr.msk.f32.mxu0 %vm980_vm2, %v13549_v46 }
 0x549   :  { %10172 = vmatmul.mubr.msk.f32.gmra.mrb[100].mxu0 %vm980_vm2, %v13552_v9 }
 0x54a   :  { %10174 = vmatprep.mubr.msk.f32.mxu0 %vm980_vm2, %v13565_v24 }
 0x54d   :  { %10175 = vmatmul.mubr.msk.f32.gmra.mrb[102].mxu0 %vm980_vm2, %v13568_v34 }
 0x54e   :  { %10177 = vmatprep.mubr.msk.f32.mxu0 %vm980_vm2, %v13581_v54 }
 0x551   :  { %10178 = vmatmul.mubr.msk.f32.gmra.mrb[104].mxu0 %vm980_vm2, %v13584_v43 }
 0x552   :  { %10180 = vmatprep.mubr.msk.f32.mxu0 %vm980_vm2, %v13597_v26 }
 0x555   :  { %10181 = vmatmul.mubr.msk.f32.gmra.mrb[106].mxu0 %vm980_vm2, %v13600_v21 }
 0x556   :  { %10183 = vmatprep.mubr.msk.f32.mxu0 %vm980_vm2, %v13613_v29 }
 0x559   :  { %10184 = vmatmul.mubr.msk.f32.gmra.mrb[108].mxu0 %vm980_vm2, %v13616_v19 }
 0x55a   :  { %10186 = vmatprep.mubr.msk.f32.mxu0 %vm980_vm2, %v13629_v55 }
 0x55d   :  { %10187 = vmatmul.mubr.msk.f32.gmra.mrb[110].mxu0 %vm980_vm2, %v13632_v42 }
 0x55e   :  { %10201 = vmatprep.mubr.f32.mxu0 %v14902_v45 }
 0x561   :  { %10202 = vmatmul.mubr.f32.vlgmr.msra.gmra.mrb[80].mxu0 %v14902_v45 }
 0x562   :  { %10828 = vmatpush3.bf16.msra.mxu0 %v14917_v20  ;;  %10204 = vmatprep.mubr.f32.mxu0 %v14902_v45  ;;  %v14920_v20 = vld [vmem:[#allocation24_spill] sm:$0xff] }
 0x563   :  { %10830 = vmatprep.subr.bf16.mxu0 %v14918_v27 }
 0x565   :  { %10205 = vmatmul.mubr.f32.gmra.mrb[82].mxu0 %v14902_v45 }
 0x566   :  { %10207 = vmatprep.mubr.msk.f32.mxu0 %vm980_vm2, %v13453_v16  ;;  %10832 = vmatpush3.bf16.msra.mxu0 %v14918_v27  ;;  %v13868_v27 = vadd.f32 %v13661_v28, %v14906_v10 }
 0x567   :  { %10834 = vmatprep.subr.bf16.mxu0 %v14919_v12 }
 0x568   :  { %14926 = vst [vmem:[#allocation18_spill] sm:$0xff] %v13868_v27 }
 0x569   :  { %10208 = vmatmul.mubr.msk.f32.gmra.mrb[84].mxu0 %vm980_vm2, %v13456_v47 }
 0x56a   :  { %10210 = vmatprep.mubr.msk.f32.mxu0 %vm980_vm2, %v13469_v56  ;;  %10836 = vmatpush3.bf16.msra.mxu0 %v14919_v12  ;;  %v13876_v12 = vadd.f32 %v13658_v58, %v14906_v10  ;;  %v14928_v58 = vld [vmem:[#allocation36_spill] sm:$0xff] }
 0x56b   :  { %10838 = vmatprep.subr.bf16.mxu0 %v14920_v20 }
 0x56c   :  { %14927 = vst [vmem:[#allocation42_spill] sm:$0xff] %v13876_v12  ;;  %v13886_v28 = vmax.f32 %v13876_v12, 0.0  ;;  %v7103_v12 = vmax.f32 %v13488_v38, %v13472_v0 }
 0x56d   :  { %10211 = vmatmul.mubr.msk.f32.gmra.mrb[86].mxu0 %vm980_vm2, %v13472_v0 }
 0x56e   :  { %10213 = vmatprep.mubr.msk.f32.mxu0 %vm980_vm2, %v13485_v8 }
 0x571   :  { %10214 = vmatmul.mubr.msk.f32.gmra.mrb[88].mxu0 %vm980_vm2, %v13488_v38 }
 0x572   :  { %10216 = vmatprep.mubr.msk.f32.mxu0 %vm980_vm2, %v13501_v7 }
 0x575   :  { %10217 = vmatmul.mubr.msk.f32.gmra.mrb[90].mxu0 %vm980_vm2, %v13504_v5 }
 0x576   :  { %10219 = vmatprep.mubr.msk.f32.mxu0 %vm980_vm2, %v13517_v3 }
 0x579   :  { %10220 = vmatmul.mubr.msk.f32.gmra.mrb[92].mxu0 %vm980_vm2, %v13520_v48 }
 0x57a   :  { %10222 = vmatprep.mubr.msk.f32.mxu0 %vm980_vm2, %v13533_v63 }
 0x57d   :  { %10223 = vmatmul.mubr.msk.f32.gmra.mrb[94].mxu0 %vm980_vm2, %v13536_v50 }
 0x57e   :  { %10225 = vmatprep.mubr.msk.f32.mxu0 %vm980_vm2, %v13549_v46 }
 0x581   :  { %10226 = vmatmul.mubr.msk.f32.gmra.mrb[96].mxu0 %vm980_vm2, %v13552_v9 }
 0x582   :  { %10228 = vmatprep.mubr.msk.f32.mxu0 %vm980_vm2, %v13565_v24 }
 0x585   :  { %10229 = vmatmul.mubr.msk.f32.gmra.mrb[98].mxu0 %vm980_vm2, %v13568_v34 }
 0x586   :  { %10231 = vmatprep.mubr.msk.f32.mxu0 %vm980_vm2, %v13581_v54 }
 0x589   :  { %10232 = vmatmul.mubr.msk.f32.gmra.mrb[100].mxu0 %vm980_vm2, %v13584_v43 }
 0x58a   :  { %10234 = vmatprep.mubr.msk.f32.mxu0 %vm980_vm2, %v13597_v26 }
 0x58d   :  { %10235 = vmatmul.mubr.msk.f32.gmra.mrb[102].mxu0 %vm980_vm2, %v13600_v21 }
 0x58e   :  { %10237 = vmatprep.mubr.msk.f32.mxu0 %vm980_vm2, %v13613_v29 }
 0x591   :  { %10238 = vmatmul.mubr.msk.f32.gmra.mrb[104].mxu0 %vm980_vm2, %v13616_v19 }
 0x592   :  { %10240 = vmatprep.mubr.msk.f32.mxu0 %vm980_vm2, %v13629_v55 }
 0x595   :  { %10241 = vmatmul.mubr.msk.f32.gmra.mrb[106].mxu0 %vm980_vm2, %v13632_v42 }
 0x596   :  { %10243 = vmatprep.mubr.msk.f32.mxu0 %vm980_vm2, %v13645_v18 }
 0x599   :  { %10244 = vmatmul.mubr.msk.f32.gmra.mrb[108].mxu0 %vm980_vm2, %v13650_v30 }
 0x59a   :  { %10246 = vmatprep.mubr.msk.f32.mxu0 %vm980_vm2, %v13797_v13 }
 0x59d   :  { %10247 = vmatmul.mubr.msk.f32.gmra.mrb[110].mxu0 %vm980_vm2, %v13804_v59 }
 0x59e   :  { %10261 = vmatprep.mubr.f32.mxu0 %v14902_v45 }
 0x5a1   :  { %10262 = vmatmul.mubr.f32.vlgmr.msra.gmra.mrb[80].mxu0 %v14902_v45 }
 0x5a2   :  { %10840 = vmatpush3.bf16.msra.mxu0 %v14920_v20  ;;  %10264 = vmatprep.mubr.msk.f32.mxu0 %vm980_vm2, %v13453_v16  ;;  %v13879_v20 = vmax.f32 %v13868_v27, 0.0 }
 0x5a3   :  { %10842 = vmatprep.subr.bf16.mxu0 %v14923_v2 }
 0x5a5   :  { %10265 = vmatmul.mubr.msk.f32.gmra.mrb[82].mxu0 %vm980_vm2, %v13456_v47 }
 0x5a6   :  { %10267 = vmatprep.mubr.msk.f32.mxu0 %vm980_vm2, %v13469_v56  ;;  %10844 = vmatpush3.bf16.msra.mxu0 %v14923_v2  ;;  %v14929_v2 = vld [vmem:[#allocation37_spill] sm:$0xff] }
 0x5a7   :  { %10846 = vmatprep.subr.bf16.mxu0 %v14924_v15 }
 0x5a9   :  { %10268 = vmatmul.mubr.msk.f32.gmra.mrb[84].mxu0 %vm980_vm2, %v13472_v0 }
 0x5aa   :  { %10270 = vmatprep.mubr.msk.f32.mxu0 %vm980_vm2, %v13485_v8  ;;  %10848 = vmatpush3.bf16.msra.mxu0 %v14924_v15  ;;  %v14930_v15 = vld [vmem:[#allocation38_spill] sm:$0xff] }
 0x5ab   :  { %10850 = vmatprep.subr.bf16.mxu0 %v14925_v44 }
 0x5ad   :  { %10271 = vmatmul.mubr.msk.f32.gmra.mrb[86].mxu0 %vm980_vm2, %v13488_v38 }
 0x5ae   :  { %10273 = vmatprep.mubr.msk.f32.mxu0 %vm980_vm2, %v13501_v7 }
 0x5b1   :  { %10274 = vmatmul.mubr.msk.f32.gmra.mrb[88].mxu0 %vm980_vm2, %v13504_v5 }
 0x5b2   :  { %10276 = vmatprep.mubr.msk.f32.mxu0 %vm980_vm2, %v13517_v3 }
 0x5b5   :  { %10277 = vmatmul.mubr.msk.f32.gmra.mrb[90].mxu0 %vm980_vm2, %v13520_v48 }
 0x5b6   :  { %10279 = vmatprep.mubr.msk.f32.mxu0 %vm980_vm2, %v13533_v63 }
 0x5b9   :  { %10280 = vmatmul.mubr.msk.f32.gmra.mrb[92].mxu0 %vm980_vm2, %v13536_v50 }
 0x5ba   :  { %10282 = vmatprep.mubr.msk.f32.mxu0 %vm980_vm2, %v13549_v46 }
 0x5bd   :  { %10283 = vmatmul.mubr.msk.f32.gmra.mrb[94].mxu0 %vm980_vm2, %v13552_v9 }
 0x5be   :  { %10285 = vmatprep.mubr.msk.f32.mxu0 %vm980_vm2, %v13565_v24 }
 0x5c1   :  { %10286 = vmatmul.mubr.msk.f32.gmra.mrb[96].mxu0 %vm980_vm2, %v13568_v34 }
 0x5c2   :  { %10288 = vmatprep.mubr.msk.f32.mxu0 %vm980_vm2, %v13581_v54 }
 0x5c5   :  { %10289 = vmatmul.mubr.msk.f32.gmra.mrb[98].mxu0 %vm980_vm2, %v13584_v43 }
 0x5c6   :  { %10291 = vmatprep.mubr.msk.f32.mxu0 %vm980_vm2, %v13597_v26 }
 0x5c9   :  { %10292 = vmatmul.mubr.msk.f32.gmra.mrb[100].mxu0 %vm980_vm2, %v13600_v21 }
 0x5ca   :  { %10294 = vmatprep.mubr.msk.f32.mxu0 %vm980_vm2, %v13613_v29 }
 0x5cd   :  { %10295 = vmatmul.mubr.msk.f32.gmra.mrb[102].mxu0 %vm980_vm2, %v13616_v19 }
 0x5ce   :  { %10297 = vmatprep.mubr.msk.f32.mxu0 %vm980_vm2, %v13629_v55 }
 0x5d1   :  { %10298 = vmatmul.mubr.msk.f32.gmra.mrb[104].mxu0 %vm980_vm2, %v13632_v42 }
 0x5d2   :  { %10300 = vmatprep.mubr.msk.f32.mxu0 %vm980_vm2, %v13645_v18 }
 0x5d5   :  { %10301 = vmatmul.mubr.msk.f32.gmra.mrb[106].mxu0 %vm980_vm2, %v13650_v30 }
 0x5d6   :  { %10303 = vmatprep.mubr.msk.f32.mxu0 %vm980_vm2, %v13797_v13 }
 0x5d9   :  { %10304 = vmatmul.mubr.msk.f32.gmra.mrb[108].mxu0 %vm980_vm2, %v13804_v59 }
 0x5da   :  { %10306 = vmatprep.mubr.msk.f32.mxu0 %vm980_vm2, %v13879_v20 }
 0x5dd   :  { %10307 = vmatmul.mubr.msk.f32.gmra.mrb[110].mxu0 %vm980_vm2, %v13886_v28 }
 0x5de   :  { %10321 = vmatprep.mubr.msk.f32.mxu0 %vm980_vm2, %v13453_v16 }
 0x5e1   :  { %10322 = vmatmul.mubr.msk.f32.vlgmr.msra.gmra.mrb[80].mxu0 %vm980_vm2, %v13456_v47 }
 0x5e2   :  { %10852 = vmatpush3.bf16.msra.mxu0 %v14925_v44  ;;  %10324 = vmatprep.mubr.msk.f32.mxu0 %vm980_vm2, %v13469_v56  ;;  %v13952_v44 = vadd.f32 %v13669_v49, %v14906_v10 }
 0x5e3   :  { %10854 = vmatprep.subr.bf16.mxu0 %v14928_v58 }
 0x5e4   :  { %14931 = vst [vmem:[#allocation41_spill] sm:$0xff] %v13952_v44 }
 0x5e5   :  { %10325 = vmatmul.mubr.msk.f32.gmra.mrb[82].mxu0 %vm980_vm2, %v13472_v0 }
 0x5e6   :  { %10327 = vmatprep.mubr.msk.f32.mxu0 %vm980_vm2, %v13485_v8  ;;  %10856 = vmatpush3.bf16.msra.mxu0 %v14928_v58  ;;  %v13960_v58 = vadd.f32 %v13666_v31, %v14906_v10  ;;  %v14935_v10 = vld [vmem:[#allocation43_spill] sm:$0xff]  ;;  %v14936_v31 = vld [vmem:[#allocation44_spill] sm:$0xff] }
 0x5e7   :  { %10858 = vmatprep.subr.bf16.mxu0 %v14929_v2 }
 0x5e8   :  { %14932 = vst [vmem:[#allocation26_spill] sm:$0xff] %v13960_v58  ;;  %v13970_v49 = vmax.f32 %v13960_v58, 0.0  ;;  %v7227_v58 = vsel %vm12739_vm7, %v13447_v57, 0.0  ;;  %v7102_v57 = vmax.f32 %v13485_v8, %v13469_v56 }
 0x5e9   :  { %10328 = vmatmul.mubr.msk.f32.gmra.mrb[84].mxu0 %vm980_vm2, %v13488_v38 }
 0x5ea   :  { %10330 = vmatprep.mubr.msk.f32.mxu0 %vm980_vm2, %v13501_v7  ;;  %10860 = vmatpush3.bf16.msra.mxu0 %v14929_v2  ;;  %v13963_v2 = vmax.f32 %v13952_v44, 0.0  ;;  %14934 = vst [vmem:[#allocation33_spill] sm:$0xff] %v13970_v49  ;;  %v7100_v44 = vmax.f32 %v13469_v56, %v13453_v16 }
 0x5eb   :  { %10862 = vmatprep.subr.bf16.mxu0 %v14930_v15 }
 0x5ec   :  { %14933 = vst [vmem:[#allocation25_spill] sm:$0xff] %v13963_v2  ;;  %v7132_v33 = vmax.f32 %v7100_v44, %v13485_v8 }
 0x5ed   :  { %10331 = vmatmul.mubr.msk.f32.gmra.mrb[86].mxu0 %vm980_vm2, %v13504_v5 }
 0x5ee   :  { %10333 = vmatprep.mubr.msk.f32.mxu0 %vm980_vm2, %v13517_v3 }
 0x5f1   :  { %10334 = vmatmul.mubr.msk.f32.gmra.mrb[88].mxu0 %vm980_vm2, %v13520_v48 }
 0x5f2   :  { %10336 = vmatprep.mubr.msk.f32.mxu0 %vm980_vm2, %v13533_v63 }
 0x5f5   :  { %10337 = vmatmul.mubr.msk.f32.gmra.mrb[90].mxu0 %vm980_vm2, %v13536_v50 }
 0x5f6   :  { %10339 = vmatprep.mubr.msk.f32.mxu0 %vm980_vm2, %v13549_v46 }
 0x5f9   :  { %10340 = vmatmul.mubr.msk.f32.gmra.mrb[92].mxu0 %vm980_vm2, %v13552_v9 }
 0x5fa   :  { %10342 = vmatprep.mubr.msk.f32.mxu0 %vm980_vm2, %v13565_v24 }
 0x5fd   :  { %10343 = vmatmul.mubr.msk.f32.gmra.mrb[94].mxu0 %vm980_vm2, %v13568_v34 }
 0x5fe   :  { %10345 = vmatprep.mubr.msk.f32.mxu0 %vm980_vm2, %v13581_v54 }
 0x601   :  { %10346 = vmatmul.mubr.msk.f32.gmra.mrb[96].mxu0 %vm980_vm2, %v13584_v43 }
 0x602   :  { %10348 = vmatprep.mubr.msk.f32.mxu0 %vm980_vm2, %v13597_v26 }
 0x605   :  { %10349 = vmatmul.mubr.msk.f32.gmra.mrb[98].mxu0 %vm980_vm2, %v13600_v21 }
 0x606   :  { %10351 = vmatprep.mubr.msk.f32.mxu0 %vm980_vm2, %v13613_v29 }
 0x609   :  { %10352 = vmatmul.mubr.msk.f32.gmra.mrb[100].mxu0 %vm980_vm2, %v13616_v19 }
 0x60a   :  { %10354 = vmatprep.mubr.msk.f32.mxu0 %vm980_vm2, %v13629_v55 }
 0x60d   :  { %10355 = vmatmul.mubr.msk.f32.gmra.mrb[102].mxu0 %vm980_vm2, %v13632_v42 }
 0x60e   :  { %10357 = vmatprep.mubr.msk.f32.mxu0 %vm980_vm2, %v13645_v18 }
 0x611   :  { %10358 = vmatmul.mubr.msk.f32.gmra.mrb[104].mxu0 %vm980_vm2, %v13650_v30 }
 0x612   :  { %10360 = vmatprep.mubr.msk.f32.mxu0 %vm980_vm2, %v13797_v13 }
 0x615   :  { %10361 = vmatmul.mubr.msk.f32.gmra.mrb[106].mxu0 %vm980_vm2, %v13804_v59 }
 0x616   :  { %10363 = vmatprep.mubr.msk.f32.mxu0 %vm980_vm2, %v13879_v20 }
 0x619   :  { %10364 = vmatmul.mubr.msk.f32.gmra.mrb[108].mxu0 %vm980_vm2, %v13886_v28 }
 0x61a   :  { %10366 = vmatprep.mubr.msk.f32.mxu0 %vm980_vm2, %v13963_v2 }
 0x61d   :  { %10367 = vmatmul.mubr.msk.f32.gmra.mrb[110].mxu0 %vm980_vm2, %v13970_v49 }
 0x61e   :  { %10381 = vmatprep.mubr.msk.f32.mxu0 %vm980_vm2, %v13469_v56 }
 0x621   :  { %10382 = vmatmul.mubr.msk.f32.vlgmr.msra.gmra.mrb[80].mxu0 %vm980_vm2, %v13472_v0 }
 0x622   :  { %10864 = vmatpush3.bf16.msra.mxu0 %v14930_v15  ;;  %10384 = vmatprep.mubr.msk.f32.mxu0 %vm980_vm2, %v13485_v8  ;;  %v14937_v15 = vld [vmem:[#allocation45_spill] sm:$0xff] }
 0x623   :  { %10866 = vmatprep.subr.bf16.mxu0 %v14935_v10 }
 0x625   :  { %10385 = vmatmul.mubr.msk.f32.gmra.mrb[82].mxu0 %vm980_vm2, %v13488_v38 }
 0x626   :  { %10387 = vmatprep.mubr.msk.f32.mxu0 %vm980_vm2, %v13501_v7  ;;  %10868 = vmatpush3.bf16.msra.mxu0 %v14935_v10  ;;  %v14938_v10 = vld [vmem:[#allocation46_spill] sm:$0xff] }
 0x627   :  { %10870 = vmatprep.subr.bf16.mxu0 %v14936_v31 }
 0x629   :  { %10388 = vmatmul.mubr.msk.f32.gmra.mrb[84].mxu0 %vm980_vm2, %v13504_v5 }
 0x62a   :  { %10390 = vmatprep.mubr.msk.f32.mxu0 %vm980_vm2, %v13517_v3  ;;  %10872 = vmatpush3.bf16.msra.mxu0 %v14936_v31  ;;  %v14939_v31 = vld [vmem:[#allocation47_spill] sm:$0xff] }
 0x62b   :  { %10874 = vmatprep.subr.bf16.mxu0 %v14937_v15 }
 0x62d   :  { %10391 = vmatmul.mubr.msk.f32.gmra.mrb[86].mxu0 %vm980_vm2, %v13520_v48 }
 0x62e   :  { %10393 = vmatprep.mubr.msk.f32.mxu0 %vm980_vm2, %v13533_v63 }
 0x631   :  { %10394 = vmatmul.mubr.msk.f32.gmra.mrb[88].mxu0 %vm980_vm2, %v13536_v50 }
 0x632   :  { %10396 = vmatprep.mubr.msk.f32.mxu0 %vm980_vm2, %v13549_v46 }
 0x635   :  { %10397 = vmatmul.mubr.msk.f32.gmra.mrb[90].mxu0 %vm980_vm2, %v13552_v9 }
 0x636   :  { %10399 = vmatprep.mubr.msk.f32.mxu0 %vm980_vm2, %v13565_v24 }
 0x639   :  { %10400 = vmatmul.mubr.msk.f32.gmra.mrb[92].mxu0 %vm980_vm2, %v13568_v34 }
 0x63a   :  { %10402 = vmatprep.mubr.msk.f32.mxu0 %vm980_vm2, %v13581_v54 }
 0x63d   :  { %10403 = vmatmul.mubr.msk.f32.gmra.mrb[94].mxu0 %vm980_vm2, %v13584_v43 }
 0x63e   :  { %10405 = vmatprep.mubr.msk.f32.mxu0 %vm980_vm2, %v13597_v26 }
 0x641   :  { %10406 = vmatmul.mubr.msk.f32.gmra.mrb[96].mxu0 %vm980_vm2, %v13600_v21 }
 0x642   :  { %10408 = vmatprep.mubr.msk.f32.mxu0 %vm980_vm2, %v13613_v29 }
 0x645   :  { %10409 = vmatmul.mubr.msk.f32.gmra.mrb[98].mxu0 %vm980_vm2, %v13616_v19 }
 0x646   :  { %10411 = vmatprep.mubr.msk.f32.mxu0 %vm980_vm2, %v13629_v55 }
 0x649   :  { %10412 = vmatmul.mubr.msk.f32.gmra.mrb[100].mxu0 %vm980_vm2, %v13632_v42 }
 0x64a   :  { %10414 = vmatprep.mubr.msk.f32.mxu0 %vm980_vm2, %v13645_v18 }
 0x64d   :  { %10415 = vmatmul.mubr.msk.f32.gmra.mrb[102].mxu0 %vm980_vm2, %v13650_v30 }
 0x64e   :  { %10417 = vmatprep.mubr.msk.f32.mxu0 %vm980_vm2, %v13797_v13 }
 0x651   :  { %10418 = vmatmul.mubr.msk.f32.gmra.mrb[104].mxu0 %vm980_vm2, %v13804_v59 }
 0x652   :  { %10420 = vmatprep.mubr.msk.f32.mxu0 %vm980_vm2, %v13879_v20 }
 0x655   :  { %10421 = vmatmul.mubr.msk.f32.gmra.mrb[106].mxu0 %vm980_vm2, %v13886_v28 }
 0x656   :  { %10423 = vmatprep.mubr.msk.f32.mxu0 %vm980_vm2, %v13963_v2 }
 0x659   :  { %10424 = vmatmul.mubr.msk.f32.gmra.mrb[108].mxu0 %vm980_vm2, %v13970_v49 }
 0x65a   :  { %10426 = vmatprep.mubr.f32.mxu0 %v14902_v45 }
 0x65d   :  { %10427 = vmatmul.mubr.f32.gmra.mrb[110].mxu0 %v14902_v45 }
 0x65e   :  { %10441 = vmatprep.mubr.msk.f32.mxu0 %vm980_vm2, %v13485_v8 }
 0x661   :  { %10442 = vmatmul.mubr.msk.f32.vlgmr.msra.gmra.mrb[80].mxu0 %vm980_vm2, %v13488_v38 }
 0x662   :  { %10876 = vmatpush3.bf16.msra.mxu0 %v14937_v15  ;;  %10444 = vmatprep.mubr.msk.f32.mxu0 %vm980_vm2, %v13501_v7  ;;  %v14940_v15 = vld [vmem:[#allocation48_spill] sm:$0xff] }
 0x663   :  { %10878 = vmatprep.subr.bf16.mxu0 %v14938_v10 }
 0x665   :  { %10445 = vmatmul.mubr.msk.f32.gmra.mrb[82].mxu0 %vm980_vm2, %v13504_v5 }
 0x666   :  { %10447 = vmatprep.mubr.msk.f32.mxu0 %vm980_vm2, %v13517_v3  ;;  %10880 = vmatpush3.bf16.msra.mxu0 %v14938_v10  ;;  %v14941_v10 = vld [vmem:[#allocation49_spill] sm:$0xff] }
 0x667   :  { %10882 = vmatprep.subr.bf16.mxu0 %v14939_v31 }
 0x669   :  { %10448 = vmatmul.mubr.msk.f32.gmra.mrb[84].mxu0 %vm980_vm2, %v13520_v48 }
 0x66a   :  { %10450 = vmatprep.mubr.msk.f32.mxu0 %vm980_vm2, %v13533_v63  ;;  %10884 = vmatpush3.bf16.msra.mxu0 %v14939_v31  ;;  %v14942_v31 = vld [vmem:[#allocation50_spill] sm:$0xff] }
 0x66b   :  { %10886 = vmatprep.subr.bf16.mxu0 %v14940_v15 }
 0x66d   :  { %10451 = vmatmul.mubr.msk.f32.gmra.mrb[86].mxu0 %vm980_vm2, %v13536_v50 }
 0x66e   :  { %10453 = vmatprep.mubr.msk.f32.mxu0 %vm980_vm2, %v13549_v46 }
 0x671   :  { %10454 = vmatmul.mubr.msk.f32.gmra.mrb[88].mxu0 %vm980_vm2, %v13552_v9 }
 0x672   :  { %10456 = vmatprep.mubr.msk.f32.mxu0 %vm980_vm2, %v13565_v24 }
 0x675   :  { %10457 = vmatmul.mubr.msk.f32.gmra.mrb[90].mxu0 %vm980_vm2, %v13568_v34 }
 0x676   :  { %10459 = vmatprep.mubr.msk.f32.mxu0 %vm980_vm2, %v13581_v54 }
 0x679   :  { %10460 = vmatmul.mubr.msk.f32.gmra.mrb[92].mxu0 %vm980_vm2, %v13584_v43 }
 0x67a   :  { %10462 = vmatprep.mubr.msk.f32.mxu0 %vm980_vm2, %v13597_v26 }
 0x67d   :  { %10463 = vmatmul.mubr.msk.f32.gmra.mrb[94].mxu0 %vm980_vm2, %v13600_v21 }
 0x67e   :  { %10465 = vmatprep.mubr.msk.f32.mxu0 %vm980_vm2, %v13613_v29 }
 0x681   :  { %10466 = vmatmul.mubr.msk.f32.gmra.mrb[96].mxu0 %vm980_vm2, %v13616_v19 }
 0x682   :  { %10468 = vmatprep.mubr.msk.f32.mxu0 %vm980_vm2, %v13629_v55 }
 0x685   :  { %10469 = vmatmul.mubr.msk.f32.gmra.mrb[98].mxu0 %vm980_vm2, %v13632_v42 }
 0x686   :  { %10471 = vmatprep.mubr.msk.f32.mxu0 %vm980_vm2, %v13645_v18 }
 0x689   :  { %10472 = vmatmul.mubr.msk.f32.gmra.mrb[100].mxu0 %vm980_vm2, %v13650_v30 }
 0x68a   :  { %10474 = vmatprep.mubr.msk.f32.mxu0 %vm980_vm2, %v13797_v13 }
 0x68d   :  { %10475 = vmatmul.mubr.msk.f32.gmra.mrb[102].mxu0 %vm980_vm2, %v13804_v59 }
 0x68e   :  { %10477 = vmatprep.mubr.msk.f32.mxu0 %vm980_vm2, %v13879_v20 }
 0x691   :  { %10478 = vmatmul.mubr.msk.f32.gmra.mrb[104].mxu0 %vm980_vm2, %v13886_v28 }
 0x692   :  { %10480 = vmatprep.mubr.msk.f32.mxu0 %vm980_vm2, %v13963_v2 }
 0x695   :  { %10481 = vmatmul.mubr.msk.f32.gmra.mrb[106].mxu0 %vm980_vm2, %v13970_v49 }
 0x696   :  { %10483 = vmatprep.mubr.f32.mxu0 %v14902_v45 }
 0x699   :  { %10484 = vmatmul.mubr.f32.gmra.mrb[108].mxu0 %v14902_v45 }
 0x69a   :  { %10486 = vmatprep.mubr.f32.mxu0 %v14902_v45 }
 0x69d   :  { %10487 = vmatmul.mubr.f32.gmra.mrb[110].mxu0 %v14902_v45 }
 0x69e   :  { %10501 = vmatprep.mubr.msk.f32.mxu0 %vm980_vm2, %v13501_v7 }
 0x6a1   :  { %10502 = vmatmul.mubr.msk.f32.vlgmr.msra.gmra.mrb[80].mxu0 %vm980_vm2, %v13504_v5 }
 0x6a2   :  { %10888 = vmatpush3.bf16.msra.mxu0 %v14940_v15  ;;  %10504 = vmatprep.mubr.msk.f32.mxu0 %vm980_vm2, %v13517_v3  ;;  %v7131_v15 = vmax.f32 %v13456_v47, %v13472_v0 }
 0x6a3   :  { %10890 = vmatprep.subr.bf16.mxu0 %v14941_v10 }
 0x6a5   :  { %10505 = vmatmul.mubr.msk.f32.gmra.mrb[82].mxu0 %vm980_vm2, %v13520_v48 }
 0x6a6   :  { %10507 = vmatprep.mubr.msk.f32.mxu0 %vm980_vm2, %v13533_v63  ;;  %10892 = vmatpush3.bf16.msra.mxu0 %v14941_v10  ;;  %v7101_v10 = vmax.f32 %v13472_v0, %v13456_v47  ;;  %v7229_v47 = vsel %vm12739_vm7, %v13459_v22, 0.0  ;;  %v7163_v0 = vsel %vm12747_vm8, %v7131_v15, 0.0  ;;  %v7105_v22 = vmax.f32 %v13504_v5, %v13488_v38 }
 0x6a7   :  { %10894 = vmatprep.subr.bf16.mxu0 %v14942_v31  ;;  %v7107_v15 = vmax.f32 %v13520_v48, %v13504_v5 }
 0x6a8   :  { %v7133_v27 = vmax.f32 %v7101_v10, %v13488_v38  ;;  %v7135_v10 = vmax.f32 %v7103_v12, %v13504_v5  ;;  %v7137_v41 = vmax.f32 %v7105_v22, %v13520_v48  ;;  %v7106_v5 = vmax.f32 %v13517_v3, %v13501_v7 }
 0x6a9   :  { %10508 = vmatmul.mubr.msk.f32.gmra.mrb[84].mxu0 %vm980_vm2, %v13536_v50 }
 0x6aa   :  { %10510 = vmatprep.mubr.msk.f32.mxu0 %vm980_vm2, %v13549_v46  ;;  %10896 = vmatpush3.bf16.msra.mxu0 %v14942_v31  ;;  %v7130_v31 = vmax.f32 %v13453_v16, %v13469_v56  ;;  %v7228_v16 = vsel %vm12739_vm7, %v13462_v53, 0.0  ;;  %v7230_v53 = vsel %vm12739_vm7, %v13478_v60, 0.0  ;;  %v7134_v56 = vmax.f32 %v7102_v57, %v13501_v7 }
 0x6ab   :  { %v7165_v60 = vsel %vm12747_vm8, %v7133_v27, 0.0  ;;  %v7164_v57 = vsel %vm12747_vm8, %v7132_v33, 0.0  ;;  %v14310_v27 = vmax.f32 %v7106_v5, %v13533_v63 }
 0x6ac   :  { %v7162_v44 = vsel %vm12747_vm8, %v7130_v31, 0.0  ;;  %v7166_v33 = vsel %vm12747_vm8, %v7134_v56, 0.0 }
 0x6ad   :  { %10511 = vmatmul.mubr.msk.f32.gmra.mrb[86].mxu0 %vm980_vm2, %v13552_v9 }
 0x6ae   :  { %10513 = vmatprep.mubr.msk.f32.mxu0 %vm980_vm2, %v13565_v24 }
 0x6b1   :  { %10514 = vmatmul.mubr.msk.f32.gmra.mrb[88].mxu0 %vm980_vm2, %v13568_v34 }
 0x6b2   :  { %10516 = vmatprep.mubr.msk.f32.mxu0 %vm980_vm2, %v13581_v54 }
 0x6b5   :  { %10517 = vmatmul.mubr.msk.f32.gmra.mrb[90].mxu0 %vm980_vm2, %v13584_v43 }
 0x6b6   :  { %10519 = vmatprep.mubr.msk.f32.mxu0 %vm980_vm2, %v13597_v26 }
 0x6b9   :  { %10520 = vmatmul.mubr.msk.f32.gmra.mrb[92].mxu0 %vm980_vm2, %v13600_v21 }
 0x6ba   :  { %10522 = vmatprep.mubr.msk.f32.mxu0 %vm980_vm2, %v13613_v29 }
 0x6bd   :  { %10523 = vmatmul.mubr.msk.f32.gmra.mrb[94].mxu0 %vm980_vm2, %v13616_v19 }
 0x6be   :  { %10525 = vmatprep.mubr.msk.f32.mxu0 %vm980_vm2, %v13629_v55 }
 0x6c1   :  { %10526 = vmatmul.mubr.msk.f32.gmra.mrb[96].mxu0 %vm980_vm2, %v13632_v42 }
 0x6c2   :  { %10528 = vmatprep.mubr.msk.f32.mxu0 %vm980_vm2, %v13645_v18 }
 0x6c5   :  { %10529 = vmatmul.mubr.msk.f32.gmra.mrb[98].mxu0 %vm980_vm2, %v13650_v30 }
 0x6c6   :  { %10531 = vmatprep.mubr.msk.f32.mxu0 %vm980_vm2, %v13797_v13 }
 0x6c9   :  { %10532 = vmatmul.mubr.msk.f32.gmra.mrb[100].mxu0 %vm980_vm2, %v13804_v59 }
 0x6ca   :  { %10534 = vmatprep.mubr.msk.f32.mxu0 %vm980_vm2, %v13879_v20 }
 0x6cd   :  { %10535 = vmatmul.mubr.msk.f32.gmra.mrb[102].mxu0 %vm980_vm2, %v13886_v28 }
 0x6ce   :  { %10537 = vmatprep.mubr.msk.f32.mxu0 %vm980_vm2, %v13963_v2 }
 0x6d1   :  { %10538 = vmatmul.mubr.msk.f32.gmra.mrb[104].mxu0 %vm980_vm2, %v13970_v49 }
 0x6d2   :  { %10540 = vmatprep.mubr.f32.mxu0 %v14902_v45 }
 0x6d5   :  { %10541 = vmatmul.mubr.f32.gmra.mrb[106].mxu0 %v14902_v45 }
 0x6d6   :  { %10543 = vmatprep.mubr.f32.mxu0 %v14902_v45 }
 0x6d9   :  { %10544 = vmatmul.mubr.f32.gmra.mrb[108].mxu0 %v14902_v45 }
 0x6da   :  { %10546 = vmatprep.mubr.f32.mxu0 %v14902_v45 }
 0x6dd   :  { %10547 = vmatmul.mubr.f32.gmra.mrb[110].mxu0 %v14902_v45 }
 0x6de   :  { %10561 = vmatprep.mubr.msk.f32.mxu0 %vm980_vm2, %v13517_v3 }
 0x6e1   :  { %10562 = vmatmul.mubr.msk.f32.vlgmr.msra.gmra.mrb[80].mxu0 %vm980_vm2, %v13520_v48 }
 0x6e2   :  { %10564 = vmatprep.mubr.msk.f32.mxu0 %vm980_vm2, %v13533_v63 }
 0x6e5   :  { %10565 = vmatmul.mubr.msk.f32.gmra.mrb[82].mxu0 %vm980_vm2, %v13536_v50 }
 0x6e6   :  { %10567 = vmatprep.mubr.msk.f32.mxu0 %vm980_vm2, %v13549_v46 }
 0x6e9   :  { %10568 = vmatmul.mubr.msk.f32.gmra.mrb[84].mxu0 %vm980_vm2, %v13552_v9 }
 0x6ea   :  { %10570 = vmatprep.mubr.msk.f32.mxu0 %vm980_vm2, %v13565_v24 }
 0x6ed   :  { %10571 = vmatmul.mubr.msk.f32.gmra.mrb[86].mxu0 %vm980_vm2, %v13568_v34 }
 0x6ee   :  { %10573 = vmatprep.mubr.msk.f32.mxu0 %vm980_vm2, %v13581_v54 }
 0x6f1   :  { %10574 = vmatmul.mubr.msk.f32.gmra.mrb[88].mxu0 %vm980_vm2, %v13584_v43 }
 0x6f2   :  { %10576 = vmatprep.mubr.msk.f32.mxu0 %vm980_vm2, %v13597_v26 }
 0x6f5   :  { %10577 = vmatmul.mubr.msk.f32.gmra.mrb[90].mxu0 %vm980_vm2, %v13600_v21 }
 0x6f6   :  { %10579 = vmatprep.mubr.msk.f32.mxu0 %vm980_vm2, %v13613_v29 }
 0x6f9   :  { %10580 = vmatmul.mubr.msk.f32.gmra.mrb[92].mxu0 %vm980_vm2, %v13616_v19 }
 0x6fa   :  { %10582 = vmatprep.mubr.msk.f32.mxu0 %vm980_vm2, %v13629_v55 }
 0x6fd   :  { %10583 = vmatmul.mubr.msk.f32.gmra.mrb[94].mxu0 %vm980_vm2, %v13632_v42 }
 0x6fe   :  { %10585 = vmatprep.mubr.msk.f32.mxu0 %vm980_vm2, %v13645_v18 }
 0x701   :  { %10586 = vmatmul.mubr.msk.f32.gmra.mrb[96].mxu0 %vm980_vm2, %v13650_v30 }
 0x702   :  { %10588 = vmatprep.mubr.msk.f32.mxu0 %vm980_vm2, %v13797_v13 }
 0x705   :  { %10589 = vmatmul.mubr.msk.f32.gmra.mrb[98].mxu0 %vm980_vm2, %v13804_v59 }
 0x706   :  { %10591 = vmatprep.mubr.msk.f32.mxu0 %vm980_vm2, %v13879_v20 }
 0x709   :  { %10592 = vmatmul.mubr.msk.f32.gmra.mrb[100].mxu0 %vm980_vm2, %v13886_v28 }
 0x70a   :  { %10594 = vmatprep.mubr.msk.f32.mxu0 %vm980_vm2, %v13963_v2 }
 0x70d   :  { %10595 = vmatmul.mubr.msk.f32.gmra.mrb[102].mxu0 %vm980_vm2, %v13970_v49 }
 0x70e   :  { %10597 = vmatprep.mubr.f32.mxu0 %v14902_v45 }
 0x711   :  { %10598 = vmatmul.mubr.f32.gmra.mrb[104].mxu0 %v14902_v45 }
 0x712   :  { %10600 = vmatprep.mubr.f32.mxu0 %v14902_v45 }
 0x715   :  { %10601 = vmatmul.mubr.f32.gmra.mrb[106].mxu0 %v14902_v45 }
 0x716   :  { %10603 = vmatprep.mubr.f32.mxu0 %v14902_v45 }
 0x719   :  { %10604 = vmatmul.mubr.f32.gmra.mrb[108].mxu0 %v14902_v45 }
 0x71a   :  { %10606 = vmatprep.mubr.f32.mxu0 %v14902_v45 }
 0x71d   :  { %10607 = vmatmul.mubr.f32.gmra.mrb[110].mxu0 %v14902_v45  ;;  %v7226_v45 = vsel %vm12739_vm7, %v13450_v25, 0.0  ;;  %v7231_v25 = vsel %vm12739_vm7, %v13475_v35, 0.0  ;;  %v7104_v35 = vmax.f32 %v13501_v7, %v13485_v8 }
 0x71f   :  { %v7136_v8 = vmax.f32 %v7104_v35, %v13517_v3  ;;  %v14294_v35 = vmax.f32 %v7107_v15, %v13536_v50 }
 0x721   :  { %v7168_v7 = vsel %vm12747_vm8, %v7136_v8, 0.0  ;;  %v7171_v8 = vsel %vm12747_vm8, %v14294_v35, 0.0  ;;  %v7111_v35 = vmax.f32 %v13552_v9, %v13536_v50 }
 0x7b4   :  { %v10563_v12 = vpop.f32.mrb[80].mxu0 }
 0x7b5   :  { %v7195_v31 = vadd.f32 %v10563_v12, %v7163_v0  ;;  %v6871_v2 = vpop.f32.mrb[81].mxu0  ;;  %v7167_v0 = vsel %vm12747_vm8, %v7135_v10, 0.0 }
 0x7b6   :  { %v7194_v49 = vadd.f32 %v7162_v44, %v6871_v2  ;;  %v7236_v2 = vsel %vm12739_vm7, %v13526_v61, 0.0 }
 0x7b7   :  { %v7259_v22 = vadd.f32 %v7227_v58, %v7195_v31  ;;  %v7169_v58 = vsel %vm12747_vm8, %v7137_v41, 0.0 }
 0x7b8   :  { %v7258_v44 = vadd.f32 %v7226_v45, %v7194_v49  ;;  %v10566_v10 = vpop.f32.mrb[82].mxu0  ;;  %v7109_v49 = vmax.f32 %v13536_v50, %v13520_v48  ;;  %v7108_v45 = vmax.f32 %v13533_v63, %v13517_v3 }
 0x7b9   :  { %v7291_v56 = vmul.f32 %v7259_v22, %v12808_v39  ;;  %v7197_v15 = vadd.f32 %v10566_v10, %v7165_v60  ;;  %v6881_v31 = vpop.f32.mrb[83].mxu0 }
 0x7ba   :  { %v7290_v12 = vmul.f32 %v7258_v44, %v12808_v39  ;;  %v7196_v38 = vadd.f32 %v7164_v57, %v6881_v31  ;;  %v7141_v3 = vmax.f32 %v7109_v49, %v13552_v9 }
 0x7bb   :  { %v7323_v60 = vadd.f32 %v7291_v56, %v12820_v32  ;;  %v7261_v22 = vadd.f32 %v7229_v47, %v7197_v15  ;;  %v7170_v47 = vsel %vm12747_vm8, %v14310_v27, 0.0  ;;  %v7241_v27 = vsel %vm12739_vm7, %v13555_v11, 0.0  ;;  %v14954_v11 = vld [vmem:[#allocation16_spill] sm:$0xff] }
 0x7bc   :  { %v7322_v48 = vadd.f32 %v7290_v12, %v12820_v32  ;;  %v7260_v5 = vadd.f32 %v7228_v16, %v7196_v38  ;;  %v10569_v44 = vpop.f32.mrb[84].mxu0  ;;  %v7140_v16 = vmax.f32 %v7108_v45, %v13549_v46 }
 0x7bd   :  { %v7293_v10 = vmul.f32 %v7261_v22, %v12808_v39  ;;  %v7199_v31 = vadd.f32 %v10569_v44, %v7167_v0  ;;  %v6891_v41 = vpop.f32.mrb[85].mxu0  ;;  %v7355_v38 = vmax.f32 %v7323_v60, 0.0  ;;  %v7110_v0 = vmax.f32 %v13549_v46, %v13533_v63 }
 0x7be   :  { %v7354_v56 = vmax.f32 %v7322_v48, 0.0  ;;  %v7292_v15 = vmul.f32 %v7260_v5, %v12808_v39  ;;  %v7198_v57 = vadd.f32 %v7166_v33, %v6891_v41  ;;  %v7173_v33 = vsel %vm12747_vm8, %v7141_v3, 0.0 }
 0x7bf   :  { %v7325_v12 = vadd.f32 %v7293_v10, %v12820_v32  ;;  %v7263_v49 = vadd.f32 %v7231_v25, %v7199_v31  ;;  %v7240_v25 = vsel %vm12739_vm7, %v13558_v36, 0.0  ;;  %v7143_v60 = vmax.f32 %v7111_v35, %v13568_v34 }
 0x7c0   :  { %v7324_v22 = vadd.f32 %v7292_v15, %v12820_v32  ;;  %v7262_v50 = vadd.f32 %v7230_v53, %v7198_v57  ;;  %v10572_v48 = vpop.f32.mrb[86].mxu0  ;;  %10621 = vmatprep.mubr.msk.f32.mxu1 %vm980_vm2, %v7354_v56  ;;  %v7172_v44 = vsel %vm12747_vm8, %v7140_v16, 0.0  ;;  %v14943_v31 = vsel %vm12739_vm7, %v13491_v4, 0.0 }
 0x7c1   :  { %v7295_v45 = vmul.f32 %v7263_v49, %v12808_v39  ;;  %v7201_v63 = vadd.f32 %v10572_v48, %v7169_v58  ;;  %v6901_v41 = vpop.f32.mrb[87].mxu0  ;;  %10622 = vmatmul.mubr.msk.f32.vlgmr.msra.gmra.mrb[80].mxu1 %vm980_vm2, %v7355_v38  ;;  %v7357_v3 = vmax.f32 %v7325_v12, 0.0  ;;  %v7113_v56 = vmax.f32 %v13568_v34, %v13552_v9 }
 0x7c2   :  { %v7356_v5 = vmax.f32 %v7324_v22, 0.0  ;;  %v7294_v53 = vmul.f32 %v7262_v50, %v12808_v39  ;;  %v7200_v57 = vadd.f32 %v7168_v7, %v6901_v41  ;;  %v14944_v7 = vsel %vm12739_vm7, %v13494_v17, 0.0 }
 0x7c3   :  { %v7327_v10 = vadd.f32 %v7295_v45, %v12820_v32  ;;  %v7265_v58 = vadd.f32 %v14943_v31, %v7201_v63  ;;  %v7142_v16 = vmax.f32 %v7110_v0, %v13565_v24  ;;  %v7112_v12 = vmax.f32 %v13565_v24, %v13549_v46 }
 0x7c4   :  { %v7326_v35 = vadd.f32 %v7294_v53, %v12820_v32  ;;  %v7264_v15 = vadd.f32 %v14944_v7, %v7200_v57  ;;  %v10575_v38 = vpop.f32.mrb[88].mxu0  ;;  %10624 = vmatprep.mubr.msk.f32.mxu1 %vm980_vm2, %v7356_v5  ;;  %v7243_v4 = vsel %vm12739_vm7, %v13571_v51, 0.0  ;;  %v7175_v17 = vsel %vm12747_vm8, %v7143_v60, 0.0 }
 0x7c5   :  { %v7297_v9 = vmul.f32 %v7265_v58, %v12808_v39  ;;  %v7203_v49 = vadd.f32 %v10575_v38, %v7171_v8  ;;  %v6911_v22 = vpop.f32.mrb[89].mxu0  ;;  %10625 = vmatmul.mubr.msk.f32.gmra.mrb[82].mxu1 %vm980_vm2, %v7357_v3  ;;  %v7242_v0 = vsel %vm12739_vm7, %v13574_v14, 0.0  ;;  %v7359_v45 = vmax.f32 %v7327_v10, 0.0 }
 0x7c6   :  { %v7358_v50 = vmax.f32 %v7326_v35, 0.0  ;;  %v7296_v46 = vmul.f32 %v7264_v15, %v12808_v39  ;;  %v7202_v48 = vadd.f32 %v7170_v47, %v6911_v22  ;;  %v14945_v8 = vsel %vm12739_vm7, %v13507_v6, 0.0  ;;  %v14947_v35 = vld [vmem:[#allocation12_spill] sm:$0xff] }
 0x7c7   :  { %v7329_v63 = vadd.f32 %v7297_v9, %v12820_v32  ;;  %v7267_v41 = vadd.f32 %v14945_v8, %v7203_v49  ;;  %v7145_v5 = vmax.f32 %v7113_v56, %v13584_v43  ;;  %v14946_v53 = vsel %vm12739_vm7, %v13510_v37, 0.0 }
 0x7c8   :  { %v7328_v60 = vadd.f32 %v7296_v46, %v12820_v32  ;;  %v7266_v57 = vadd.f32 %v14946_v53, %v7202_v48  ;;  %v10578_v3 = vpop.f32.mrb[90].mxu0  ;;  %10627 = vmatprep.mubr.msk.f32.mxu1 %vm980_vm2, %v7358_v50  ;;  %v7174_v47 = vsel %vm12747_vm8, %v7142_v16, 0.0  ;;  %v7115_v10 = vmax.f32 %v13584_v43, %v13568_v34 }
 0x7c9   :  { %v7299_v6 = vmul.f32 %v7267_v41, %v12808_v39  ;;  %v7205_v31 = vadd.f32 %v10578_v3, %v7173_v33  ;;  %v6921_v58 = vpop.f32.mrb[91].mxu0  ;;  %10628 = vmatmul.mubr.msk.f32.gmra.mrb[84].mxu1 %vm980_vm2, %v7359_v45  ;;  %v7144_v56 = vmax.f32 %v7112_v12, %v13581_v54  ;;  %v7114_v37 = vmax.f32 %v13581_v54, %v13565_v24  ;;  %v14949_v24 = vld [vmem:[#allocation13_spill] sm:$0xff] }
 0x7ca   :  { %v7245_v7 = vsel %vm12739_vm7, %v14947_v35, 0.0  ;;  %v7360_v15 = vmax.f32 %v7328_v60, 0.0  ;;  %v7298_v38 = vmul.f32 %v7266_v57, %v12808_v39  ;;  %v7204_v16 = vadd.f32 %v7172_v44, %v6921_v58 }
 0x7cb   :  { %v7361_v34 = vmax.f32 %v7329_v63, 0.0  ;;  %v7331_v9 = vadd.f32 %v7299_v6, %v12820_v32  ;;  %v14948_v33 = vsel %vm12739_vm7, %v13523_v62, 0.0  ;;  %v7177_v12 = vsel %vm12747_vm8, %v7145_v5, 0.0  ;;  %v14951_v6 = vld [vmem:[#allocation14_spill] sm:$0xff] }
 0x7cc   :  { %v7269_v49 = vadd.f32 %v14948_v33, %v7205_v31  ;;  %v7244_v22 = vsel %vm12739_vm7, %v14949_v24, 0.0  ;;  %v7330_v50 = vadd.f32 %v7298_v38, %v12820_v32  ;;  %v7268_v44 = vadd.f32 %v7236_v2, %v7204_v16  ;;  %v10581_v46 = vpop.f32.mrb[92].mxu0  ;;  %10630 = vmatprep.mubr.msk.f32.mxu1 %vm980_vm2, %v7360_v15 }
 0x7cd   :  { %v7147_v62 = vmax.f32 %v7115_v10, %v13600_v21  ;;  %v7207_v45 = vadd.f32 %v10581_v46, %v7175_v17  ;;  %v6931_v63 = vpop.f32.mrb[93].mxu0  ;;  %10631 = vmatmul.mubr.msk.f32.gmra.mrb[86].mxu1 %vm980_vm2, %v7361_v34  ;;  %v7176_v8 = vsel %vm12747_vm8, %v7144_v56, 0.0  ;;  %v7117_v41 = vmax.f32 %v13600_v21, %v13584_v43 }
 0x7ce   :  { %v7301_v48 = vmul.f32 %v7269_v49, %v12808_v39  ;;  %v7362_v5 = vmax.f32 %v7330_v50, 0.0  ;;  %v7300_v61 = vmul.f32 %v7268_v44, %v12808_v39  ;;  %v7206_v2 = vadd.f32 %v7174_v47, %v6931_v63 }
 0x7cf   :  { %v7146_v60 = vmax.f32 %v7114_v37, %v13597_v26  ;;  %v7363_v53 = vmax.f32 %v7331_v9, 0.0  ;;  %v14950_v17 = vsel %vm12739_vm7, %v13539_v1, 0.0  ;;  %v7116_v10 = vmax.f32 %v13597_v26, %v13581_v54  ;;  %v14953_v37 = vld [vmem:[#allocation15_spill] sm:$0xff] }
 0x7d0   :  { %v7333_v57 = vadd.f32 %v7301_v48, %v12820_v32  ;;  %v7271_v3 = vadd.f32 %v14950_v17, %v7207_v45  ;;  %v7247_v43 = vsel %vm12739_vm7, %v14951_v6, 0.0  ;;  %v7332_v31 = vadd.f32 %v7300_v61, %v12820_v32  ;;  %v10584_v56 = vpop.f32.mrb[94].mxu0  ;;  %10633 = vmatprep.mubr.msk.f32.mxu1 %vm980_vm2, %v7362_v5 }
 0x7d1   :  { %v14952_v47 = vsel %vm12739_vm7, %v13542_v23, 0.0  ;;  %v7179_v1 = vsel %vm12747_vm8, %v7147_v62, 0.0  ;;  %v7246_v54 = vsel %vm12739_vm7, %v14953_v37, 0.0  ;;  %v7209_v38 = vadd.f32 %v10584_v56, %v7177_v12  ;;  %v6941_v16 = vpop.f32.mrb[95].mxu0  ;;  %10634 = vmatmul.mubr.msk.f32.gmra.mrb[88].mxu1 %vm980_vm2, %v7363_v53 }
 0x7d2   :  { %v7270_v58 = vadd.f32 %v14952_v47, %v7206_v2  ;;  %v7303_v15 = vmul.f32 %v7271_v3, %v12808_v39  ;;  %v7149_v34 = vmax.f32 %v7117_v41, %v13616_v19  ;;  %v7364_v23 = vmax.f32 %v7332_v31, 0.0 }
 0x7d3   :  { %v7208_v33 = vadd.f32 %v7176_v8, %v6941_v16  ;;  %v7178_v49 = vsel %vm12747_vm8, %v7146_v60, 0.0  ;;  %v7365_v50 = vmax.f32 %v7333_v57, 0.0  ;;  %v7273_v12 = vadd.f32 %v7241_v27, %v7209_v38 }
 0x7d4   :  { %v7302_v9 = vmul.f32 %v7270_v58, %v12808_v39  ;;  %v7335_v44 = vadd.f32 %v7303_v15, %v12820_v32  ;;  %v7119_v46 = vmax.f32 %v13616_v19, %v13600_v21  ;;  %v10587_v45 = vpop.f32.mrb[96].mxu0  ;;  %10636 = vmatprep.mubr.msk.f32.mxu1 %vm980_vm2, %v7364_v23  ;;  %v7148_v63 = vmax.f32 %v7116_v10, %v13613_v29 }
 0x7d5   :  { %v7272_v48 = vadd.f32 %v7240_v25, %v7208_v33  ;;  %v7118_v8 = vmax.f32 %v13613_v29, %v13597_v26  ;;  %v7249_v27 = vsel %vm12739_vm7, %v14954_v11, 0.0  ;;  %v7305_v21 = vmul.f32 %v7273_v12, %v12808_v39  ;;  %v6951_v5 = vpop.f32.mrb[97].mxu0  ;;  %10637 = vmatmul.mubr.msk.f32.gmra.mrb[90].mxu1 %vm980_vm2, %v7365_v50  ;;  %v14955_v26 = vld [vmem:[#allocation28_spill] sm:$0xff] }
 0x7d6   :  { %v7334_v62 = vadd.f32 %v7302_v9, %v12820_v32  ;;  %v7211_v41 = vadd.f32 %v10587_v45, %v7179_v1  ;;  %v7181_v36 = vsel %vm12747_vm8, %v7149_v34, 0.0  ;;  %v7210_v2 = vadd.f32 %v7178_v49, %v6951_v5 }
 0x7d7   :  { %v7304_v61 = vmul.f32 %v7272_v48, %v12808_v39  ;;  %v7151_v60 = vmax.f32 %v7119_v46, %v13632_v42  ;;  %v7248_v53 = vsel %vm12739_vm7, %v14955_v26, 0.0  ;;  %v7367_v57 = vmax.f32 %v7335_v44, 0.0 }
 0x7d8   :  { %v7366_v25 = vmax.f32 %v7334_v62, 0.0  ;;  %v7337_v17 = vadd.f32 %v7305_v21, %v12820_v32  ;;  %v7275_v3 = vadd.f32 %v7243_v4, %v7211_v41  ;;  %v7274_v31 = vadd.f32 %v7242_v0, %v7210_v2  ;;  %v10590_v47 = vpop.f32.mrb[98].mxu0 }
 0x7d9   :  { %v7336_v10 = vadd.f32 %v7304_v61, %v12820_v32  ;;  %v7180_v58 = vsel %vm12747_vm8, %v7148_v63, 0.0  ;;  %v7121_v56 = vmax.f32 %v13632_v42, %v13616_v19  ;;  %v7213_v51 = vadd.f32 %v10590_v47, %v7181_v36  ;;  %v6961_v4 = vpop.f32.mrb[99].mxu0 }
 0x7da   :  { %10639 = vmatprep.mubr.msk.f32.mxu1 %vm980_vm2, %v7366_v25  ;;  %v7307_v1 = vmul.f32 %v7275_v3, %v12808_v39  ;;  %v7150_v15 = vmax.f32 %v7118_v8, %v13629_v55  ;;  %v7120_v14 = vmax.f32 %v13629_v55, %v13613_v29  ;;  %v7306_v38 = vmul.f32 %v7274_v31, %v12808_v39 }
 0x7db   :  { %10640 = vmatmul.mubr.msk.f32.gmra.mrb[92].mxu1 %vm980_vm2, %v7367_v57  ;;  %v7368_v0 = vmax.f32 %v7336_v10, 0.0  ;;  %v7212_v16 = vadd.f32 %v7180_v58, %v6961_v4  ;;  %v7183_v34 = vsel %vm12747_vm8, %v7151_v60, 0.0  ;;  %v7369_v23 = vmax.f32 %v7337_v17, 0.0 }
 0x7dc   :  { %v7339_v19 = vadd.f32 %v7307_v1, %v12820_v32  ;;  %v7277_v9 = vadd.f32 %v7245_v7, %v7213_v51  ;;  %v7153_v33 = vmax.f32 %v7121_v56, %v13650_v30  ;;  %v7338_v49 = vadd.f32 %v7306_v38, %v12820_v32  ;;  %v10593_v50 = vpop.f32.mrb[100].mxu0 }
 0x7dd   :  { %v7276_v29 = vadd.f32 %v7244_v22, %v7212_v16  ;;  %10642 = vmatprep.mubr.msk.f32.mxu1 %vm980_vm2, %v7368_v0  ;;  %v7152_v44 = vmax.f32 %v7120_v14, %v13645_v18  ;;  %v7123_v12 = vmax.f32 %v13650_v30, %v13632_v42  ;;  %v7215_v7 = vadd.f32 %v10593_v50, %v7183_v34  ;;  %v6971_v46 = vpop.f32.mrb[101].mxu0  ;;  %v14958_v50 = vld [vmem:[#allocation33_spill] sm:$0xff] }
 0x7de   :  { %v7309_v35 = vmul.f32 %v7277_v9, %v12808_v39  ;;  %v7182_v62 = vsel %vm12747_vm8, %v7150_v15, 0.0  ;;  %v7122_v24 = vmax.f32 %v13645_v18, %v13629_v55  ;;  %v7370_v22 = vmax.f32 %v7338_v49, 0.0 }
 0x7df   :  { %10643 = vmatmul.mubr.msk.f32.gmra.mrb[94].mxu1 %vm980_vm2, %v7369_v23  ;;  %v7308_v48 = vmul.f32 %v7276_v29, %v12808_v39  ;;  %v7214_v45 = vadd.f32 %v7182_v62, %v6971_v46  ;;  %v7155_v63 = vmax.f32 %v7123_v12, %v13804_v59  ;;  %v7371_v8 = vmax.f32 %v7339_v19, 0.0  ;;  %v14959_v62 = vld [vmem:[#allocation25_spill] sm:$0xff] }
 0x7e0   :  { %v7341_v42 = vadd.f32 %v7309_v35, %v12820_v32  ;;  %v7279_v21 = vadd.f32 %v7247_v43, %v7215_v7  ;;  %v7154_v41 = vmax.f32 %v7122_v24, %v13797_v13  ;;  %v10596_v36 = vpop.f32.mrb[102].mxu0  ;;  %v7185_v25 = vsel %vm12747_vm8, %v7153_v33, 0.0  ;;  %10645 = vmatprep.mubr.msk.f32.mxu1 %vm980_vm2, %v7370_v22  ;;  %v14960_v22 = vld [vmem:[#allocation17_spill] sm:$0xff] }
 0x7e1   :  { %v7340_v5 = vadd.f32 %v7308_v48, %v12820_v32  ;;  %v7278_v55 = vadd.f32 %v7246_v54, %v7214_v45  ;;  %v7184_v61 = vsel %vm12747_vm8, %v7152_v44, 0.0  ;;  %v7217_v43 = vadd.f32 %v10596_v36, %v7185_v25  ;;  %v6981_v2 = vpop.f32.mrb[103].mxu0 }
 0x7e2   :  { %v7311_v6 = vmul.f32 %v7279_v21, %v12808_v39  ;;  %v7125_v60 = vmax.f32 %v13804_v59, %v13650_v30  ;;  %v7124_v37 = vmax.f32 %v13797_v13, %v13645_v18  ;;  %v7216_v17 = vadd.f32 %v7184_v61, %v6981_v2 }
 0x7e3   :  { %10646 = vmatmul.mubr.msk.f32.gmra.mrb[96].mxu1 %vm980_vm2, %v7371_v8  ;;  %v7372_v54 = vmax.f32 %v7340_v5, 0.0  ;;  %v7310_v57 = vmul.f32 %v7278_v55, %v12808_v39  ;;  %v7187_v3 = vsel %vm12747_vm8, %v7155_v63, 0.0  ;;  %v7373_v10 = vmax.f32 %v7341_v42, 0.0  ;;  %v14961_v42 = vld [vmem:[#allocation34_spill] sm:$0xff] }
 0x7e4   :  { %v7343_v31 = vadd.f32 %v7311_v6, %v12820_v32  ;;  %v7281_v47 = vadd.f32 %v7249_v27, %v7217_v43  ;;  %v7186_v30 = vsel %vm12747_vm8, %v7154_v41, 0.0  ;;  %v7280_v58 = vadd.f32 %v7248_v53, %v7216_v17  ;;  %v10599_v56 = vpop.f32.mrb[104].mxu0  ;;  %v14956_v53 = vld [vmem:[#allocation27_spill] sm:$0xff]  ;;  %v14962_v17 = vld [vmem:[#allocation42_spill] sm:$0xff] }
 0x7e5   :  { %v7342_v18 = vadd.f32 %v7310_v57, %v12820_v32  ;;  %10648 = vmatprep.mubr.msk.f32.mxu1 %vm980_vm2, %v7372_v54  ;;  %v7157_v1 = vmax.f32 %v7125_v60, %v13886_v28  ;;  %v7127_v51 = vmax.f32 %v13886_v28, %v13804_v59  ;;  %v7219_v27 = vadd.f32 %v10599_v56, %v7187_v3  ;;  %v6991_v4 = vpop.f32.mrb[105].mxu0  ;;  %v14957_v59 = vld [vmem:[#allocation35_spill] sm:$0xff] }
 0x7e6   :  { %v7313_v11 = vmul.f32 %v7281_v47, %v12808_v39  ;;  %v7156_v15 = vmax.f32 %v7124_v37, %v13879_v20  ;;  %v7126_v26 = vmax.f32 %v13879_v20, %v13797_v13  ;;  %v7251_v14 = vsel %vm12739_vm7, %v14956_v53, 0.0  ;;  %v14963_v47 = vld [vmem:[#allocation18_spill] sm:$0xff] }
 0x7e7   :  { %10649 = vmatmul.mubr.msk.f32.gmra.mrb[98].mxu1 %vm980_vm2, %v7373_v10  ;;  %v7374_v0 = vmax.f32 %v7342_v18, 0.0  ;;  %v7312_v38 = vmul.f32 %v7280_v58, %v12808_v39  ;;  %v7218_v16 = vadd.f32 %v7186_v30, %v6991_v4  ;;  %v7250_v34 = vsel %vm12739_vm7, %v14957_v59, 0.0  ;;  %v14964_v53 = vld [vmem:[#allocation26_spill] sm:$0xff]  ;;  %v14965_v59 = vld [vmem:[#allocation41_spill] sm:$0xff] }
 0x7e8   :  { %v7375_v23 = vmax.f32 %v7343_v31, 0.0  ;;  %v7345_v19 = vadd.f32 %v7313_v11, %v12820_v32  ;;  %v7283_v9 = vadd.f32 %v7251_v14, %v7219_v27  ;;  %v10602_v13 = vpop.f32.mrb[106].mxu0  ;;  %v7189_v29 = vsel %vm12747_vm8, %v7157_v1, 0.0 }
 0x7e9   :  { %v7344_v33 = vadd.f32 %v7312_v38, %v12820_v32  ;;  %v7282_v49 = vadd.f32 %v7250_v34, %v7218_v16  ;;  %10651 = vmatprep.mubr.msk.f32.mxu1 %vm980_vm2, %v7374_v0  ;;  %v7159_v44 = vmax.f32 %v7127_v51, %v14958_v50  ;;  %v7221_v35 = vadd.f32 %v10602_v13, %v7189_v29  ;;  %v7001_v7 = vpop.f32.mrb[107].mxu0 }
 0x7ea   :  { %v7315_v12 = vmul.f32 %v7283_v9, %v12808_v39  ;;  %v7188_v46 = vsel %vm12747_vm8, %v7156_v15, 0.0  ;;  %v7158_v24 = vmax.f32 %v7126_v26, %v14959_v62  ;;  %v7253_v48 = vsel %vm12739_vm7, %v14960_v22, 0.0 }
 0x7eb   :  { %10652 = vmatmul.mubr.msk.f32.gmra.mrb[100].mxu1 %vm980_vm2, %v7375_v23  ;;  %v7376_v45 = vmax.f32 %v7344_v33, 0.0  ;;  %v7314_v63 = vmul.f32 %v7282_v49, %v12808_v39  ;;  %v7220_v8 = vadd.f32 %v7188_v46, %v7001_v7  ;;  %v7252_v21 = vsel %vm12739_vm7, %v14961_v42, 0.0 }
 0x7ec   :  { %v7377_v41 = vmax.f32 %v7345_v19, 0.0  ;;  %v7347_v5 = vadd.f32 %v7315_v12, %v12820_v32  ;;  %v7285_v55 = vadd.f32 %v7253_v48, %v7221_v35  ;;  %v10605_v61 = vpop.f32.mrb[108].mxu0  ;;  %v7191_v6 = vsel %vm12747_vm8, %v7159_v44, 0.0 }
 0x7ed   :  { %v7346_v36 = vadd.f32 %v7314_v63, %v12820_v32  ;;  %v7284_v25 = vadd.f32 %v7252_v21, %v7220_v8  ;;  %10654 = vmatprep.mubr.msk.f32.mxu1 %vm980_vm2, %v7376_v45  ;;  %v7129_v43 = vmax.f32 %v14958_v50, %v13886_v28  ;;  %v7223_v60 = vadd.f32 %v10605_v61, %v7191_v6  ;;  %v7011_v37 = vpop.f32.mrb[109].mxu0 }
 0x7ee   :  { %v7317_v2 = vmul.f32 %v7285_v55, %v12808_v39  ;;  %v7190_v54 = vsel %vm12747_vm8, %v7158_v24, 0.0  ;;  %v7128_v57 = vmax.f32 %v14959_v62, %v13879_v20  ;;  %v7255_v3 = vsel %vm12739_vm7, %v14962_v17, 0.0 }
 0x7ef   :  { %10655 = vmatmul.mubr.msk.f32.gmra.mrb[102].mxu1 %vm980_vm2, %v7377_v41  ;;  %v7378_v10 = vmax.f32 %v7346_v36, 0.0  ;;  %v7316_v31 = vmul.f32 %v7284_v25, %v12808_v39  ;;  %v7222_v28 = vadd.f32 %v7190_v54, %v7011_v37  ;;  %v7254_v30 = vsel %vm12739_vm7, %v14963_v47, 0.0 }
 0x7f0   :  { %v7379_v18 = vmax.f32 %v7347_v5, 0.0  ;;  %v7349_v58 = vadd.f32 %v7317_v2, %v12820_v32  ;;  %v7287_v56 = vadd.f32 %v7255_v3, %v7223_v60  ;;  %v10608_v20 = vpop.f32.mrb[110].mxu0  ;;  %v7193_v11 = vsel %vm12747_vm8, %v7129_v43, 0.0 }
 0x7f1   :  { %v7348_v1 = vadd.f32 %v7316_v31, %v12820_v32  ;;  %v7286_v51 = vadd.f32 %v7254_v30, %v7222_v28  ;;  %10657 = vmatprep.mubr.msk.f32.mxu1 %vm980_vm2, %v7378_v10  ;;  %v7225_v4 = vadd.f32 %v10608_v20, %v7193_v11  ;;  %v7021_v15 = vpop.f32.mrb[111].mxu0  ;;  %v7192_v26 = vsel %vm12747_vm8, %v7128_v57, 0.0 }
 0x7f2   :  { %v7319_v27 = vmul.f32 %v7287_v56, %v12808_v39  ;;  %v7257_v14 = vsel %vm12739_vm7, %v14964_v53, 0.0  ;;  %v7224_v16 = vadd.f32 %v7192_v26, %v7021_v15  ;;  %v7256_v34 = vsel %vm12739_vm7, %v14965_v59, 0.0 }
 0x7f3   :  { %10658 = vmatmul.mubr.msk.f32.gmra.mrb[104].mxu1 %vm980_vm2, %v7379_v18  ;;  %v7380_v0 = vmax.f32 %v7348_v1, 0.0  ;;  %v7318_v38 = vmul.f32 %v7286_v51, %v12808_v39  ;;  %v7381_v23 = vmax.f32 %v7349_v58, 0.0  ;;  %v7289_v9 = vadd.f32 %v7257_v14, %v7225_v4 }
 0x7f4   :  { %v7351_v19 = vadd.f32 %v7319_v27, %v12820_v32  ;;  %v7288_v33 = vadd.f32 %v7256_v34, %v7224_v16 }
 0x7f5   :  { %v7350_v40 = vadd.f32 %v7318_v38, %v12820_v32  ;;  %10660 = vmatprep.mubr.msk.f32.mxu1 %vm980_vm2, %v7380_v0  ;;  %v7321_v49 = vmul.f32 %v7289_v9, %v12808_v39 }
 0x7f6   :  { %v7320_v29 = vmul.f32 %v7288_v33, %v12808_v39  ;;  %v7383_v50 = vmax.f32 %v7351_v19, 0.0  ;;  %v14656_v39 = vld [vmem:[%s14707_s5] ss:$0 sm:$0xff]  ;;  %s11453_s5 = smov [#allocation2]  }
 0x7f7   :  { %10661 = vmatmul.mubr.msk.f32.gmra.mrb[106].mxu1 %vm980_vm2, %v7381_v23  ;;  %v7382_v13 = vmax.f32 %v7350_v40, 0.0  ;;  %v7353_v52 = vadd.f32 %v7321_v49, %v12820_v32  ;;  %s7745_s15 = sshll.u32 %s11453_s5, 4  ;;  %s7746_s15 = int_to_ptr.vmem [resolvable:$true] %s7745_s15 }
 0x7f8   :  { %v7352_v44 = vadd.f32 %v7320_v29, %v12820_v32  ;;  %s11428_s16 = scalar_lea.vmem %s7746_s15, 8192  ;;  %p11433_p1 = scmp.lt.s32.totalorder %s7746_s15, %s7746_s15 }
 0x7f9   :  { %10663 = vmatprep.mubr.msk.f32.mxu1 %vm980_vm2, %v7382_v13  ;;  %v7385_v35 = vmax.f32 %v7353_v52, 0.0  ;;  %p11429_p0 = scmp.ne.s32.totalorder %s7746_s15, %s11428_s16  ;;  %p11434_p2 = scmp.lt.s32.totalorder %s11428_s16, %s11428_s16 }
 0x7fa   :  { %v7384_v12 = vmax.f32 %v7352_v44, 0.0 }
 0x7fb   :  { %10664 = vmatmul.mubr.msk.f32.gmra.mrb[108].mxu1 %vm980_vm2, %v7383_v50  ;;  %p11435_p3 = por %p11434_p2, %p11433_p1 }
 0x7fc   :  { %10666 = vmatprep.mubr.msk.f32.mxu1 %vm980_vm2, %v7384_v12 }
 0x7fd   :  { %p11436_p4 = pnand %p11435_p3, %p11429_p0 }
 0x7ff   :  { %10667 = vmatmul.mubr.msk.f32.gmra.mrb[110].mxu1 %vm980_vm2, %v7385_v35 }
 0x894   :  { %v10623_v7 = vpop.f32.mrb[80].mxu1 }
 0x895   :  { %v7554_v46 = vadd.f32 %v14656_v39, %v10623_v7  ;;  %v7548_v62 = vpop.f32.mrb[81].mxu1 }
 0x896   :  { %v7549_v32 = vadd.f32 %v14656_v39, %v7548_v62 }
 0x897   :  { %7709 = vst [vmem:[#allocation2 + $0x108] sm:$0xff] %v7554_v46 }
 0x898   :  { %7708 = vst [vmem:[#allocation2 + $0x100] sm:$0xff] %v7549_v32  ;;  %v10626_v24 = vpop.f32.mrb[82].mxu1 }
 0x899   :  { %v7564_v22 = vadd.f32 %v14656_v39, %v10626_v24  ;;  %v7558_v48 = vpop.f32.mrb[83].mxu1 }
 0x89a   :  { %v7559_v45 = vadd.f32 %v14656_v39, %v7558_v48 }
 0x89b   :  { %7711 = vst [vmem:[#allocation2 + $0x118] sm:$0xff] %v7564_v22 }
 0x89c   :  { %7710 = vst [vmem:[#allocation2 + $0x110] sm:$0xff] %v7559_v45  ;;  %v10629_v63 = vpop.f32.mrb[84].mxu1 }
 0x89d   :  { %v7574_v8 = vadd.f32 %v14656_v39, %v10629_v63  ;;  %v7568_v42 = vpop.f32.mrb[85].mxu1 }
 0x89e   :  { %v7569_v21 = vadd.f32 %v14656_v39, %v7568_v42 }
 0x89f   :  { %7713 = vst [vmem:[#allocation2 + $0x128] sm:$0xff] %v7574_v8 }
 0x8a0   :  { %7712 = vst [vmem:[#allocation2 + $0x120] sm:$0xff] %v7569_v21  ;;  %v10632_v41 = vpop.f32.mrb[86].mxu1 }
 0x8a1   :  { %v7584_v5 = vadd.f32 %v14656_v39, %v10632_v41  ;;  %v7578_v55 = vpop.f32.mrb[87].mxu1 }
 0x8a2   :  { %v7579_v36 = vadd.f32 %v14656_v39, %v7578_v55 }
 0x8a3   :  { %7715 = vst [vmem:[#allocation2 + $0x138] sm:$0xff] %v7584_v5 }
 0x8a4   :  { %7714 = vst [vmem:[#allocation2 + $0x130] sm:$0xff] %v7579_v36  ;;  %v10635_v25 = vpop.f32.mrb[88].mxu1 }
 0x8a5   :  { %v7594_v61 = vadd.f32 %v14656_v39, %v10635_v25  ;;  %v7588_v6 = vpop.f32.mrb[89].mxu1 }
 0x8a6   :  { %v7589_v43 = vadd.f32 %v14656_v39, %v7588_v6 }
 0x8a7   :  { %7717 = vst [vmem:[#allocation2 + $0x148] sm:$0xff] %v7594_v61 }
 0x8a8   :  { %7716 = vst [vmem:[#allocation2 + $0x140] sm:$0xff] %v7589_v43  ;;  %v10638_v2 = vpop.f32.mrb[90].mxu1 }
 0x8a9   :  { %v7604_v60 = vadd.f32 %v14656_v39, %v10638_v2  ;;  %v7598_v37 = vpop.f32.mrb[91].mxu1 }
 0x8aa   :  { %v7599_v54 = vadd.f32 %v14656_v39, %v7598_v37 }
 0x8ab   :  { %7719 = vst [vmem:[#allocation2 + $0x158] sm:$0xff] %v7604_v60 }
 0x8ac   :  { %7718 = vst [vmem:[#allocation2 + $0x150] sm:$0xff] %v7599_v54 }
 0x8ae   :  { %v10641_v57 = vpop.f32.mrb[92].mxu1 }
 0x8af   :  { %v7614_v17 = vadd.f32 %v14656_v39, %v10641_v57  ;;  %v7608_v3 = vpop.f32.mrb[93].mxu1 }
 0x8b0   :  { %v7609_v10 = vadd.f32 %v14656_v39, %v7608_v3 }
 0x8b1   :  { %7721 = vst [vmem:[#allocation2 + $0x168] sm:$0xff] %v7614_v17 }
 0x8b2   :  { %7720 = vst [vmem:[#allocation2 + $0x160] sm:$0xff] %v7609_v10  ;;  %v10644_v31 = vpop.f32.mrb[94].mxu1 }
 0x8b3   :  { %v7624_v28 = vadd.f32 %v14656_v39, %v10644_v31  ;;  %v7618_v47 = vpop.f32.mrb[95].mxu1 }
 0x8b4   :  { %v7619_v30 = vadd.f32 %v14656_v39, %v7618_v47 }
 0x8b5   :  { %7723 = vst [vmem:[#allocation2 + $0x178] sm:$0xff] %v7624_v28 }
 0x8b6   :  { %7722 = vst [vmem:[#allocation2 + $0x170] sm:$0xff] %v7619_v30  ;;  %v10647_v18 = vpop.f32.mrb[96].mxu1 }
 0x8b7   :  { %v7634_v58 = vadd.f32 %v14656_v39, %v10647_v18  ;;  %v7628_v56 = vpop.f32.mrb[97].mxu1 }
 0x8b8   :  { %v7629_v1 = vadd.f32 %v14656_v39, %v7628_v56 }
 0x8b9   :  { %7725 = vst [vmem:[#allocation2 + $0x188] sm:$0xff] %v7634_v58 }
 0x8ba   :  { %7724 = vst [vmem:[#allocation2 + $0x180] sm:$0xff] %v7629_v1  ;;  %v10650_v51 = vpop.f32.mrb[98].mxu1 }
 0x8bb   :  { %v7644_v20 = vadd.f32 %v14656_v39, %v10650_v51  ;;  %v7638_v11 = vpop.f32.mrb[99].mxu1 }
 0x8bc   :  { %v7639_v27 = vadd.f32 %v14656_v39, %v7638_v11 }
 0x8bd   :  { %7727 = vst [vmem:[#allocation2 + $0x198] sm:$0xff] %v7644_v20 }
 0x8be   :  { %7726 = vst [vmem:[#allocation2 + $0x190] sm:$0xff] %v7639_v27  ;;  %v10653_v4 = vpop.f32.mrb[100].mxu1 }
 0x8bf   :  { %v7654_v15 = vadd.f32 %v14656_v39, %v10653_v4  ;;  %v7648_v26 = vpop.f32.mrb[101].mxu1 }
 0x8c0   :  { %v7649_v53 = vadd.f32 %v14656_v39, %v7648_v26 }
 0x8c1   :  { %7729 = vst [vmem:[#allocation2 + $0x1a8] sm:$0xff] %v7654_v15 }
 0x8c2   :  { %7728 = vst [vmem:[#allocation2 + $0x1a0] sm:$0xff] %v7649_v53  ;;  %v10656_v14 = vpop.f32.mrb[102].mxu1 }
 0x8c3   :  { %v7664_v0 = vadd.f32 %v14656_v39, %v10656_v14  ;;  %v7658_v38 = vpop.f32.mrb[103].mxu1 }
 0x8c4   :  { %v7659_v16 = vadd.f32 %v14656_v39, %v7658_v38 }
 0x8c5   :  { %7731 = vst [vmem:[#allocation2 + $0x1b8] sm:$0xff] %v7664_v0 }
 0x8c6   :  { %7730 = vst [vmem:[#allocation2 + $0x1b0] sm:$0xff] %v7659_v16  ;;  %v10659_v59 = vpop.f32.mrb[104].mxu1 }
 0x8c7   :  { %v7674_v34 = vadd.f32 %v14656_v39, %v10659_v59  ;;  %v7668_v23 = vpop.f32.mrb[105].mxu1 }
 0x8c8   :  { %v7669_v19 = vadd.f32 %v14656_v39, %v7668_v23 }
 0x8c9   :  { %7733 = vst [vmem:[#allocation2 + $0x1c8] sm:$0xff] %v7674_v34 }
 0x8ca   :  { %7732 = vst [vmem:[#allocation2 + $0x1c0] sm:$0xff] %v7669_v19  ;;  %v10662_v9 = vpop.f32.mrb[106].mxu1 }
 0x8cb   :  { %v7684_v40 = vadd.f32 %v14656_v39, %v10662_v9  ;;  %v7678_v33 = vpop.f32.mrb[107].mxu1 }
 0x8cc   :  { %v7679_v49 = vadd.f32 %v14656_v39, %v7678_v33 }
 0x8cd   :  { %7735 = vst [vmem:[#allocation2 + $0x1d8] sm:$0xff] %v7684_v40 }
 0x8ce   :  { %7734 = vst [vmem:[#allocation2 + $0x1d0] sm:$0xff] %v7679_v49  ;;  %v10665_v13 = vpop.f32.mrb[108].mxu1 }
 0x8cf   :  { %v7694_v29 = vadd.f32 %v14656_v39, %v10665_v13  ;;  %v7688_v50 = vpop.f32.mrb[109].mxu1 }
 0x8d0   :  { %v7689_v52 = vadd.f32 %v14656_v39, %v7688_v50 }
 0x8d1   :  { %7737 = vst [vmem:[#allocation2 + $0x1e8] sm:$0xff] %v7694_v29 }
 0x8d2   :  { %7736 = vst [vmem:[#allocation2 + $0x1e0] sm:$0xff] %v7689_v52  ;;  %v10668_v44 = vpop.f32.mrb[110].mxu1 }
 0x8d3   :  { %v7704_v12 = vadd.f32 %v14656_v39, %v10668_v44  ;;  %v7698_v35 = vpop.f32.mrb[111].mxu1 }
 0x8d4   :  { %v7699_v7 = vadd.f32 %v14656_v39, %v7698_v35 }
 0x8d5   :  { %7739 = vst [vmem:[#allocation2 + $0x1f8] sm:$0xff] %v7704_v12 }
 0x8d6   :  { %7738 = vst [vmem:[#allocation2 + $0x1f0] sm:$0xff] %v7699_v7 }
 0x8d7   :  { %11439 = shalt.err (!%p11436_p4)
}
 0x8d8   :  { %s11440_s19 = scalar_lea.hbm %s14708_s6, 8192 }
 0x8d9   :  { %p11441_p5 = scmp.ne.s32.totalorder %s14708_s6, %s11440_s19  ;;  %p11444_p6 = scmp.lt.u32.totalorder %s11440_s19, %s14708_s6 }
 0x8db   :  { %p11446_p7 = pnand %p11444_p6, %p11441_p5 }
 0x8dd   :  { %11449 = shalt.err (!%p11446_p7)
}
 0x8de   :  { %s11454_s24 = smov 128   ;;  %s11455_s25 = smov 8  }
 0x8df   :  { %7751 = dma.vmem_to_hbm [thread:$0]  %s7746_s15, 8192, %s14708_s6, [#allocation3], %s11454_s24, %s11454_s24, %s11455_s25  }
 0x8e0   :  { %11450 = dma.done.wait [#allocation3], 8192  }
 0x8e1   :  { %11451 = vsyncadd [#allocation3], 4294959104 }
 0x8e2   :  { %7755 = vsyncpa [#allocation3], 1 }

</bundles_post_ra>
